<compile_context>
chip_gen: v7x
topology: tpu7x:2x2x1
jax: 0.10.0
libtpu: 0.0.40
codegen_flags: <defaults>
</compile_context>

<pallas_src>
import math

import jax
import jax.numpy as jnp
from jax.experimental import pallas as pl
from jax.experimental.pallas import tpu as pltpu

MIN_NORM = 1e-15
MIN_SQ = MIN_NORM * MIN_NORM
BALL_EPS = 4e-3                                                 # f32 Poincare-ball boundary eps
ARTANH_BOUNDARY = 0.5 * math.log((2.0 - BALL_EPS) / BALL_EPS)   # artanh(1 - BALL_EPS)
NEG_PAD = -1e30                                                 # bias for padded (fake) class lanes


# ----------------------- fused hyperbolic helpers (pure jnp, kernel-safe) -----
def _artanh(x):
    x = jnp.clip(x, -1.0 + 1e-7, 1.0 - 1e-7)
    return 0.5 * jnp.log((1.0 + x) / (1.0 - x))


def _rnorm(sumsq):
    """(1/||x||, ||x||) from a sum of squares, clamped away from 0 (rsqrt, no divide)."""
    s = jnp.maximum(sumsq, MIN_SQ)
    inv = jax.lax.rsqrt(s)
    return inv, s * inv


def _expmap0_proj(u, sqrt_c, inv_sqrt_c):
    """proj(expmap0(u, c), c) with one reduction and a clamp instead of re-projection.

    Returns (projected point, its norm)."""
    inv_un, un = _rnorm(jnp.sum(u * u, axis=-1, keepdims=True))
    nrm = jnp.minimum(jnp.tanh(sqrt_c * un), 1.0 - BALL_EPS) * inv_sqrt_c
    return u * (nrm * inv_un), jnp.maximum(nrm, MIN_NORM)


# ----------------------------- kernel A: hyperbolic encoder -------------------
def hgcn_encoder_kernel(c_ref, x_ref, w1_ref, hb_ref, xt_ref):
    """Per node-row tile: x -> expmap0 -> HypLinear (mobius matvec + bias) -> logmap0."""
    c = c_ref[0]
    sqrt_c = jnp.sqrt(c)
    inv_sqrt_c = 1.0 / sqrt_c
    maxnorm = (1.0 - BALL_EPS) * inv_sqrt_c

    x = x_ref[...]

    # --- map Euclidean features onto the ball (proj_tan0 == identity) --------
    x_hyp, x_hyp_norm = _expmap0_proj(x, sqrt_c, inv_sqrt_c)

    # --- mobius matvec (x_hyp @ W^T) fused with proj (norm clamp) ------------
    mx = jnp.dot(x_hyp, w1_ref[...], preferred_element_type=jnp.float32)
    mx_sumsq = jnp.sum(mx * mx, axis=-1, keepdims=True)
    inv_mxn, mxn = _rnorm(mx_sumsq)
    arg = mxn * pl.reciprocal(x_hyp_norm, approx=True) * _artanh(sqrt_c * x_hyp_norm)
    r_scale = jnp.minimum(jnp.tanh(arg), 1.0 - BALL_EPS) * inv_sqrt_c
    res = mx * (r_scale * inv_mxn)
    # zero-row guard (threshold in f32 instead of exact equality)
    res = jnp.where(mx_sumsq < 1e-30, jnp.zeros_like(res), res)

    # --- hyperbolic bias add (mobius_add with hoisted hyp bias) --------------
    hb = hb_ref[...]                                  # (1, hid) = proj(expmap0(b, c))
    x2 = jnp.sum(res * res, axis=-1, keepdims=True)
    y2 = jnp.sum(hb * hb, axis=-1, keepdims=True)
    xy = jnp.sum(res * hb, axis=-1, keepdims=True)
    num = (1.0 + 2.0 * c * xy + c * y2) * res + (1.0 - c * x2) * hb
    den = jnp.maximum(1.0 + 2.0 * c * xy + c * c * x2 * y2, MIN_NORM)
    madd = num * pl.reciprocal(den, approx=True)

    # --- proj + logmap0 fused: single reduction, clamp the norm --------------
    inv_mn, mn = _rnorm(jnp.sum(madd * madd, axis=-1, keepdims=True))
    clamped = jnp.minimum(mn, maxnorm)
    xt = madd * (_artanh(sqrt_c * clamped) * inv_sqrt_c * inv_mn)
    xt_ref[...] = xt.astype(xt_ref.dtype)


# ------------------- kernel B: tiled aggregation + decoder --------------------
def hgcn_agg_decode_kernel(c_ref, adj_ref, xt_ref, wd_ref, bd_ref, out_ref, acc_ref):
    """K-accumulated adj @ xt, then HypAct + LinearDecoder + log_softmax on the last K step."""
    k = pl.program_id(1)

    @pl.when(k == 0)
    def _init():
        acc_ref[...] = jnp.zeros_like(acc_ref)

    # bf16 x bf16 operands, f32 accumulation on the MXU
    acc_ref[...] += jnp.dot(adj_ref[...], xt_ref[...],
                            preferred_element_type=jnp.float32)

    @pl.when(k == pl.num_programs(1) - 1)
    def _finalize():
        c1 = c_ref[0]
        cd = c_ref[1]
        thr1 = ARTANH_BOUNDARY / jnp.sqrt(c1)
        thrd = ARTANH_BOUNDARY / jnp.sqrt(cd)

        support = acc_ref[...]

        # HypAgg tail + HypAct head: expmap0(c1)->proj->logmap0(c1) collapses exactly
        # to a tangent-norm clamp at artanh(1 - eps) / sqrt(c1).
        inv_sn, sn = _rnorm(jnp.sum(support * support, axis=-1, keepdims=True))
        u = jnp.where(sn > thr1, support * (thr1 * inv_sn), support)
        ht = jnp.maximum(u, 0.0)                      # ReLU in the tangent space
        # (F.dropout p=0.6, training=False -> identity)

        # HypAct tail + decoder head: expmap0(cd)->proj->logmap0(cd) collapses the same way.
        inv_tn, tn = _rnorm(jnp.sum(ht * ht, axis=-1, keepdims=True))
        z = jnp.where(tn > thrd, ht * (thrd * inv_tn), ht)

        # LinearDecoder (lane-padded to 128 classes) + log_softmax (padding carries -1e30 bias).
        logits = jnp.dot(z, wd_ref[...], preferred_element_type=jnp.float32) + bd_ref[...]
        m = jnp.max(logits, axis=-1, keepdims=True)
        lse = m + jnp.log(jnp.sum(jnp.exp(logits - m), axis=-1, keepdims=True))
        out_ref[...] = logits - lse


# ----------------------------- wrapper ----------------------------------------
def _round_up(a, m):
    return (a + m - 1) // m * m


def hgcn_forward(x, adj, w1_t, b1, wd_t, bd, curvatures,
                 *, node_tile=256, k_tile=512, enc_tile=256):
    """Full HGCN forward. `adj` is the dense symmetrically-normalized adjacency (f32)."""
    n, in_c = x.shape
    hid = w1_t.shape[1]
    n_cls = wd_t.shape[1]

    # ----- hoisted, node-independent prep (plain-JAX glue) --------------------
    c1 = curvatures[0]
    sqrt_c1 = jnp.sqrt(c1)
    hyp_bias, _ = _expmap0_proj(b1, sqrt_c1, 1.0 / sqrt_c1)       # (1, hid)

    # lane-dense logits/output (kills masked vst on the 8-wide class dim)
    n_cls_pad = _round_up(n_cls, 128)
    wd_pad = jnp.zeros((hid, n_cls_pad), jnp.float32).at[:, :n_cls].set(wd_t)
    bd_pad = jnp.full((1, n_cls_pad), NEG_PAD, jnp.float32).at[:, :n_cls].set(bd)

    # ----- tile sizes (keep (16,128)-friendly) and node-axis zero padding ------
    tma = min(enc_tile, _round_up(n, 16))
    tm = min(node_tile, _round_up(n, 16))
    tk = min(k_tile, _round_up(n, 128))
    n_pad = _round_up(n, math.lcm(tm, tk, tma))
    x_p = jnp.zeros((n_pad, in_c), jnp.float32).at[:n, :].set(x)
    adj_p = jnp.zeros((n_pad, n_pad), jnp.float32).at[:n, :n].set(adj)
    adj_bf16 = adj_p.astype(jnp.bfloat16)     # halve adj HBM traffic; accumulate in f32

    smem = pl.BlockSpec(memory_space=pltpu.MemorySpace.SMEM)

    # ----- kernel A: per-node hyperbolic encoder -> bf16 tangent features -----
    xt = pl.pallas_call(
        hgcn_encoder_kernel,
        out_shape=jax.ShapeDtypeStruct((n_pad, hid), jnp.bfloat16),
        grid=(n_pad // tma,),
        in_specs=[
            smem,                                                  # curvatures
            pl.BlockSpec((tma, in_c), lambda i: (i, 0)),           # x rows
            pl.BlockSpec((in_c, hid), lambda i: (0, 0)),           # W1^T (resident)
            pl.BlockSpec((1, hid), lambda i: (0, 0)),              # hyperbolic bias
        ],
        out_specs=pl.BlockSpec((tma, hid), lambda i: (i, 0)),
        compiler_params=pltpu.CompilerParams(dimension_semantics=("parallel",)),
    )(curvatures, x_p, w1_t, hyp_bias)

    # ----- kernel B: tiled adj @ xt + HypAct + decoder + log_softmax ----------
    # VMEM/step: 2x(tm*tk) bf16 adj + 2x(tk*hid) bf16 xt + (tm*hid) f32 acc
    #            + 2x(tm*128) f32 out  ~= 1 MiB at defaults -> fits every generation.
    out_pad = pl.pallas_call(
        hgcn_agg_decode_kernel,
        out_shape=jax.ShapeDtypeStruct((n_pad, n_cls_pad), jnp.float32),
        grid=(n_pad // tm, n_pad // tk),
        in_specs=[
            smem,                                                  # curvatures
            pl.BlockSpec((tm, tk), lambda i, k: (i, k)),           # adj tile (bf16)
            pl.BlockSpec((tk, hid), lambda i, k: (k, 0)),          # xt K-chunk (bf16)
            pl.BlockSpec((hid, n_cls_pad), lambda i, k: (0, 0)),   # decoder W^T (padded)
            pl.BlockSpec((1, n_cls_pad), lambda i, k: (0, 0)),     # decoder bias (padded)
        ],
        out_specs=pl.BlockSpec((tm, n_cls_pad), lambda i, k: (i, 0)),
        scratch_shapes=[pltpu.VMEM((tm, hid), jnp.float32)],
        compiler_params=pltpu.CompilerParams(
            dimension_semantics=("parallel", "arbitrary")),
    )(curvatures, adj_bf16, xt, wd_pad, bd_pad)

    return out_pad[:n, :n_cls]


# ----------------------------- glue / setup ------------------------------------
def build_norm_adj(edge_index, num_nodes):
    src, dst = edge_index
    a = jnp.zeros((num_nodes, num_nodes), jnp.float32).at[src, dst].set(1.0)
    a = jnp.maximum(a, a.T)                          # symmetrize
    a = a + jnp.eye(num_nodes, dtype=jnp.float32)    # self loops
    dinv = 1.0 / jnp.sqrt(jnp.sum(a, axis=-1))
    return a * dinv[:, None] * dinv[None, :]


if __name__ == "__main__":
    N, IN_C, HID_C, OUT_C, E = 768, 16, 32, 8, 3072

    key = jax.random.PRNGKey(0)
    k_x, k_e1, k_e2, k_w1, k_b1, k_wd, k_bd = jax.random.split(key, 7)

    # node features and a small random graph
    x = jax.random.normal(k_x, (N, IN_C), jnp.float32)
    src = jax.random.randint(k_e1, (E,), 0, N)
    dst = jax.random.randint(k_e2, (E,), 0, N)
    edge_index = jnp.stack([src, dst])               # [2, E], like PyG
    adj = build_norm_adj(edge_index, N)

    # deterministic parameter init (shapes from HGCNConv / LinearDecoder)
    w1 = 0.1 * jax.random.normal(k_w1, (HID_C, IN_C), jnp.float32)   # HypLinear weight
    b1 = 0.1 * jax.random.normal(k_b1, (1, HID_C), jnp.float32)      # HypLinear bias
    wd = 0.1 * jax.random.normal(k_wd, (OUT_C, HID_C), jnp.float32)  # decoder cls.weight
    bd = 0.1 * jax.random.normal(k_bd, (1, OUT_C), jnp.float32)      # decoder cls.bias
    curvatures = jnp.array([1.0, 1.0], jnp.float32)                  # [c_conv, c_decoder]

    out = hgcn_forward(x, adj, w1.T, b1, wd.T, bd, curvatures)
    out = jax.block_until_ready(out)

    assert out.shape == (N, OUT_C)
    assert bool(jnp.all(jnp.isfinite(out)))
    # rows of log_softmax must sum (in prob space) to 1
    assert bool(jnp.allclose(jnp.sum(jnp.exp(out), axis=-1), 1.0, atol=1e-4))
    print("KERNEL_OK")
</pallas_src>

<mosaic_0001>
module attributes {stable_mosaic.version = 11 : i64} {
  func.func @hgcn_encoder_kernel(%arg0: i32, %arg1: memref<2xf32, #tpu.memory_space<smem>>, %arg2: memref<256x16xf32, #tpu.memory_space<vmem>>, %arg3: memref<16x32xf32, #tpu.memory_space<vmem>>, %arg4: memref<1x32xf32, #tpu.memory_space<vmem>>, %arg5: memref<256x32xbf16, #tpu.memory_space<vmem>>) attributes {dimension_semantics = [#tpu.dimension_semantics<parallel>], iteration_bounds = array<i64: 4>, scalar_prefetch = 0 : i64, scratch_operands = 0 : i64, tpu.core_type = #tpu.core_type<tc>, window_params = [{transform_indices = @transform_0, window_bounds = array<i64: 2>}, {transform_indices = @transform_1, window_bounds = array<i64: 256, 16>}, {pipeline_mode = #tpu.pipeline_mode<synchronous>, transform_indices = @transform_2, window_bounds = array<i64: 16, 32>}, {pipeline_mode = #tpu.pipeline_mode<synchronous>, transform_indices = @transform_3, window_bounds = array<i64: 1, 32>}, {transform_indices = @transform_4, window_bounds = array<i64: 256, 32>}]} {
    %c0 = arith.constant 0 : index
    %0 = memref.load %arg1[%c0] : memref<2xf32, #tpu.memory_space<smem>>
    %1 = math.sqrt %0 : f32
    %cst = arith.constant 1.000000e+00 : f32
    %2 = arith.divf %cst, %1 : f32
    %cst_0 = arith.constant 0.995999991 : f32
    %3 = arith.mulf %cst_0, %2 : f32
    %c0_1 = arith.constant 0 : index
    %c0_2 = arith.constant 0 : index
    %4 = vector.load %arg2[%c0_1, %c0_2] : memref<256x16xf32, #tpu.memory_space<vmem>>, vector<256x16xf32>
    %5 = arith.mulf %4, %4 : vector<256x16xf32>
    %cst_3 = arith.constant dense<0.000000e+00> : vector<256xf32>
    %6 = vector.multi_reduction <add>, %5, %cst_3 [1] : vector<256x16xf32> to vector<256xf32>
    %7 = vector.shape_cast %6 : vector<256xf32> to vector<256x1xf32>
    %cst_4 = arith.constant 1.000000e-30 : f32
    %8 = vector.broadcast %cst_4 : f32 to vector<256x1xf32>
    %9 = arith.maximumf %7, %8 : vector<256x1xf32>
    %10 = math.rsqrt %9 : vector<256x1xf32>
    %11 = arith.mulf %9, %10 : vector<256x1xf32>
    %12 = vector.broadcast %1 : f32 to vector<256x1xf32>
    %13 = arith.mulf %12, %11 : vector<256x1xf32>
    %14 = math.tanh %13 : vector<256x1xf32>
    %cst_5 = arith.constant 0.995999991 : f32
    %15 = vector.broadcast %cst_5 : f32 to vector<256x1xf32>
    %16 = arith.minimumf %14, %15 : vector<256x1xf32>
    %17 = vector.broadcast %2 : f32 to vector<256x1xf32>
    %18 = arith.mulf %16, %17 : vector<256x1xf32>
    %19 = arith.mulf %18, %10 : vector<256x1xf32>
    %20 = vector.broadcast %19 : vector<256x1xf32> to vector<256x16xf32>
    %21 = arith.mulf %4, %20 : vector<256x16xf32>
    %cst_6 = arith.constant 1.000000e-15 : f32
    %22 = vector.broadcast %cst_6 : f32 to vector<256x1xf32>
    %23 = arith.maximumf %18, %22 : vector<256x1xf32>
    %c0_7 = arith.constant 0 : index
    %c0_8 = arith.constant 0 : index
    %24 = vector.load %arg3[%c0_7, %c0_8] : memref<16x32xf32, #tpu.memory_space<vmem>>, vector<16x32xf32>
    %cst_9 = arith.constant dense<0.000000e+00> : vector<256x32xf32>
    %25 = tpu.matmul %21, %24, %cst_9 {dimension_numbers = #tpu.dot_dimension_numbers<[1], [0], [0], [1], [0, 0, 1, 1], [], []>} : vector<256x16xf32>, vector<16x32xf32>, vector<256x32xf32> -> vector<256x32xf32>
    %26 = arith.mulf %25, %25 : vector<256x32xf32>
    %cst_10 = arith.constant dense<0.000000e+00> : vector<256xf32>
    %27 = vector.multi_reduction <add>, %26, %cst_10 [1] : vector<256x32xf32> to vector<256xf32>
    %28 = vector.shape_cast %27 : vector<256xf32> to vector<256x1xf32>
    %cst_11 = arith.constant 1.000000e-30 : f32
    %29 = vector.broadcast %cst_11 : f32 to vector<256x1xf32>
    %30 = arith.maximumf %28, %29 : vector<256x1xf32>
    %31 = math.rsqrt %30 : vector<256x1xf32>
    %32 = arith.mulf %30, %31 : vector<256x1xf32>
    %33 = tpu.reciprocal %23 {approx = true} : vector<256x1xf32> -> vector<256x1xf32>
    %34 = arith.mulf %32, %33 : vector<256x1xf32>
    %35 = vector.broadcast %1 : f32 to vector<256x1xf32>
    %36 = arith.mulf %35, %23 : vector<256x1xf32>
    %cst_12 = arith.constant -0.99999988 : f32
    %cst_13 = arith.constant 0.99999988 : f32
    %37 = vector.broadcast %cst_12 : f32 to vector<256x1xf32>
    %38 = arith.maximumf %37, %36 : vector<256x1xf32>
    %39 = vector.broadcast %cst_13 : f32 to vector<256x1xf32>
    %40 = arith.minimumf %39, %38 : vector<256x1xf32>
    %cst_14 = arith.constant 1.000000e+00 : f32
    %41 = vector.broadcast %cst_14 : f32 to vector<256x1xf32>
    %42 = arith.addf %41, %40 : vector<256x1xf32>
    %cst_15 = arith.constant 1.000000e+00 : f32
    %43 = vector.broadcast %cst_15 : f32 to vector<256x1xf32>
    %44 = arith.subf %43, %40 : vector<256x1xf32>
    %45 = arith.divf %42, %44 : vector<256x1xf32>
    %46 = math.log %45 : vector<256x1xf32>
    %cst_16 = arith.constant 5.000000e-01 : f32
    %47 = vector.broadcast %cst_16 : f32 to vector<256x1xf32>
    %48 = arith.mulf %47, %46 : vector<256x1xf32>
    %49 = arith.mulf %34, %48 : vector<256x1xf32>
    %50 = math.tanh %49 : vector<256x1xf32>
    %cst_17 = arith.constant 0.995999991 : f32
    %51 = vector.broadcast %cst_17 : f32 to vector<256x1xf32>
    %52 = arith.minimumf %50, %51 : vector<256x1xf32>
    %53 = vector.broadcast %2 : f32 to vector<256x1xf32>
    %54 = arith.mulf %52, %53 : vector<256x1xf32>
    %55 = arith.mulf %54, %31 : vector<256x1xf32>
    %56 = vector.broadcast %55 : vector<256x1xf32> to vector<256x32xf32>
    %57 = arith.mulf %25, %56 : vector<256x32xf32>
    %cst_18 = arith.constant 1.000000e-30 : f32
    %58 = vector.broadcast %cst_18 : f32 to vector<256x1xf32>
    %59 = arith.cmpf olt, %28, %58 : vector<256x1xf32>
    %cst_19 = arith.constant 0.000000e+00 : f32
    %60 = vector.broadcast %cst_19 : f32 to vector<256x32xf32>
    %61 = vector.shape_cast %59 : vector<256x1xi1> to vector<256x1xi1>
    %62 = vector.broadcast %61 : vector<256x1xi1> to vector<256x32xi1>
    %63 = arith.select %62, %60, %57 : vector<256x32xi1>, vector<256x32xf32>
    %c0_20 = arith.constant 0 : index
    %c0_21 = arith.constant 0 : index
    %64 = vector.load %arg4[%c0_20, %c0_21] : memref<1x32xf32, #tpu.memory_space<vmem>>, vector<1x32xf32>
    %65 = arith.mulf %63, %63 : vector<256x32xf32>
    %cst_22 = arith.constant dense<0.000000e+00> : vector<256xf32>
    %66 = vector.multi_reduction <add>, %65, %cst_22 [1] : vector<256x32xf32> to vector<256xf32>
    %67 = vector.shape_cast %66 : vector<256xf32> to vector<256x1xf32>
    %68 = arith.mulf %64, %64 : vector<1x32xf32>
    %cst_23 = arith.constant dense<0.000000e+00> : vector<1xf32>
    %69 = vector.multi_reduction <add>, %68, %cst_23 [1] : vector<1x32xf32> to vector<1xf32>
    %70 = vector.shape_cast %69 : vector<1xf32> to vector<1x1xf32>
    %71 = vector.broadcast %64 : vector<1x32xf32> to vector<256x32xf32>
    %72 = arith.mulf %63, %71 : vector<256x32xf32>
    %cst_24 = arith.constant dense<0.000000e+00> : vector<256xf32>
    %73 = vector.multi_reduction <add>, %72, %cst_24 [1] : vector<256x32xf32> to vector<256xf32>
    %74 = vector.shape_cast %73 : vector<256xf32> to vector<256x1xf32>
    %cst_25 = arith.constant 2.000000e+00 : f32
    %75 = arith.mulf %cst_25, %0 : f32
    %76 = vector.broadcast %75 : f32 to vector<256x1xf32>
    %77 = arith.mulf %76, %74 : vector<256x1xf32>
    %cst_26 = arith.constant 1.000000e+00 : f32
    %78 = vector.broadcast %cst_26 : f32 to vector<256x1xf32>
    %79 = arith.addf %78, %77 : vector<256x1xf32>
    %80 = vector.broadcast %0 : f32 to vector<1x1xf32>
    %81 = arith.mulf %80, %70 : vector<1x1xf32>
    %82 = vector.broadcast %81 : vector<1x1xf32> to vector<256x1xf32>
    %83 = arith.addf %79, %82 : vector<256x1xf32>
    %84 = vector.broadcast %83 : vector<256x1xf32> to vector<256x32xf32>
    %85 = arith.mulf %84, %63 : vector<256x32xf32>
    %86 = vector.broadcast %0 : f32 to vector<256x1xf32>
    %87 = arith.mulf %86, %67 : vector<256x1xf32>
    %cst_27 = arith.constant 1.000000e+00 : f32
    %88 = vector.broadcast %cst_27 : f32 to vector<256x1xf32>
    %89 = arith.subf %88, %87 : vector<256x1xf32>
    %90 = vector.broadcast %89 : vector<256x1xf32> to vector<256x32xf32>
    %91 = vector.broadcast %64 : vector<1x32xf32> to vector<256x32xf32>
    %92 = arith.mulf %90, %91 : vector<256x32xf32>
    %93 = arith.addf %85, %92 : vector<256x32xf32>
    %cst_28 = arith.constant 2.000000e+00 : f32
    %94 = arith.mulf %cst_28, %0 : f32
    %95 = vector.broadcast %94 : f32 to vector<256x1xf32>
    %96 = arith.mulf %95, %74 : vector<256x1xf32>
    %cst_29 = arith.constant 1.000000e+00 : f32
    %97 = vector.broadcast %cst_29 : f32 to vector<256x1xf32>
    %98 = arith.addf %97, %96 : vector<256x1xf32>
    %99 = arith.mulf %0, %0 : f32
    %100 = vector.broadcast %99 : f32 to vector<256x1xf32>
    %101 = arith.mulf %100, %67 : vector<256x1xf32>
    %102 = vector.broadcast %70 : vector<1x1xf32> to vector<256x1xf32>
    %103 = arith.mulf %101, %102 : vector<256x1xf32>
    %104 = arith.addf %98, %103 : vector<256x1xf32>
    %cst_30 = arith.constant 1.000000e-15 : f32
    %105 = vector.broadcast %cst_30 : f32 to vector<256x1xf32>
    %106 = arith.maximumf %104, %105 : vector<256x1xf32>
    %107 = tpu.reciprocal %106 {approx = true} : vector<256x1xf32> -> vector<256x1xf32>
    %108 = vector.broadcast %107 : vector<256x1xf32> to vector<256x32xf32>
    %109 = arith.mulf %93, %108 : vector<256x32xf32>
    %110 = arith.mulf %109, %109 : vector<256x32xf32>
    %cst_31 = arith.constant dense<0.000000e+00> : vector<256xf32>
    %111 = vector.multi_reduction <add>, %110, %cst_31 [1] : vector<256x32xf32> to vector<256xf32>
    %112 = vector.shape_cast %111 : vector<256xf32> to vector<256x1xf32>
    %cst_32 = arith.constant 1.000000e-30 : f32
    %113 = vector.broadcast %cst_32 : f32 to vector<256x1xf32>
    %114 = arith.maximumf %112, %113 : vector<256x1xf32>
    %115 = math.rsqrt %114 : vector<256x1xf32>
    %116 = arith.mulf %114, %115 : vector<256x1xf32>
    %117 = vector.broadcast %3 : f32 to vector<256x1xf32>
    %118 = arith.minimumf %116, %117 : vector<256x1xf32>
    %119 = vector.broadcast %1 : f32 to vector<256x1xf32>
    %120 = arith.mulf %119, %118 : vector<256x1xf32>
    %cst_33 = arith.constant -0.99999988 : f32
    %cst_34 = arith.constant 0.99999988 : f32
    %121 = vector.broadcast %cst_33 : f32 to vector<256x1xf32>
    %122 = arith.maximumf %121, %120 : vector<256x1xf32>
    %123 = vector.broadcast %cst_34 : f32 to vector<256x1xf32>
    %124 = arith.minimumf %123, %122 : vector<256x1xf32>
    %cst_35 = arith.constant 1.000000e+00 : f32
    %125 = vector.broadcast %cst_35 : f32 to vector<256x1xf32>
    %126 = arith.addf %125, %124 : vector<256x1xf32>
    %cst_36 = arith.constant 1.000000e+00 : f32
    %127 = vector.broadcast %cst_36 : f32 to vector<256x1xf32>
    %128 = arith.subf %127, %124 : vector<256x1xf32>
    %129 = arith.divf %126, %128 : vector<256x1xf32>
    %130 = math.log %129 : vector<256x1xf32>
    %cst_37 = arith.constant 5.000000e-01 : f32
    %131 = vector.broadcast %cst_37 : f32 to vector<256x1xf32>
    %132 = arith.mulf %131, %130 : vector<256x1xf32>
    %133 = vector.broadcast %2 : f32 to vector<256x1xf32>
    %134 = arith.mulf %132, %133 : vector<256x1xf32>
    %135 = arith.mulf %134, %115 : vector<256x1xf32>
    %136 = vector.broadcast %135 : vector<256x1xf32> to vector<256x32xf32>
    %137 = arith.mulf %109, %136 : vector<256x32xf32>
    %138 = arith.truncf %137 : vector<256x32xf32> to vector<256x32xbf16>
    %c0_38 = arith.constant 0 : index
    %c0_39 = arith.constant 0 : index
    %139 = vector.load %arg5[%c0_38, %c0_39] : memref<256x32xbf16, #tpu.memory_space<vmem>>, vector<256x32xbf16>
    tpu.vector_store %arg5[%c0_38, %c0_39], %138 {strides = array<i32>} : memref<256x32xbf16, #tpu.memory_space<vmem>>, vector<256x32xbf16>,
    return
  }
  func.func @transform_0(%arg0: i32) -> i32 {
    %c0_i32 = arith.constant 0 : i32
    %c0_i32_0 = arith.constant 0 : i32
    return %c0_i32 : i32
  }
  func.func @transform_1(%arg0: i32) -> (i32, i32) {
    %c0_i32 = arith.constant 0 : i32
    %c0_i32_0 = arith.constant 0 : i32
    return %arg0, %c0_i32 : i32, i32
  }
  func.func @transform_2(%arg0: i32) -> (i32, i32) {
    %c0_i32 = arith.constant 0 : i32
    %c0_i32_0 = arith.constant 0 : i32
    %c0_i32_1 = arith.constant 0 : i32
    return %c0_i32, %c0_i32_0 : i32, i32
  }
  func.func @transform_3(%arg0: i32) -> (i32, i32) {
    %c0_i32 = arith.constant 0 : i32
    %c0_i32_0 = arith.constant 0 : i32
    %c0_i32_1 = arith.constant 0 : i32
    return %c0_i32, %c0_i32_0 : i32, i32
  }
  func.func @transform_4(%arg0: i32) -> (i32, i32) {
    %c0_i32 = arith.constant 0 : i32
    %c0_i32_0 = arith.constant 0 : i32
    return %arg0, %c0_i32 : i32, i32
  }
}

</mosaic_0001>

<bundles_post_ra>
// kernel: tpu_custom_call.1
= control target key start
LH: loop header
LB: loop body
LE: loop exit
PB: predicated region body
PF: predicated region fallthrough
CT: control target
= control target key end

     0   :  { %9 = vsyncpa [#allocation3], 0  ;;  %s4647_s15 = smov 0   ;;  %s7940_s0 = inlined_call_operand.vmem [shape: f32[2], index: 0, kind: input, shape index: {}]   ;;  %s7941_s1 = inlined_call_operand.vmem [shape: f32[1024,16], index: 1, kind: input, shape index: {}]   ;;  %s7942_s2 = inlined_call_operand.vmem [shape: f32[16,32], index: 2, kind: input, shape index: {}]   ;;  %s7943_s3 = inlined_call_operand.vmem [shape: f32[1,32], index: 3, kind: input, shape index: {}]   ;;  %s7944_s4 = inlined_call_operand.vmem [shape: bf16[1024,32], index: 4, kind: output, shape index: {}]  }
   0x1 LB: > { %s3596_s16 = sadd.s32 4294967295, %s4619_s15   ;;  %p3598_p0 = scmp.ge.s32.totalorder %s4619_s15, 1  ;;  %s4619_s15 = sphi %s4647_s15, %s15_s15  }
   0x2   : > { %p135_p1 = scmp.lt.s32.totalorder %s4619_s15, 5  ;;  %s148_s19 = sshll.u32 %s7940_s0, 4  ;;  %s149_s19 = int_to_ptr.vmem [resolvable:$true] %s148_s19 }
   0x3   : > { %p4662_p3 = scmp.eq.s32.totalorder %s3596_s16, 0  ;;  %s4594_s22 = scalar_lea.vmem %s149_s19, 16 }
   0x4   : > { %p4658_p2 = pnand %p3598_p0, %p135_p1  ;;  %p4595_p6 = scmp.ne.s32.totalorder %s149_s19, %s4594_s22 }
   0x5   : > { %p4602_p10 = scmp.lt.s32.totalorder %s149_s19, %s149_s19  ;;  %p4603_p11 = scmp.lt.s32.totalorder %s4594_s22, %s4594_s22 }
   0x6   : > { %p3869_p4 = pneg %p4658_p2 }
   0x7   : > { %p4604_p12 = por %p4603_p11, %p4602_p10 }
   0x8   : > { %p3870_p5 = pnand %p4662_p3, %p3869_p4 }
   0xa   : > { %p4596_p7 = pneg %p3870_p5 }
   0xc   : > { %p4597_p8 = pnand %p4596_p7, %p4595_p6 }
   0xe   : > { %p4598_p9 = pneg %p4597_p8 }
  0x10   : > { %p4605_p13 = pnand %p4604_p12, %p4598_p9 }
  0x12   : > { %4608 = shalt.err (!%p4605_p13)
}
  0x13   : > { %s4621_s23 = smov [#allocation2]   ;;  %176 = sbr.rel (%p4658_p2) target bundleno = 1168 (0x490), region = 36 }
  0x14   : > { %3872 = dma.vmem_to_smem (!%p3870_p5), %s149_s19, 16, %s4621_s23, [#allocation3]  }
  0x1a   : > { %4614 = dma.done.wait (%p4662_p3), [#allocation3], 16  }
  0x1b   : > { %4616 = vsyncadd (%p4662_p3), [#allocation3], 4294967280 }
  0x1c   : > { %182 = sfence }
  0x1d   : > { %s3603_s24 = sshll.u32 %s3596_s16, 5  ;;  %s4676_s25 = sld [smem:[#allocation2]]  ;;  %vm293_vm0 = vcmask 130048   ;;  %vm2094_vm3 = vcmask 253952   ;;  %vm1067_vm4 = vcmask 261120  }
  0x1e   : > { %p204_p0 = scmp.lt.s32.totalorder %s3603_s24, 127 }
  0x20   : > { %s8399_s24 = smov (!%p204_p0, %s3603_s24), 127 }
  0x21   : > { %s3604_s26 = sshll.u32 %s8399_s24, 3  ;;  %s3606_s18 = sshll.u32 %s8399_s24, 2 }
  0x22   : > { %s4684_s29 = scalar_lea.vmem %s7941_s1, %s3604_s26  ;;  %s7484_s21 = scalar_lea.vmem %s7944_s4, %s3606_s18 }
  0x23   : > { %v4687_v0 = vstv %s4676_s25  ;;  %v4690_v1 = vld [vmem:[%s4684_s29 + $0x8] sm:$0xff]  ;;  %v4693_v2 = vld [vmem:[%s4684_s29] sm:$0xff]  ;;  %v4710_v9 = vld [vmem:[%s4684_s29 + $0x90] sm:$0xff]  ;;  %s2496_s14 = smul.f32 %s4676_s25, %s4676_s25 }
  0x24   : > { %8067 = vst [vmem:[#allocation5_spill] sm:$0xff] %v4687_v0  ;;  %v4696_v3 = vld [vmem:[%s4684_s29 + $0x88] sm:$0xff]  ;;  %v262_v4 = vmul.f32 %v4690_v1, %v4690_v1  ;;  %v261_v5 = vmul.f32 %v4693_v2, %v4693_v2  ;;  %v4705_v7 = vld [vmem:[%s4684_s29 + $0x80] sm:$0xff]  ;;  %v4713_v10 = vld [vmem:[%s4684_s29 + $0x10] sm:$0xff]  ;;  %3884 = vrsqrt.f32 %v4687_v0  ;;  %v279_v15 = vmul.f32 %v4710_v9, %v4710_v9  ;;  %s2232_s16 = smul.f32 2.0, %s4676_s25 }
  0x25   : > { %v278_v6 = vmul.f32 %v4696_v3, %v4696_v3  ;;  %v277_v8 = vmul.f32 %v4705_v7, %v4705_v7  ;;  %v263_v16 = vmul.f32 %v4713_v10, %v4713_v10  ;;  %v4725_v17 = vld [vmem:[%s4684_s29 + $0x98] sm:$0xff]  ;;  %v4737_v23 = vld [vmem:[%s4684_s29 + $0xa0] sm:$0xff]  ;;  %v4749_v30 = vld [vmem:[%s4684_s29 + $0xa8] sm:$0xff]  ;;  %vm219_vm1 = vcmp.eq.f32.partialorder %v4687_v0, inf }
  0x26   : > { %v297_v11 = vsel %vm293_vm0, %v262_v4, 0.0  ;;  %v294_v12 = vsel %vm293_vm0, %v261_v5, 0.0  ;;  %v4728_v18 = vld [vmem:[%s4684_s29 + $0x18] sm:$0xff]  ;;  %v348_v19 = vsel %vm293_vm0, %v279_v15, 0.0  ;;  %v280_v21 = vmul.f32 %v4725_v17, %v4725_v17  ;;  %v4740_v24 = vld [vmem:[%s4684_s29 + $0x20] sm:$0xff]  ;;  %v4752_v31 = vld [vmem:[%s4684_s29 + $0x28] sm:$0xff] }
  0x27   : > { %298 = vadd.xlane.f32.xlu1 %v297_v11  ;;  %295 = vadd.xlane.f32.xlu0 %v294_v12  ;;  %v345_v13 = vsel %vm293_vm0, %v278_v6, 0.0  ;;  %v342_v14 = vsel %vm293_vm0, %v277_v8, 0.0  ;;  %v300_v20 = vsel %vm293_vm0, %v263_v16, 0.0  ;;  %v264_v22 = vmul.f32 %v4728_v18, %v4728_v18  ;;  %v4766_v39 = vld [vmem:[%s4684_s29 + $0xb0] sm:$0xff]  ;;  %v4778_v46 = vld [vmem:[%s4684_s29 + $0xb8] sm:$0xff]  ;;  %v4790_v52 = vld [vmem:[%s4684_s29 + $0xc0] sm:$0xff] }
  0x28   : > { %v351_v26 = vsel %vm293_vm0, %v280_v21, 0.0  ;;  %v281_v28 = vmul.f32 %v4737_v23, %v4737_v23  ;;  %v265_v29 = vmul.f32 %v4740_v24, %v4740_v24  ;;  %v222_v32 = vand.u32 2147483648, %v4687_v0  ;;  %v4769_v40 = vld [vmem:[%s4684_s29 + $0x30] sm:$0xff]  ;;  %v4781_v47 = vld [vmem:[%s4684_s29 + $0x38] sm:$0xff]  ;;  %v4793_v53 = vld [vmem:[%s4684_s29 + $0x40] sm:$0xff] }
  0x29   : > { %v303_v27 = vsel %vm293_vm0, %v264_v22, 0.0  ;;  %vm221_vm2 = vcmp.eq.f32.partialorder %v4687_v0, 0.0  ;;  %v282_v34 = vmul.f32 %v4749_v30, %v4749_v30  ;;  %v266_v37 = vmul.f32 %v4752_v31, %v4752_v31  ;;  %v4802_v58 = vld [vmem:[%s4684_s29 + $0xc8] sm:$0xff]  ;;  %v4814_v4 = vld [vmem:[%s4684_s29 + $0xd0] sm:$0xff]  ;;  %v4838_v21 = vld [vmem:[%s4684_s29 + $0xe0] sm:$0xff] }
  0x2a   : > { %v354_v35 = vsel %vm293_vm0, %v281_v28, 0.0  ;;  %v306_v36 = vsel %vm293_vm0, %v265_v29, 0.0  ;;  %v283_v44 = vmul.f32 %v4766_v39, %v4766_v39  ;;  %v267_v45 = vmul.f32 %v4769_v40, %v4769_v40  ;;  %v4805_v59 = vld [vmem:[%s4684_s29 + $0x48] sm:$0xff]  ;;  %8069 = vst [vmem:[#allocation7_spill] sm:$0xff] %v4814_v4  ;;  %v4817_v5 = vld [vmem:[%s4684_s29 + $0x50] sm:$0xff]  ;;  %8073 = vst [vmem:[#allocation11_spill] sm:$0xff] %v4838_v21 }
  0x2b   : > { %346 = vadd.xlane.f32.xlu1 %v345_v13  ;;  %343 = vadd.xlane.f32.xlu0 %v342_v14  ;;  %v357_v42 = vsel %vm293_vm0, %v282_v34, 0.0  ;;  %v309_v43 = vsel %vm293_vm0, %v266_v37, 0.0  ;;  %v284_v50 = vmul.f32 %v4778_v46, %v4778_v46  ;;  %v268_v51 = vmul.f32 %v4781_v47, %v4781_v47  ;;  %8068 = vst [vmem:[#allocation6_spill] sm:$0xff] %v4805_v59  ;;  %v4826_v13 = vld [vmem:[%s4684_s29 + $0xd8] sm:$0xff]  ;;  %v4841_v22 = vld [vmem:[%s4684_s29 + $0x60] sm:$0xff]  ;;  %v4850_v29 = vld [vmem:[%s4684_s29 + $0xe8] sm:$0xff] }
  0x2c   : > { %v360_v48 = vsel %vm293_vm0, %v283_v44, 0.0  ;;  %v312_v49 = vsel %vm293_vm0, %v267_v45, 0.0  ;;  %v285_v56 = vmul.f32 %v4790_v52, %v4790_v52  ;;  %v269_v57 = vmul.f32 %v4793_v53, %v4793_v53  ;;  %8070 = vst [vmem:[#allocation8_spill] sm:$0xff] %v4817_v5  ;;  %8071 = vst [vmem:[#allocation9_spill] sm:$0xff] %v4826_v13  ;;  %v4829_v14 = vld [vmem:[%s4684_s29 + $0x58] sm:$0xff]  ;;  %v4862_v37 = vld [vmem:[%s4684_s29 + $0xf0] sm:$0xff] }
  0x2d   : > { %v363_v54 = vsel %vm293_vm0, %v284_v50, 0.0  ;;  %v315_v55 = vsel %vm293_vm0, %v268_v51, 0.0  ;;  %v286_v62 = vmul.f32 %v4802_v58, %v4802_v58  ;;  %v270_v63 = vmul.f32 %v4805_v59, %v4805_v59  ;;  %8072 = vst [vmem:[#allocation10_spill] sm:$0xff] %v4829_v14  ;;  %8074 = vst [vmem:[#allocation12_spill] sm:$0xff] %v4841_v22  ;;  %v4874_v45 = vld [vmem:[%s4684_s29 + $0xf8] sm:$0xff]  ;;  %v713_v50 = vld [vmem:[%s7942_s2 + $0x8] sm:$0xff] }
  0x2e   : > { %v3885_v25 = vpop.eup %3884  ;;  %v366_v60 = vsel %vm293_vm0, %v285_v56, 0.0  ;;  %v318_v61 = vsel %vm293_vm0, %v269_v57, 0.0  ;;  %v287_v11 = vmul.f32 %v4814_v4, %v4814_v4  ;;  %v271_v12 = vmul.f32 %v4817_v5, %v4817_v5  ;;  %8075 = vst [vmem:[#allocation13_spill] sm:$0xff] %v4850_v29  ;;  %8077 = vst [vmem:[#allocation15_spill] sm:$0xff] %v4862_v37 }
  0x2f   : > { %349 = vadd.xlane.f32.xlu1 %v348_v19  ;;  %301 = vadd.xlane.f32.xlu0 %v300_v20  ;;  %v218_v33 = vmul.f32 %v3885_v25, %v4687_v0  ;;  %v369_v6 = vsel %vm293_vm0, %v286_v62, 0.0  ;;  %v321_v8 = vsel %vm293_vm0, %v270_v63, 0.0  ;;  %v288_v19 = vmul.f32 %v4826_v13, %v4826_v13  ;;  %8079 = vst [vmem:[#allocation17_spill] sm:$0xff] %v4874_v45 }
  0x30   : > { %v372_v15 = vsel %vm293_vm0, %v287_v11, 0.0  ;;  %v324_v16 = vsel %vm293_vm0, %v271_v12, 0.0  ;;  %v272_v20 = vmul.f32 %v4829_v14, %v4829_v14  ;;  %v273_v28 = vmul.f32 %v4841_v22, %v4841_v22 }
  0x31   : > { %v220_v38 = vsel %vm219_vm1, %v4687_v0, %v218_v33  ;;  %v375_v25 = vsel %vm293_vm0, %v288_v19, 0.0  ;;  %v292_v56 = vmul.f32 %v4874_v45, %v4874_v45 }
  0x32   : > { %v223_v41 = vsel %vm221_vm2, %v222_v32, %v220_v38  ;;  %v4853_v32 = vld [vmem:[%s4684_s29 + $0x68] sm:$0xff]  ;;  %v330_v34 = vsel %vm293_vm0, %v273_v28, 0.0  ;;  %v4865_v38 = vld [vmem:[%s4684_s29 + $0x70] sm:$0xff] }
  0x33   : > { %352 = vadd.xlane.f32.xlu1 %v351_v26  ;;  %304 = vadd.xlane.f32.xlu0 %v303_v27  ;;  %3861 = vpush %v223_v41  ;;  %v327_v26 = vsel %vm293_vm0, %v272_v20, 0.0  ;;  %v289_v27 = vmul.f32 %v4838_v21, %v4838_v21  ;;  %8076 = vst [vmem:[#allocation14_spill] sm:$0xff] %v4853_v32  ;;  %v275_v44 = vmul.f32 %v4865_v38, %v4865_v38 }
  0x34   : > { %8078 = vst [vmem:[#allocation16_spill] sm:$0xff] %v4865_v38 }
  0x35   : > { %v378_v33 = vsel %vm293_vm0, %v289_v27, 0.0 }
  0x37   : > { %355 = vadd.xlane.f32.xlu1 %v354_v35  ;;  %307 = vadd.xlane.f32.xlu0 %v306_v36  ;;  %v290_v35 = vmul.f32 %v4850_v29, %v4850_v29  ;;  %v274_v36 = vmul.f32 %v4853_v32, %v4853_v32 }
  0x39   : > { %v381_v41 = vsel %vm293_vm0, %v290_v35, 0.0 }
  0x3b   : > { %358 = vadd.xlane.f32.xlu1 %v357_v42  ;;  %310 = vadd.xlane.f32.xlu0 %v309_v43  ;;  %v333_v42 = vsel %vm293_vm0, %v274_v36, 0.0  ;;  %v291_v43 = vmul.f32 %v4862_v37, %v4862_v37 }
  0x3f   : > { %361 = vadd.xlane.f32.xlu1 %v360_v48  ;;  %313 = vadd.xlane.f32.xlu0 %v312_v49  ;;  %v4877_v48 = vld [vmem:[%s4684_s29 + $0x78] sm:$0xff]  ;;  %v712_v49 = vld [vmem:[%s7942_s2] sm:$0xff] }
  0x40   : > { %8080 = vst [vmem:[#allocation18_spill] sm:$0xff] %v4877_v48  ;;  %v3855_v51 = vpack.c.bf16 %v713_v50, %v712_v49  ;;  %v276_v57 = vmul.f32 %v4877_v48, %v4877_v48 }
  0x42   : > { %3856 = vmatprep.subr.bf16.mxu0 %v3855_v51  ;;  %3859 = vmatprep.subr.bf16.mxu1 %v3855_v51 }
  0x43   : > { %364 = vadd.xlane.f32.xlu1 %v363_v54  ;;  %316 = vadd.xlane.f32.xlu0 %v315_v55  ;;  %v384_v54 = vsel %vm293_vm0, %v291_v43, 0.0  ;;  %v336_v55 = vsel %vm293_vm0, %v275_v44, 0.0 }
  0x44   : > { %3858 = vmatpush3.bf16.msra.mxu0 %v3855_v51  ;;  %3860 = vmatpush3.bf16.msra.mxu1 %v3855_v51 }
  0x47   : > { %367 = vadd.xlane.f32.xlu1 %v366_v60  ;;  %319 = vadd.xlane.f32.xlu0 %v318_v61  ;;  %v387_v60 = vsel %vm293_vm0, %v292_v56, 0.0  ;;  %v339_v61 = vsel %vm293_vm0, %v276_v57, 0.0 }
  0x4b   : > { %370 = vadd.xlane.f32.xlu1 %v369_v6  ;;  %322 = vadd.xlane.f32.xlu0 %v321_v8 }
  0x4f   : > { %373 = vadd.xlane.f32.xlu1 %v372_v15  ;;  %325 = vadd.xlane.f32.xlu0 %v324_v16 }
  0x53   : > { %376 = vadd.xlane.f32.xlu1 %v375_v25  ;;  %328 = vadd.xlane.f32.xlu0 %v327_v26 }
  0x57   : > { %379 = vadd.xlane.f32.xlu1 %v378_v33  ;;  %331 = vadd.xlane.f32.xlu0 %v330_v34 }
  0x5b   : > { %382 = vadd.xlane.f32.xlu1 %v381_v41  ;;  %334 = vadd.xlane.f32.xlu0 %v333_v42 }
  0x5f   : > { %385 = vadd.xlane.f32.xlu1 %v384_v54  ;;  %337 = vadd.xlane.f32.xlu0 %v336_v55 }
  0x63   : > { %388 = vadd.xlane.f32.xlu1 %v387_v60  ;;  %340 = vadd.xlane.f32.xlu0 %v339_v61 }
  0x64   : > { %s3862_s8 = spop %3861 }
  0x65   : > { %v4893_v62 = vstv %s3862_s8 }
  0x66   : > { %8081 = vst [vmem:[#allocation19_spill] sm:$0xff] %v4893_v62  ;;  %3886 = vrcp.f32 %v4893_v62 }
  0x70   : > { %v3887_v63 = vpop.eup %3886 }
  0x71   : > { %3863 = vpush %v3887_v63 }
  0xa2   : > { %s4917_s9 = spop %3863 }
  0xa3   : > { %v4926_v51 = vstv %s4917_s9  ;;  %s228_s17 = smul.f32 0.996, %s4917_s9 }
  0xa4   : > { %8082 = vst [vmem:[#allocation20_spill] sm:$0xff] %v4926_v51 }
  0xb4   : > { %v299_v6 = vpop.xlane.xlu1 %298  ;;  %v296_v8 = vpop.xlane.xlu0 %295 }
  0xb5   : > { %v390_v11 = vmax.f32 %v296_v8, 1e-30  ;;  %v391_v41 = vmax.f32 %v299_v6, 1e-30 }
  0xb7   : > { %3888 = vrsqrt.f32 %v390_v11 }
  0xb8   : > { %v4896_v12 = vpop.xlane.xlu1 %346  ;;  %v4898_v15 = vpop.xlane.xlu0 %343 }
  0xb9   : > { %v407_v43 = vmax.f32 %v4896_v12, 1e-30  ;;  %v406_v54 = vmax.f32 %v4898_v15, 1e-30 }
  0xbc   : > { %v4900_v16 = vpop.xlane.xlu1 %349  ;;  %v4902_v19 = vpop.xlane.xlu0 %301 }
  0xbd   : > { %v392_v50 = vmax.f32 %v4902_v19, 1e-30  ;;  %v408_v56 = vmax.f32 %v4900_v16, 1e-30 }
  0xc0   : > { %v4904_v20 = vpop.xlane.xlu1 %352  ;;  %v4906_v25 = vpop.xlane.xlu0 %304 }
  0xc1   : > { %v3889_v26 = vpop.eup %3888  ;;  %v409_v57 = vmax.f32 %v4904_v20, 1e-30  ;;  %v393_v61 = vmax.f32 %v4906_v25, 1e-30 }
  0xc2   : > { %v454_v27 = vmul.f32 %v3889_v26, %v390_v11 }
  0xc4   : > { %v4908_v28 = vpop.xlane.xlu1 %355  ;;  %v4910_v33 = vpop.xlane.xlu0 %307  ;;  %v487_v34 = vmul.f32 %v454_v27, %v4893_v62 }
  0xc5   : > { %v410_v6 = vmax.f32 %v4908_v28, 1e-30  ;;  %v394_v12 = vmax.f32 %v4910_v33, 1e-30 }
  0xc6   : > { %3890 = vtanh.f32 %v487_v34 }
  0xc7   : > { %3892 = vrsqrt.f32 %v391_v41 }
  0xc8   : > { %v4913_v35 = vpop.xlane.xlu0 %310  ;;  %v4915_v36 = vpop.xlane.xlu1 %358  ;;  %3894 = vrsqrt.f32 %v407_v43 }
  0xc9   : > { %3896 = vrsqrt.f32 %v392_v50  ;;  %v411_v15 = vmax.f32 %v4915_v36, 1e-30  ;;  %v395_v19 = vmax.f32 %v4913_v35, 1e-30 }
  0xca   : > { %3898 = vrsqrt.f32 %v406_v54 }
  0xcb   : > { %3900 = vrsqrt.f32 %v408_v56 }
  0xcc   : > { %v4919_v42 = vpop.xlane.xlu0 %313  ;;  %v4922_v44 = vpop.xlane.xlu1 %361  ;;  %3902 = vrsqrt.f32 %v409_v57 }
  0xcd   : > { %3904 = vrsqrt.f32 %v393_v61  ;;  %v412_v25 = vmax.f32 %v4922_v44, 1e-30 }
  0xce   : > { %3906 = vrsqrt.f32 %v410_v6 }
  0xcf   : > { %3908 = vrsqrt.f32 %v394_v12 }
  0xd0   : > { %v3891_v49 = vpop.eup %3890  ;;  %v4935_v63 = vpop.xlane.xlu0 %316  ;;  %3910 = vrsqrt.f32 %v411_v15 }
  0xd1   : > { %v551_v55 = vmin.f32 %v3891_v49, 0.996  ;;  %v4938_v8 = vpop.xlane.xlu1 %364  ;;  %v4945_v20 = vpop.eup %3892  ;;  %v397_v28 = vmax.f32 %v4935_v63, 1e-30  ;;  %3912 = vrsqrt.f32 %v395_v19 }
  0xd2   : > { %v413_v34 = vmax.f32 %v4938_v8, 1e-30  ;;  %v4957_v35 = vpop.eup %3894  ;;  %3914 = vrsqrt.f32 %v412_v25 }
  0xd3   : > { %v4932_v60 = vmul.f32 %v4926_v51, %v551_v55  ;;  %v4960_v44 = vpop.eup %3896  ;;  %v471_v63 = vmul.f32 %v4957_v35, %v407_v43 }
  0xd4   : > { %v4950_v27 = vpop.xlane.xlu0 %319  ;;  %v4963_v49 = vpop.eup %3898 }
  0xd5   : > { %8083 = vst [vmem:[#allocation21_spill] sm:$0xff] %v4932_v60  ;;  %v616_v11 = vmul.f32 %v3889_v26, %v4932_v60  ;;  %v396_v26 = vmax.f32 %v4919_v42, 1e-30  ;;  %v4953_v33 = vpop.xlane.xlu1 %367  ;;  %v398_v36 = vmax.f32 %v4950_v27, 1e-30  ;;  %v4965_v55 = vpop.eup %3900  ;;  %v470_v27 = vmul.f32 %v4963_v49, %v406_v54 }
  0xd6   : > { %v414_v42 = vmax.f32 %v4953_v33, 1e-30  ;;  %v4969_v8 = vpop.eup %3902  ;;  %v472_v0 = vmul.f32 %v4965_v55, %v408_v56  ;;  %v504_v43 = vmul.f32 %v471_v63, %v4893_v62 }
  0xd7   : > { %v648_v16 = vmul.f32 %v616_v11, %v4693_v2  ;;  %v455_v2 = vmul.f32 %v4945_v20, %v391_v41  ;;  %3916 = vrsqrt.f32 %v396_v26  ;;  %v456_v11 = vmul.f32 %v4960_v44, %v392_v50 }
  0xd8   : > { %3918 = vrsqrt.f32 %v397_v28  ;;  %v503_v54 = vmul.f32 %v470_v27, %v4893_v62 }
  0xd9   : > { %3807 = vmatprep.mubr.msk.f32.mxu0 %vm293_vm0, %v648_v16  ;;  %v488_v41 = vmul.f32 %v455_v2, %v4893_v62  ;;  %3920 = vrsqrt.f32 %v413_v34  ;;  %v4972_v16 = vpop.eup %3904  ;;  %v473_v2 = vmul.f32 %v4969_v8, %v409_v57  ;;  %v489_v50 = vmul.f32 %v456_v11, %v4893_v62 }
  0xda   : > { %3922 = vrsqrt.f32 %v398_v36  ;;  %v4975_v33 = vpop.eup %3906  ;;  %v457_v45 = vmul.f32 %v4972_v16, %v393_v61 }
  0xdb   : > { %3924 = vrsqrt.f32 %v414_v42  ;;  %v4978_v60 = vpop.eup %3908  ;;  %v474_v38 = vmul.f32 %v4975_v33, %v410_v6  ;;  %v506_v57 = vmul.f32 %v473_v2, %v4893_v62 }
  0xdc   : > { %3926 = vtanh.f32 %v488_v41  ;;  %v4982_v48 = vpop.eup %3910  ;;  %v505_v41 = vmul.f32 %v472_v0, %v4893_v62  ;;  %v458_v63 = vmul.f32 %v4978_v60, %v394_v12  ;;  %v490_v27 = vmul.f32 %v457_v45, %v4893_v62 }
  0xdd   : > { %v4986_v37 = vpop.eup %3912  ;;  %3928 = vtanh.f32 %v504_v43  ;;  %v475_v11 = vmul.f32 %v4982_v48, %v411_v15  ;;  %v507_v0 = vmul.f32 %v474_v38, %v4893_v62 }
  0xde   : > { %v4990_v56 = vpop.eup %3914  ;;  %3930 = vtanh.f32 %v489_v50  ;;  %v459_v6 = vmul.f32 %v4986_v37, %v395_v19  ;;  %v491_v43 = vmul.f32 %v458_v63, %v4893_v62  ;;  %v5018_v63 = vpop.xlane.xlu1 %370 }
  0xdf   : > { %3932 = vtanh.f32 %v503_v54  ;;  %v476_v12 = vmul.f32 %v4990_v56, %v412_v25  ;;  %v508_v45 = vmul.f32 %v475_v11, %v4893_v62 }
  0xe0   : > { %3934 = vtanh.f32 %v505_v41  ;;  %v492_v50 = vmul.f32 %v459_v6, %v4893_v62 }
  0xe1   : > { %v4994_v29 = vpop.eup %3916  ;;  %3936 = vtanh.f32 %v506_v57  ;;  %v509_v54 = vmul.f32 %v476_v12, %v4893_v62  ;;  %v5026_v12 = vpop.xlane.xlu0 %322 }
  0xe2   : > { %v4998_v61 = vpop.eup %3918  ;;  %v460_v15 = vmul.f32 %v4994_v29, %v396_v26  ;;  %3938 = vtanh.f32 %v490_v27 }
  0xe3   : > { %v5002_v32 = vpop.eup %3920  ;;  %v461_v19 = vmul.f32 %v4998_v61, %v397_v28  ;;  %3940 = vtanh.f32 %v507_v0 }
  0xe4   : > { %v5006_v21 = vpop.eup %3922  ;;  %v477_v38 = vmul.f32 %v5002_v32, %v413_v34  ;;  %3942 = vtanh.f32 %v491_v43  ;;  %v493_v26 = vmul.f32 %v460_v15, %v4893_v62 }
  0xe5   : > { %v5010_v2 = vpop.eup %3924  ;;  %v462_v41 = vmul.f32 %v5006_v21, %v398_v36  ;;  %3944 = vtanh.f32 %v508_v45  ;;  %v494_v28 = vmul.f32 %v461_v19, %v4893_v62 }
  0xe6   : > { %v3927_v25 = vpop.eup %3926  ;;  %v478_v57 = vmul.f32 %v5010_v2, %v414_v42  ;;  %3946 = vtanh.f32 %v492_v50  ;;  %v510_v34 = vmul.f32 %v477_v38, %v4893_v62  ;;  %v5028_v42 = vpop.xlane.xlu1 %373 }
  0xe7   : > { %v552_v11 = vmin.f32 %v3927_v25, 0.996  ;;  %v3929_v27 = vpop.eup %3928  ;;  %3948 = vtanh.f32 %v509_v54  ;;  %v495_v6 = vmul.f32 %v462_v41, %v4893_v62  ;;  %v7961_v25 = vmax.f32 %v5018_v63, 1e-30 }
  0xe8   : > { %v3931_v0 = vpop.eup %3930  ;;  %3950 = vtanh.f32 %v493_v26  ;;  %v511_v36 = vmul.f32 %v478_v57, %v4893_v62  ;;  %v568_v45 = vmin.f32 %v3929_v27, 0.996 }
  0xe9   : > { %v3933_v43 = vpop.eup %3932  ;;  %3952 = vtanh.f32 %v494_v28  ;;  %v5031_v19 = vmul.f32 %v4926_v51, %v552_v11  ;;  %v553_v38 = vmin.f32 %v3931_v0, 0.996 }
  0xea   : > { %v3935_v15 = vpop.eup %3934  ;;  %3954 = vtanh.f32 %v510_v34  ;;  %v5035_v28 = vmul.f32 %v4926_v51, %v568_v45  ;;  %v5039_v34 = vpop.xlane.xlu0 %325  ;;  %v567_v14 = vmin.f32 %v3933_v43, 0.996 }
  0xeb   : > { %8084 = vst [vmem:[#allocation22_spill] sm:$0xff] %v5031_v19  ;;  %v3937_v50 = vpop.eup %3936  ;;  %3956 = vtanh.f32 %v495_v6  ;;  %v569_v26 = vmin.f32 %v3935_v15, 0.996  ;;  %v617_v27 = vmul.f32 %v4945_v20, %v5031_v19  ;;  %v5042_v6 = vmul.f32 %v4926_v51, %v553_v38  ;;  %v5046_v0 = vpop.xlane.xlu1 %376 }
  0xec   : > { %v3939_v54 = vpop.eup %3938  ;;  %3958 = vtanh.f32 %v511_v36  ;;  %8085 = vst [vmem:[#allocation23_spill] sm:$0xff] %v5035_v28  ;;  %v570_v22 = vmin.f32 %v3937_v50, 0.996  ;;  %v5054_v38 = vmul.f32 %v4926_v51, %v567_v14 }
  0xed   : > { %v3941_v41 = vpop.eup %3940  ;;  %v554_v13 = vmin.f32 %v3939_v54, 0.996  ;;  %8086 = vst [vmem:[#allocation24_spill] sm:$0xff] %v5042_v6  ;;  %3960 = vrsqrt.f32 %v7961_v25  ;;  %v649_v45 = vmul.f32 %v617_v27, %v4690_v1  ;;  %v5050_v19 = vmul.f32 %v4926_v51, %v569_v26 }
  0xee   : > { %v3943_v57 = vpop.eup %3942  ;;  %v571_v15 = vmin.f32 %v3941_v41, 0.996  ;;  %8087 = vst [vmem:[#allocation25_spill] sm:$0xff] %v5054_v38  ;;  %v633_v54 = vmul.f32 %v4957_v35, %v5035_v28  ;;  %v5062_v1 = vmul.f32 %v4926_v51, %v570_v22  ;;  %v618_v43 = vmul.f32 %v4960_v44, %v5042_v6  ;;  %v5071_v35 = vpop.xlane.xlu0 %328 }
  0xef   : > { %v3945_v11 = vpop.eup %3944  ;;  %v555_v20 = vmin.f32 %v3943_v57, 0.996  ;;  %3808 = vmatmul.mubr.msk.f32.vlgmr.msra.gmra.mrb[0].mxu0 %vm293_vm0, %v649_v45  ;;  %v5059_v41 = vmul.f32 %v4926_v51, %v554_v13  ;;  %v632_v14 = vmul.f32 %v4963_v49, %v5054_v38  ;;  %v634_v44 = vmul.f32 %v4965_v55, %v5050_v19 }
  0xf0   : > { %v3947_v36 = vpop.eup %3946  ;;  %v572_v57 = vmin.f32 %v3945_v11, 0.996  ;;  %v5067_v45 = vmul.f32 %v4926_v51, %v571_v15  ;;  %v665_v22 = vmul.f32 %v633_v54, %v4696_v3  ;;  %v650_v5 = vmul.f32 %v618_v43, %v4713_v10  ;;  %v5080_v11 = vpop.xlane.xlu1 %379 }
  0xf1   : > { %v3949_v4 = vpop.eup %3948  ;;  %v556_v27 = vmin.f32 %v3947_v36, 0.996  ;;  %v5074_v13 = vmul.f32 %v4926_v51, %v555_v20  ;;  %v664_v49 = vmul.f32 %v632_v14, %v4705_v7  ;;  %v399_v38 = vmax.f32 %v5026_v12, 1e-30 }
  0xf2   : > { %v3951_v50 = vpop.eup %3950  ;;  %v573_v15 = vmin.f32 %v3949_v4, 0.996  ;;  %3810 = vmatprep.mubr.msk.f32.mxu0 %vm293_vm0, %v650_v5  ;;  %v666_v20 = vmul.f32 %v634_v44, %v4710_v9  ;;  %v619_v3 = vmul.f32 %v4972_v16, %v5059_v41  ;;  %v635_v10 = vmul.f32 %v4969_v8, %v5062_v1 }
  0xf3   : > { %v3953_v25 = vpop.eup %3952  ;;  %v557_v6 = vmin.f32 %v3951_v50, 0.996  ;;  %v5091_v54 = vmul.f32 %v4926_v51, %v556_v27  ;;  %v5094_v4 = vmul.f32 %v4926_v51, %v572_v57  ;;  %3831 = vmatprep.mubr.msk.f32.mxu1 %vm293_vm0, %v664_v49  ;;  %v620_v8 = vmul.f32 %v4978_v60, %v5074_v13  ;;  %v5114_v57 = vpop.xlane.xlu0 %331 }
  0xf4   : > { %v3955_v26 = vpop.eup %3954  ;;  %v558_v59 = vmin.f32 %v3953_v25, 0.996  ;;  %3832 = vmatmul.mubr.msk.f32.vlgmr.msra.gmra.mrb[0].mxu1 %vm293_vm0, %v665_v22  ;;  %v651_v9 = vmul.f32 %v619_v3, %v4728_v18  ;;  %v667_v16 = vmul.f32 %v635_v10, %v4725_v17  ;;  %v5108_v43 = vmul.f32 %v4926_v51, %v573_v15  ;;  %v5122_v17 = vpop.xlane.xlu1 %382 }
  0xf5   : > { %v3957_v28 = vpop.eup %3956  ;;  %v574_v55 = vmin.f32 %v3955_v26, 0.996  ;;  %v5105_v50 = vmul.f32 %v4926_v51, %v557_v6  ;;  %3834 = vmatprep.mubr.msk.f32.mxu1 %vm293_vm0, %v666_v20  ;;  %3962 = vrsqrt.f32 %v399_v38  ;;  %v652_v60 = vmul.f32 %v620_v8, %v4740_v24 }
  0xf6   : > { %v3959_v36 = vpop.eup %3958  ;;  %v559_v7 = vmin.f32 %v3957_v28, 0.996  ;;  %v8088_v28 = vmax.f32 %v5018_v63, 1e-30  ;;  %v5117_v18 = vmul.f32 %v4926_v51, %v558_v59  ;;  %3811 = vmatmul.mubr.msk.f32.gmra.mrb[2].mxu0 %vm293_vm0, %v651_v9  ;;  %v636_v63 = vmul.f32 %v4975_v33, %v5067_v45 }
  0xf7   : > { %v5097_v25 = vpop.eup %3960  ;;  %v575_v5 = vmin.f32 %v3959_v36, 0.996  ;;  %v5128_v6 = vmul.f32 %v4926_v51, %v574_v55  ;;  %v621_v14 = vmul.f32 %v4986_v37, %v5091_v54  ;;  %v400_v44 = vmax.f32 %v5039_v34, 1e-30  ;;  %3813 = vmatprep.mubr.msk.f32.mxu0 %vm293_vm0, %v652_v60 }
  0xf8   : > { %v479_v26 = vmul.f32 %v5097_v25, %v8088_v28  ;;  %v5131_v27 = vmul.f32 %v4926_v51, %v559_v7  ;;  %3835 = vmatmul.mubr.msk.f32.gmra.mrb[2].mxu1 %vm293_vm0, %v667_v16  ;;  %v668_v24 = vmul.f32 %v636_v63, %v4737_v23  ;;  %v637_v33 = vmul.f32 %v4982_v48, %v5094_v4 }
  0xf9   : > { %v5137_v22 = vmul.f32 %v4926_v51, %v575_v5  ;;  %v416_v36 = vmax.f32 %v5028_v42, 1e-30  ;;  %v653_v15 = vmul.f32 %v621_v14, %v4752_v31  ;;  %v622_v37 = vmul.f32 %v4994_v29, %v5105_v50  ;;  %v5157_v42 = vpop.xlane.xlu0 %334 }
  0xfa   : > { %v512_v59 = vmul.f32 %v479_v26, %v4893_v62  ;;  %v417_v49 = vmax.f32 %v5046_v0, 1e-30  ;;  %3837 = vmatprep.mubr.msk.f32.mxu1 %vm293_vm0, %v668_v24  ;;  %v669_v20 = vmul.f32 %v637_v33, %v4749_v30  ;;  %v638_v23 = vmul.f32 %v4990_v56, %v5108_v43  ;;  %v5167_v56 = vpop.xlane.xlu1 %385 }
  0xfb   : > { %v623_v48 = vmul.f32 %v4998_v61, %v5117_v18  ;;  %v401_v3 = vmax.f32 %v5071_v35, 1e-30  ;;  %3814 = vmatmul.mubr.msk.f32.gmra.mrb[4].mxu0 %vm293_vm0, %v653_v15  ;;  %v654_v31 = vmul.f32 %v622_v37, %v4769_v40  ;;  %v639_v29 = vmul.f32 %v5002_v32, %v5128_v6 }
  0xfc   : > { %3964 = vtanh.f32 %v512_v59  ;;  %v624_v30 = vmul.f32 %v5006_v21, %v5131_v27  ;;  %3838 = vmatmul.mubr.msk.f32.gmra.mrb[4].mxu1 %vm293_vm0, %v669_v20  ;;  %v670_v61 = vmul.f32 %v638_v23, %v4766_v39  ;;  %v640_v40 = vmul.f32 %v5010_v2, %v5137_v22 }
  0xfd   : > { %3966 = vrsqrt.f32 %v400_v44  ;;  %v655_v35 = vmul.f32 %v623_v48, %v4781_v47  ;;  %v418_v10 = vmax.f32 %v5080_v11, 1e-30  ;;  %3816 = vmatprep.mubr.msk.f32.mxu0 %vm293_vm0, %v654_v31  ;;  %v671_v21 = vmul.f32 %v639_v29, %v4778_v46 }
  0xfe   : > { %v656_v32 = vmul.f32 %v624_v30, %v4793_v53  ;;  %3968 = vrsqrt.f32 %v416_v36  ;;  %v402_v55 = vmax.f32 %v5114_v57, 1e-30  ;;  %3840 = vmatprep.mubr.msk.f32.mxu1 %vm293_vm0, %v670_v61  ;;  %v672_v39 = vmul.f32 %v640_v40, %v4790_v52  ;;  %v338_v52 = vpop.xlane.xlu0 %337  ;;  %v389_v11 = vpop.xlane.xlu1 %388 }
  0xff   : > { %3970 = vrsqrt.f32 %v417_v49  ;;  %v419_v47 = vmax.f32 %v5122_v17, 1e-30  ;;  %3817 = vmatmul.mubr.msk.f32.gmra.mrb[6].mxu0 %vm293_vm0, %v655_v35  ;;  %v3963_v2 = vpop.eup %3962  ;;  %v403_v46 = vmax.f32 %v5157_v42, 1e-30  ;;  %v420_v9 = vmax.f32 %v5167_v56, 1e-30 }
 0x100   : > { %3972 = vrsqrt.f32 %v401_v3  ;;  %3841 = vmatmul.mubr.msk.f32.gmra.mrb[6].mxu1 %vm293_vm0, %v671_v21  ;;  %3819 = vmatprep.mubr.msk.f32.mxu0 %vm293_vm0, %v656_v32  ;;  %v463_v53 = vmul.f32 %v3963_v2, %v399_v38  ;;  %v404_v8 = vmax.f32 %v338_v52, 1e-30  ;;  %v421_v28 = vmax.f32 %v389_v11, 1e-30 }
 0x101   : > { %3974 = vrsqrt.f32 %v418_v10  ;;  %3843 = vmatprep.mubr.msk.f32.mxu1 %vm293_vm0, %v672_v39 }
 0x102   : > { %3976 = vrsqrt.f32 %v402_v55  ;;  %v496_v5 = vmul.f32 %v463_v53, %v4893_v62  ;;  %v8089_v53 = vld [vmem:[#allocation6_spill] sm:$0xff] }
 0x103   : > { %3978 = vrsqrt.f32 %v419_v47 }
 0x104   : > { %3980 = vrsqrt.f32 %v403_v46 }
 0x105   : > { %3982 = vtanh.f32 %v496_v5 }
 0x106   : > { %v3965_v7 = vpop.eup %3964  ;;  %3984 = vrsqrt.f32 %v420_v9 }
 0x107   : > { %v576_v16 = vmin.f32 %v3965_v7, 0.996  ;;  %v5193_v26 = vpop.eup %3966  ;;  %3986 = vrsqrt.f32 %v404_v8 }
 0x108   : > { %v5198_v38 = vpop.eup %3968  ;;  %v464_v17 = vmul.f32 %v5193_v26, %v400_v44  ;;  %3988 = vrsqrt.f32 %v421_v28 }
 0x109   : > { %v5196_v12 = vmul.f32 %v4926_v51, %v576_v16  ;;  %v5200_v57 = vpop.eup %3970  ;;  %v480_v14 = vmul.f32 %v5198_v38, %v416_v36 }
 0x10a   : > { %v5207_v63 = vpop.eup %3972  ;;  %v497_v34 = vmul.f32 %v464_v17, %v4893_v62  ;;  %v481_v44 = vmul.f32 %v5200_v57, %v417_v49 }
 0x10b   : > { %v641_v60 = vmul.f32 %v5097_v25, %v5196_v12  ;;  %v5209_v59 = vpop.eup %3974  ;;  %v465_v37 = vmul.f32 %v5207_v63, %v401_v3  ;;  %v513_v36 = vmul.f32 %v480_v14, %v4893_v62 }
 0x10c   : > { %v5213_v33 = vpop.eup %3976  ;;  %3990 = vtanh.f32 %v497_v34  ;;  %v514_v0 = vmul.f32 %v481_v44, %v4893_v62 }
 0x10d   : > { %v673_v24 = vmul.f32 %v641_v60, %v4802_v58  ;;  %v5215_v15 = vpop.eup %3978  ;;  %v482_v58 = vmul.f32 %v5209_v59, %v418_v10  ;;  %v466_v48 = vmul.f32 %v5213_v33, %v402_v55  ;;  %v498_v3 = vmul.f32 %v465_v37, %v4893_v62  ;;  %v341_v10 = vpop.xlane.xlu0 %340 }
 0x10e   : > { %v5222_v25 = vpop.eup %3980  ;;  %v483_v49 = vmul.f32 %v5215_v15, %v419_v47  ;;  %3992 = vtanh.f32 %v513_v36 }
 0x10f   : > { %3844 = vmatmul.mubr.msk.f32.gmra.mrb[8].mxu1 %vm293_vm0, %v673_v24  ;;  %v3983_v20 = vpop.eup %3982  ;;  %v467_v30 = vmul.f32 %v5222_v25, %v403_v46  ;;  %v515_v61 = vmul.f32 %v482_v58, %v4893_v62  ;;  %v499_v35 = vmul.f32 %v466_v48, %v4893_v62  ;;  %3994 = vtanh.f32 %v514_v0 }
 0x110   : > { %v560_v23 = vmin.f32 %v3983_v20, 0.996  ;;  %v5228_v42 = vpop.eup %3984  ;;  %v516_v21 = vmul.f32 %v483_v49, %v4893_v62  ;;  %3996 = vtanh.f32 %v498_v3  ;;  %v405_v46 = vmax.f32 %v341_v10, 1e-30 }
 0x111   : > { %v5232_v31 = vpop.eup %3986  ;;  %v484_v40 = vmul.f32 %v5228_v42, %v420_v9  ;;  %v500_v39 = vmul.f32 %v467_v30, %v4893_v62  ;;  %3998 = vtanh.f32 %v515_v61 }
 0x112   : > { %v5235_v29 = vmul.f32 %v4926_v51, %v560_v23  ;;  %v5239_v56 = vpop.eup %3988  ;;  %v468_v32 = vmul.f32 %v5232_v31, %v404_v8  ;;  %4000 = vtanh.f32 %v499_v35 }
 0x113   : > { %v485_v47 = vmul.f32 %v5239_v56, %v421_v28  ;;  %v517_v11 = vmul.f32 %v484_v40, %v4893_v62  ;;  %4002 = vtanh.f32 %v516_v21 }
 0x114   : > { %v625_v55 = vmul.f32 %v3963_v2, %v5235_v29  ;;  %v501_v7 = vmul.f32 %v468_v32, %v4893_v62  ;;  %4004 = vtanh.f32 %v500_v39 }
 0x115   : > { %v518_v2 = vmul.f32 %v485_v47, %v4893_v62  ;;  %4006 = vrsqrt.f32 %v405_v46  ;;  %v8090_v47 = vld [vmem:[#allocation8_spill] sm:$0xff] }
 0x116   : > { %v657_v52 = vmul.f32 %v625_v55, %v8089_v53  ;;  %v3991_v5 = vpop.eup %3990  ;;  %4008 = vtanh.f32 %v517_v11 }
 0x117   : > { %4010 = vtanh.f32 %v501_v7  ;;  %v561_v16 = vmin.f32 %v3991_v5, 0.996 }
 0x118   : > { %3820 = vmatmul.mubr.msk.f32.gmra.mrb[8].mxu0 %vm293_vm0, %v657_v52  ;;  %v3993_v9 = vpop.eup %3992  ;;  %4012 = vtanh.f32 %v518_v2 }
 0x119   : > { %v3995_v8 = vpop.eup %3994  ;;  %v577_v17 = vmin.f32 %v3993_v9, 0.996  ;;  %v5255_v24 = vmul.f32 %v4926_v51, %v561_v16 }
 0x11a   : > { %v3997_v28 = vpop.eup %3996  ;;  %v578_v23 = vmin.f32 %v3995_v8, 0.996 }
 0x11b   : > { %v3999_v60 = vpop.eup %3998  ;;  %v5258_v37 = vmul.f32 %v4926_v51, %v577_v17  ;;  %v562_v20 = vmin.f32 %v3997_v28, 0.996  ;;  %v626_v0 = vmul.f32 %v5193_v26, %v5255_v24  ;;  %v8092_v28 = vld [vmem:[#allocation10_spill] sm:$0xff] }
 0x11c   : > { %v4001_v14 = vpop.eup %4000  ;;  %v579_v61 = vmin.f32 %v3999_v60, 0.996  ;;  %v5268_v55 = vmul.f32 %v4926_v51, %v578_v23 }
 0x11d   : > { %v4003_v34 = vpop.eup %4002  ;;  %v563_v48 = vmin.f32 %v4001_v14, 0.996  ;;  %v5263_v30 = vmul.f32 %v4926_v51, %v562_v20  ;;  %v642_v40 = vmul.f32 %v5198_v38, %v5258_v37  ;;  %v658_v53 = vmul.f32 %v626_v0, %v8090_v47  ;;  %v8091_v38 = vld [vmem:[#allocation7_spill] sm:$0xff]  ;;  %v8094_v20 = vld [vmem:[#allocation12_spill] sm:$0xff] }
 0x11e   : > { %v4005_v44 = vpop.eup %4004  ;;  %v580_v10 = vmin.f32 %v4003_v34, 0.996  ;;  %v5275_v11 = vmul.f32 %v4926_v51, %v579_v61  ;;  %v643_v60 = vmul.f32 %v5200_v57, %v5268_v55  ;;  %v8093_v34 = vld [vmem:[#allocation9_spill] sm:$0xff]  ;;  %v8096_v61 = vld [vmem:[#allocation14_spill] sm:$0xff] }
 0x11f   : > { %v4007_v36 = vpop.eup %4006  ;;  %v564_v21 = vmin.f32 %v4005_v44, 0.996  ;;  %v5271_v39 = vmul.f32 %v4926_v51, %v563_v48  ;;  %3822 = vmatprep.mubr.msk.f32.mxu0 %vm293_vm0, %v658_v53  ;;  %v674_v7 = vmul.f32 %v642_v40, %v8091_v38  ;;  %v627_v2 = vmul.f32 %v5207_v63, %v5263_v30  ;;  %v1964_v38 = vld [vmem:[%s7943_s3] sm:$0x1] }
 0x120   : > { %v4009_v58 = vpop.eup %4008  ;;  %v469_v35 = vmul.f32 %v4007_v36, %v405_v46  ;;  %v5283_v5 = vmul.f32 %v4926_v51, %v580_v10  ;;  %v675_v44 = vmul.f32 %v643_v60, %v8093_v34  ;;  %v644_v23 = vmul.f32 %v5209_v59, %v5275_v11 }
 0x121   : > { %v4011_v49 = vpop.eup %4010  ;;  %v581_v32 = vmin.f32 %v4009_v58, 0.996  ;;  %v5286_v9 = vmul.f32 %v4926_v51, %v564_v21  ;;  %3846 = vmatprep.mubr.msk.f32.mxu1 %vm293_vm0, %v674_v7  ;;  %v659_v17 = vmul.f32 %v627_v2, %v8092_v28  ;;  %v628_v63 = vmul.f32 %v5213_v33, %v5271_v39  ;;  %v8095_v33 = vld [vmem:[#allocation11_spill] sm:$0xff] }
 0x122   : > { %v4013_v3 = vpop.eup %4012  ;;  %v565_v26 = vmin.f32 %v4011_v49, 0.996  ;;  %v502_v46 = vmul.f32 %v469_v35, %v4893_v62  ;;  %v645_v57 = vmul.f32 %v5215_v15, %v5283_v5  ;;  %3847 = vmatmul.mubr.msk.f32.gmra.mrb[10].mxu1 %vm293_vm0, %v675_v44  ;;  %v676_v0 = vmul.f32 %v644_v23, %v8095_v33  ;;  %v8097_v35 = vld [vmem:[#allocation13_spill] sm:$0xff]  ;;  %v8098_v15 = vld [vmem:[#allocation16_spill] sm:$0xff]  ;;  %v8099_v21 = vld [vmem:[#allocation15_spill] sm:$0xff] }
 0x123   : > { %v582_v52 = vmin.f32 %v4013_v3, 0.996  ;;  %v5289_v16 = vmul.f32 %v4926_v51, %v581_v32  ;;  %3823 = vmatmul.mubr.msk.f32.gmra.mrb[10].mxu0 %vm293_vm0, %v659_v17  ;;  %v660_v58 = vmul.f32 %v628_v63, %v8094_v20  ;;  %v629_v48 = vmul.f32 %v5222_v25, %v5286_v9 }
 0x124   : > { %v5292_v8 = vmul.f32 %v4926_v51, %v565_v26  ;;  %4014 = vtanh.f32 %v502_v46  ;;  %v677_v40 = vmul.f32 %v645_v57, %v8097_v35  ;;  %3849 = vmatprep.mubr.msk.f32.mxu1 %vm293_vm0, %v676_v0  ;;  %v2093_v7 = vmul.f32 %v1964_v38, %v1964_v38 }
 0x125   : > { %v5301_v14 = vmul.f32 %v4926_v51, %v582_v52  ;;  %3825 = vmatprep.mubr.msk.f32.mxu0 %vm293_vm0, %v660_v58  ;;  %v646_v3 = vmul.f32 %v5228_v42, %v5289_v16  ;;  %v661_v59 = vmul.f32 %v629_v48, %v8096_v61  ;;  %v8100_v42 = vld [vmem:[#allocation17_spill] sm:$0xff]  ;;  %v8101_v52 = vld [vmem:[#allocation18_spill] sm:$0xff] }
 0x126   : > { %v630_v49 = vmul.f32 %v5232_v31, %v5292_v8  ;;  %3850 = vmatmul.mubr.msk.f32.gmra.mrb[12].mxu1 %vm293_vm0, %v677_v40  ;;  %v2095_v2 = vsel %vm2094_vm3, %v2093_v7, 0.0 }
 0x127   : > { %v647_v25 = vmul.f32 %v5239_v56, %v5301_v14  ;;  %v678_v32 = vmul.f32 %v646_v3, %v8099_v21  ;;  %3826 = vmatmul.mubr.msk.f32.gmra.mrb[12].mxu0 %vm293_vm0, %v661_v59  ;;  %2096 = vadd.xlane.f32.xlu0 %v2095_v2 }
 0x128   : > { %v662_v10 = vmul.f32 %v630_v49, %v8098_v15 }
 0x129   : > { %v679_v31 = vmul.f32 %v647_v25, %v8100_v42  ;;  %3852 = vmatprep.mubr.msk.f32.mxu1 %vm293_vm0, %v678_v32 }
 0x12a   : > { %3828 = vmatprep.mubr.msk.f32.mxu0 %vm293_vm0, %v662_v10 }
 0x12b   : > { %3853 = vmatmul.mubr.msk.f32.gmra.mrb[14].mxu1 %vm293_vm0, %v679_v31 }
 0x12e   : > { %v4015_v26 = vpop.eup %4014 }
 0x12f   : > { %v566_v56 = vmin.f32 %v4015_v26, 0.996 }
 0x131   : > { %v5333_v47 = vmul.f32 %v4926_v51, %v566_v56  ;;  %v706_v51 = vmax.f32 %v5258_v37, 1e-15 }
 0x133   : > { %v631_v53 = vmul.f32 %v4007_v36, %v5333_v47 }
 0x135   : > { %v663_v46 = vmul.f32 %v631_v53, %v8101_v52 }
 0x137   : > { %3829 = vmatmul.mubr.msk.f32.gmra.mrb[14].mxu0 %vm293_vm0, %v663_v46 }
 0x1c2   : > { %v5341_v28 = vpop.f32.mrb[0].mxu0 }
 0x1c3   : > { %8102 = vst [vmem:[#allocation6_spill] sm:$0xff] %v5341_v28  ;;  %v1036_v17 = vmul.f32 %v5341_v28, %v5341_v28  ;;  %v5345_v60 = vpop.f32.mrb[1].mxu0  ;;  %v8157_v28 = vmax.f32 %v5094_v4, 1e-15 }
 0x1c4   : > { %8103 = vst [vmem:[#allocation8_spill] sm:$0xff] %v5345_v60  ;;  %v1035_v36 = vmul.f32 %v5345_v60, %v5345_v60 }
 0x1c5   : > { %v1071_v63 = vsel %vm1067_vm4, %v1036_v17, 0.0 }
 0x1c6   : > { %1072 = vadd.xlane.f32.xlu1 %v1071_v63  ;;  %v1068_v34 = vsel %vm1067_vm4, %v1035_v36, 0.0 }
 0x1c7   : > { %1069 = vadd.xlane.f32.xlu0 %v1068_v34  ;;  %v5351_v44 = vpop.f32.mrb[0].mxu1 }
 0x1c8   : > { %8104 = vst [vmem:[#allocation7_spill] sm:$0xff] %v5351_v44  ;;  %v1052_v20 = vmul.f32 %v5351_v44, %v5351_v44  ;;  %v5355_v58 = vpop.f32.mrb[1].mxu1 }
 0x1c9   : > { %8105 = vst [vmem:[#allocation10_spill] sm:$0xff] %v5355_v58  ;;  %v1051_v23 = vmul.f32 %v5355_v58, %v5355_v58  ;;  %v5359_v48 = vpop.f32.mrb[2].mxu0 }
 0x1ca   : > { %8106 = vst [vmem:[#allocation9_spill] sm:$0xff] %v5359_v48  ;;  %v1119_v57 = vsel %vm1067_vm4, %v1052_v20, 0.0  ;;  %v1038_v33 = vmul.f32 %v5359_v48, %v5359_v48  ;;  %v5364_v0 = vpop.f32.mrb[3].mxu0 }
 0x1cb   : > { %8107 = vst [vmem:[#allocation12_spill] sm:$0xff] %v5364_v0  ;;  %1120 = vadd.xlane.f32.xlu1 %v1119_v57  ;;  %v1116_v49 = vsel %vm1067_vm4, %v1051_v23, 0.0  ;;  %v5367_v3 = vpop.f32.mrb[2].mxu1  ;;  %v1037_v61 = vmul.f32 %v5364_v0, %v5364_v0 }
 0x1cc   : > { %8108 = vst [vmem:[#allocation11_spill] sm:$0xff] %v5367_v3  ;;  %1117 = vadd.xlane.f32.xlu0 %v1116_v49  ;;  %v5371_v59 = vpop.f32.mrb[3].mxu1  ;;  %v1077_v35 = vsel %vm1067_vm4, %v1038_v33, 0.0  ;;  %v1054_v25 = vmul.f32 %v5367_v3, %v5367_v3 }
 0x1cd   : > { %8109 = vst [vmem:[#allocation14_spill] sm:$0xff] %v5371_v59  ;;  %v1074_v40 = vsel %vm1067_vm4, %v1037_v61, 0.0  ;;  %v1053_v10 = vmul.f32 %v5371_v59, %v5371_v59 }
 0x1ce   : > { %v5377_v15 = vpop.f32.mrb[4].mxu0  ;;  %v1125_v56 = vsel %vm1067_vm4, %v1054_v25, 0.0 }
 0x1cf   : > { %8110 = vst [vmem:[#allocation13_spill] sm:$0xff] %v5377_v15  ;;  %1078 = vadd.xlane.f32.xlu1 %v1077_v35  ;;  %v5381_v21 = vpop.f32.mrb[4].mxu1  ;;  %v5383_v32 = vpop.f32.mrb[5].mxu0  ;;  %v1040_v42 = vmul.f32 %v5377_v15, %v5377_v15  ;;  %v1122_v52 = vsel %vm1067_vm4, %v1053_v10, 0.0 }
 0x1d0   : > { %8111 = vst [vmem:[#allocation16_spill] sm:$0xff] %v5381_v21  ;;  %8112 = vst [vmem:[#allocation15_spill] sm:$0xff] %v5383_v32  ;;  %1075 = vadd.xlane.f32.xlu0 %v1074_v40  ;;  %v5387_v31 = vpop.f32.mrb[5].mxu1  ;;  %v1039_v26 = vmul.f32 %v5383_v32, %v5383_v32  ;;  %v1056_v36 = vmul.f32 %v5381_v21, %v5381_v21  ;;  %v8139_v21 = vmax.f32 %v5108_v43, 1e-15 }
 0x1d1   : > { %8113 = vst [vmem:[#allocation17_spill] sm:$0xff] %v5387_v31  ;;  %v1083_v7 = vsel %vm1067_vm4, %v1040_v42, 0.0  ;;  %v1055_v63 = vmul.f32 %v5387_v31, %v5387_v31 }
 0x1d2   : > { %v5392_v53 = vpop.f32.mrb[6].mxu0  ;;  %v1080_v17 = vsel %vm1067_vm4, %v1039_v26, 0.0  ;;  %v1131_v23 = vsel %vm1067_vm4, %v1056_v36, 0.0 }
 0x1d3   : > { %8114 = vst [vmem:[#allocation18_spill] sm:$0xff] %v5392_v53  ;;  %1126 = vadd.xlane.f32.xlu1 %v1125_v56  ;;  %v5395_v46 = vpop.f32.mrb[6].mxu1  ;;  %v5397_v38 = vpop.f32.mrb[7].mxu0  ;;  %v1042_v34 = vmul.f32 %v5392_v53, %v5392_v53  ;;  %v1128_v57 = vsel %vm1067_vm4, %v1055_v63, 0.0 }
 0x1d4   : > { %8115 = vst [vmem:[#allocation26_spill] sm:$0xff] %v5395_v46  ;;  %8116 = vst [vmem:[#allocation27_spill] sm:$0xff] %v5397_v38  ;;  %1123 = vadd.xlane.f32.xlu0 %v1122_v52  ;;  %v5400_v2 = vpop.f32.mrb[7].mxu1  ;;  %v1041_v20 = vmul.f32 %v5397_v38, %v5397_v38  ;;  %v1058_v61 = vmul.f32 %v5395_v46, %v5395_v46  ;;  %v703_v38 = vmax.f32 %v5128_v6, 1e-15 }
 0x1d5   : > { %8117 = vst [vmem:[#allocation28_spill] sm:$0xff] %v5400_v2  ;;  %v1089_v33 = vsel %vm1067_vm4, %v1042_v34, 0.0  ;;  %v1057_v35 = vmul.f32 %v5400_v2, %v5400_v2 }
 0x1d6   : > { %v1086_v49 = vsel %vm1067_vm4, %v1041_v20, 0.0  ;;  %v1137_v10 = vsel %vm1067_vm4, %v1058_v61, 0.0 }
 0x1d7   : > { %1084 = vadd.xlane.f32.xlu1 %v1083_v7  ;;  %v1134_v42 = vsel %vm1067_vm4, %v1057_v35, 0.0  ;;  %v683_v35 = vmax.f32 %v5059_v41, 1e-15 }
 0x1d8   : > { %1081 = vadd.xlane.f32.xlu0 %v1080_v17 }
 0x1db   : > { %1132 = vadd.xlane.f32.xlu1 %v1131_v23  ;;  %v8122_v23 = vld [vmem:[#allocation22_spill] sm:$0xff] }
 0x1dc   : > { %1129 = vadd.xlane.f32.xlu0 %v1128_v57  ;;  %v681_v57 = vmax.f32 %v8122_v23, 1e-15  ;;  %v7969_v23 = vmax.f32 %v5067_v45, 1e-15 }
 0x1de   : > { %4016 = vrcp.f32 %v681_v57 }
 0x1df   : > { %1090 = vadd.xlane.f32.xlu1 %v1089_v33 }
 0x1e0   : > { %1087 = vadd.xlane.f32.xlu0 %v1086_v49  ;;  %v8123_v49 = vld [vmem:[#allocation24_spill] sm:$0xff] }
 0x1e1   : > { %v682_v61 = vmax.f32 %v8123_v49, 1e-15  ;;  %v8125_v49 = vld [vmem:[#allocation21_spill] sm:$0xff] }
 0x1e2   : > { %v5419_v40 = vpop.f32.mrb[8].mxu1 }
 0x1e3   : > { %8118 = vst [vmem:[#allocation29_spill] sm:$0xff] %v5419_v40  ;;  %v5421_v25 = vpop.f32.mrb[9].mxu1  ;;  %1138 = vadd.xlane.f32.xlu1 %v1137_v10  ;;  %v1060_v17 = vmul.f32 %v5419_v40, %v5419_v40  ;;  %v8124_v10 = vld [vmem:[#allocation23_spill] sm:$0xff] }
 0x1e4   : > { %8119 = vst [vmem:[#allocation30_spill] sm:$0xff] %v5421_v25  ;;  %1135 = vadd.xlane.f32.xlu0 %v1134_v42  ;;  %v1059_v63 = vmul.f32 %v5421_v25, %v5421_v25  ;;  %v697_v42 = vmax.f32 %v8124_v10, 1e-15 }
 0x1e5   : > { %v1143_v20 = vsel %vm1067_vm4, %v1060_v17, 0.0  ;;  %v684_v17 = vmax.f32 %v5074_v13, 1e-15 }
 0x1e6   : > { %v1140_v33 = vsel %vm1067_vm4, %v1059_v63, 0.0  ;;  %v699_v63 = vmax.f32 %v5062_v1, 1e-15  ;;  %4018 = vrcp.f32 %v697_v42  ;;  %v5466_v13 = vmul.f32 %v697_v42, %v4893_v62 }
 0x1e7   : > { %4020 = vrcp.f32 %v682_v61  ;;  %v5463_v1 = vmul.f32 %v684_v17, %v4893_v62  ;;  %v686_v42 = vmax.f32 %v5105_v50, 1e-15 }
 0x1eb   : > { %v5425_v26 = vpop.f32.mrb[8].mxu0 }
 0x1ec   : > { %8120 = vst [vmem:[#allocation31_spill] sm:$0xff] %v5425_v26  ;;  %v1044_v56 = vmul.f32 %v5425_v26, %v5425_v26  ;;  %v5429_v52 = vpop.f32.mrb[9].mxu0 }
 0x1ed   : > { %8121 = vst [vmem:[#allocation32_spill] sm:$0xff] %v5429_v52  ;;  %v1043_v7 = vmul.f32 %v5429_v52, %v5429_v52 }
 0x1ee   : > { %v1095_v36 = vsel %vm1067_vm4, %v1044_v56, 0.0  ;;  %v5446_v56 = vmul.f32 %v681_v57, %v4893_v62  ;;  %v7974_v57 = vmax.f32 %v5094_v4, 1e-15  ;;  %v5624_v4 = vmul.f32 %v703_v38, %v4893_v62 }
 0x1ef   : > { %1096 = vadd.xlane.f32.xlu1 %v1095_v36  ;;  %v1092_v34 = vsel %vm1067_vm4, %v1043_v7, 0.0  ;;  %v698_v7 = vmax.f32 %v5050_v19, 1e-15  ;;  %v5450_v36 = vmul.f32 %v682_v61, %v4893_v62 }
 0x1f0   : > { %1093 = vadd.xlane.f32.xlu0 %v1092_v34  ;;  %v5455_v34 = vmul.f32 %v683_v35, %v4893_v62  ;;  %v7968_v41 = vclamps-f32 %v5446_v56, 0.9999999 }
 0x1f1   : > { %4022 = vrcp.f32 %v698_v7  ;;  %v7973_v19 = vclamps-f32 %v5450_v36, 0.9999999 }
 0x1f2   : > { %4024 = vrcp.f32 %v683_v35  ;;  %v8127_v25 = vclamps-f32 %v5455_v34, 0.9999999 }
 0x1f3   : > { %1144 = vadd.xlane.f32.xlu1 %v1143_v20  ;;  %v685_v20 = vmax.f32 %v5091_v54, 1e-15  ;;  %4026 = vrcp.f32 %v699_v63  ;;  %v1453_v54 = vsub.f32 1.0, %v7968_v41  ;;  %v1454_v10 = vsub.f32 1.0, %v7973_v19  ;;  %v8126_v41 = vld [vmem:[#allocation25_spill] sm:$0xff]  ;;  %v5492_v19 = vpop.eup %4016 }
 0x1f4   : > { %1141 = vadd.xlane.f32.xlu0 %v1140_v33  ;;  %4028 = vrcp.f32 %v684_v17  ;;  %v5483_v17 = vmul.f32 %v698_v7, %v4893_v62  ;;  %v1455_v40 = vsub.f32 1.0, %v8127_v25  ;;  %8129 = vst [vmem:[#allocation24_spill] sm:$0xff] %v5492_v19  ;;  %v8130_v7 = vmax.f32 %v8125_v49, 1e-15 }
 0x1f5   : > { %4030 = vrcp.f32 %v7969_v23  ;;  %v5475_v35 = vmul.f32 %v685_v20, %v4893_v62  ;;  %v5504_v23 = vpop.eup %4018  ;;  %v687_v25 = vmax.f32 %v5117_v18, 1e-15  ;;  %v5508_v26 = vpop.f32.mrb[10].mxu1 }
 0x1f6   : > { %4032 = vrcp.f32 %v7974_v57  ;;  %v5490_v52 = vpop.f32.mrb[10].mxu0  ;;  %v5498_v57 = vmul.f32 %v8130_v7, %v4893_v62  ;;  %8132 = vst [vmem:[#allocation21_spill] sm:$0xff] %v5504_v23  ;;  %8133 = vst [vmem:[#allocation25_spill] sm:$0xff] %v5508_v26  ;;  %v5512_v50 = vpop.eup %4020  ;;  %v5515_v7 = vmul.f32 %v686_v42, %v4893_v62  ;;  %v1062_v18 = vmul.f32 %v5508_v26, %v5508_v26 }
 0x1f7   : > { %4034 = vrcp.f32 %v685_v20  ;;  %8128 = vst [vmem:[#allocation22_spill] sm:$0xff] %v5490_v52  ;;  %v1046_v20 = vmul.f32 %v5490_v52, %v5490_v52  ;;  %v5502_v61 = vpop.f32.mrb[11].mxu0  ;;  %8134 = vst [vmem:[#allocation33_spill] sm:$0xff] %v5512_v50  ;;  %v8135_v52 = vmax.f32 %v8126_v41, 1e-15  ;;  %v5524_v33 = vpop.f32.mrb[11].mxu1 }
 0x1f8   : > { %4036 = vrcp.f32 %v1453_v54  ;;  %8131 = vst [vmem:[#allocation23_spill] sm:$0xff] %v5502_v61  ;;  %v1045_v54 = vmul.f32 %v5502_v61, %v5502_v61  ;;  %8136 = vst [vmem:[#allocation34_spill] sm:$0xff] %v5524_v33  ;;  %v704_v61 = vmax.f32 %v5137_v22, 1e-15  ;;  %v1061_v53 = vmul.f32 %v5524_v33, %v5524_v33 }
 0x1f9   : > { %4038 = vrcp.f32 %v1454_v10  ;;  %v5520_v2 = vmul.f32 %v8135_v52, %v4893_v62  ;;  %v1101_v10 = vsel %vm1067_vm4, %v1046_v20, 0.0  ;;  %v5540_v20 = vmul.f32 %v699_v63, %v4893_v62  ;;  %v5552_v33 = vpop.f32.mrb[12].mxu1 }
 0x1fa   : > { %1102 = vadd.xlane.f32.xlu1 %v1101_v10  ;;  %v1098_v52 = vsel %vm1067_vm4, %v1045_v54, 0.0  ;;  %4040 = vrcp.f32 %v8139_v21  ;;  %v5543_v6 = vpop.f32.mrb[12].mxu0  ;;  %v5548_v54 = vmul.f32 %v687_v25, %v4893_v62  ;;  %v8142_v10 = vclamps-f32 %v5463_v1, 0.9999999  ;;  %8143 = vst [vmem:[#allocation39_spill] sm:$0xff] %v5552_v33  ;;  %v5564_v3 = vpop.f32.mrb[13].mxu1 }
 0x1fb   : > { %v5527_v46 = vpop.eup %4022  ;;  %1099 = vadd.xlane.f32.xlu0 %v1098_v52  ;;  %8140 = vst [vmem:[#allocation37_spill] sm:$0xff] %v5543_v6  ;;  %4042 = vrcp.f32 %v686_v42  ;;  %v1048_v21 = vmul.f32 %v5543_v6, %v5543_v6  ;;  %v5556_v63 = vpop.f32.mrb[13].mxu0  ;;  %v8146_v52 = vclamps-f32 %v5475_v35, 0.9999999  ;;  %v1149_v59 = vsel %vm1067_vm4, %v1062_v18, 0.0  ;;  %8147 = vst [vmem:[#allocation42_spill] sm:$0xff] %v5564_v3 }
 0x1fc   : > { %8137 = vst [vmem:[#allocation35_spill] sm:$0xff] %v5527_v46  ;;  %v5534_v31 = vpop.eup %4024  ;;  %v1456_v26 = vsub.f32 1.0, %v8142_v10  ;;  %8144 = vst [vmem:[#allocation40_spill] sm:$0xff] %v5556_v63  ;;  %v1047_v10 = vmul.f32 %v5556_v63, %v5556_v63  ;;  %v5571_v6 = vmul.f32 %v704_v61, %v4893_v62  ;;  %4044 = vrcp.f32 %v1455_v40 }
 0x1fd   : > { %8138 = vst [vmem:[#allocation36_spill] sm:$0xff] %v5534_v31  ;;  %v5545_v32 = vpop.eup %4026  ;;  %v1457_v15 = vsub.f32 1.0, %v8146_v52  ;;  %v1146_v52 = vsel %vm1067_vm4, %v1061_v53, 0.0  ;;  %v8150_v18 = vmax.f32 %v5131_v27, 1e-15  ;;  %4046 = vrcp.f32 %v703_v38 }
 0x1fe   : > { %8141 = vst [vmem:[#allocation38_spill] sm:$0xff] %v5545_v32  ;;  %v5558_v22 = vpop.eup %4028  ;;  %1150 = vadd.xlane.f32.xlu1 %v1149_v59  ;;  %v8151_v63 = vclamps-f32 %v5498_v57, 0.9999999  ;;  %4048 = vrcp.f32 %v687_v25  ;;  %v1104_v40 = vsel %vm1067_vm4, %v1047_v10, 0.0  ;;  %v5590_v48 = vpop.f32.mrb[14].mxu1  ;;  %v1064_v25 = vmul.f32 %v5552_v33, %v5552_v33 }
 0x1ff   : > { %8145 = vst [vmem:[#allocation41_spill] sm:$0xff] %v5558_v22  ;;  %v5568_v0 = vpop.eup %4030  ;;  %v5580_v42 = vmul.f32 %v8150_v18, %v4893_v62  ;;  %1147 = vadd.xlane.f32.xlu0 %v1146_v52  ;;  %8153 = vst [vmem:[#allocation46_spill] sm:$0xff] %v5590_v48  ;;  %4050 = vrcp.f32 %v1456_v26  ;;  %v5603_v59 = vpop.f32.mrb[15].mxu1  ;;  %v5611_v22 = vmul.f32 %v8157_v28, %v4893_v62  ;;  %v8158_v26 = vmax.f32 %v5108_v43, 1e-15 }
 0x200   : > { %8148 = vst [vmem:[#allocation43_spill] sm:$0xff] %v5568_v0  ;;  %v5575_v58 = vpop.eup %4032  ;;  %v1452_v44 = vsub.f32 1.0, %v8151_v63  ;;  %v1107_v0 = vsel %vm1067_vm4, %v1048_v21, 0.0  ;;  %v8155_v21 = vclamps-f32 %v5520_v2, 0.9999999  ;;  %8156 = vst [vmem:[#allocation47_spill] sm:$0xff] %v5603_v59  ;;  %4052 = vrcp.f32 %v1457_v15 }
 0x201   : > { %8149 = vst [vmem:[#allocation44_spill] sm:$0xff] %v5575_v58  ;;  %v5585_v60 = vpop.eup %4034  ;;  %v8154_v58 = vmax.f32 %v5067_v45, 1e-15  ;;  %v1063_v45 = vmul.f32 %v5564_v3, %v5564_v3  ;;  %v8159_v33 = vclamps-f32 %v5515_v7, 0.9999999 }
 0x202   : > { %8152 = vst [vmem:[#allocation45_spill] sm:$0xff] %v5585_v60  ;;  %v5592_v18 = vpop.eup %4036  ;;  %v1468_v52 = vsub.f32 1.0, %v8155_v21  ;;  %1108 = vadd.xlane.f32.xlu1 %v1107_v0  ;;  %v5619_v21 = vmul.f32 %v8158_v26, %v4893_v62  ;;  %4054 = vrcp.f32 %v1452_v44  ;;  %v8160_v0 = vclamps-f32 %v5548_v54, 0.9999999 }
 0x203   : > { %v5597_v63 = vmul.f32 %v8154_v58, %v4893_v62  ;;  %v5605_v53 = vpop.eup %4038  ;;  %v1458_v10 = vsub.f32 1.0, %v8159_v33  ;;  %1105 = vadd.xlane.f32.xlu0 %v1104_v40  ;;  %4056 = vrcp.f32 %v704_v61  ;;  %v8162_v26 = vclamps-f32 %v5466_v13, 0.9999999 }
 0x204   : > { %v1459_v15 = vsub.f32 1.0, %v8160_v0  ;;  %v5629_v58 = vpop.eup %4040  ;;  %4058 = vrcp.f32 %v1468_v52  ;;  %v1155_v44 = vsel %vm1067_vm4, %v1064_v25, 0.0  ;;  %v8164_v38 = vclamps-f32 %v5571_v6, 0.9999999 }
 0x205   : > { %8161 = vst [vmem:[#allocation48_spill] sm:$0xff] %v5629_v58  ;;  %v1469_v3 = vsub.f32 1.0, %v8162_v26  ;;  %v5635_v33 = vpop.eup %4042  ;;  %v8165_v40 = vmax.f32 %v5131_v27, 1e-15  ;;  %v1152_v28 = vsel %vm1067_vm4, %v1063_v45, 0.0 }
 0x206   : > { %8163 = vst [vmem:[#allocation49_spill] sm:$0xff] %v5635_v33  ;;  %v1476_v61 = vsub.f32 1.0, %v8164_v38  ;;  %1156 = vadd.xlane.f32.xlu1 %v1155_v44  ;;  %v8166_v43 = vclamps-f32 %v5580_v42, 0.9999999  ;;  %v5647_v26 = vpop.eup %4044  ;;  %v8167_v27 = vclamps-f32 %v5483_v17, 0.9999999 }
 0x207   : > { %4060 = vrcp.f32 %v8165_v40  ;;  %1153 = vadd.xlane.f32.xlu0 %v1152_v28  ;;  %v5652_v44 = vpop.eup %4046  ;;  %v8169_v45 = vclamps-f32 %v5540_v20, 0.9999999  ;;  %v8173_v28 = vclamps-f32 %v5611_v22, 0.9999999  ;;  %v8176_v33 = vmax.f32 %v5196_v12, 1e-15 }
 0x208   : > { %v1460_v58 = vsub.f32 1.0, %v8166_v43  ;;  %4062 = vrcp.f32 %v1458_v10  ;;  %v1470_v40 = vsub.f32 1.0, %v8167_v27  ;;  %8168 = vst [vmem:[#allocation50_spill] sm:$0xff] %v5652_v44  ;;  %v8170_v43 = vclamps-f32 %v5597_v63, 0.9999999  ;;  %v5660_v10 = vpop.eup %4048 }
 0x209   : > { %4064 = vrcp.f32 %v1459_v15  ;;  %v1471_v0 = vsub.f32 1.0, %v8169_v45  ;;  %8172 = vst [vmem:[#allocation52_spill] sm:$0xff] %v5660_v10  ;;  %v1473_v38 = vsub.f32 1.0, %v8173_v28  ;;  %v5669_v45 = vpop.eup %4050 }
 0x20a   : > { %v1472_v52 = vsub.f32 1.0, %v8170_v43  ;;  %4066 = vrcp.f32 %v1469_v3  ;;  %v5658_v25 = vpop.f32.mrb[14].mxu0  ;;  %v8175_v3 = vclamps-f32 %v5619_v21, 0.9999999  ;;  %v5680_v27 = vpop.eup %4052 }
 0x20b   : > { %8171 = vst [vmem:[#allocation51_spill] sm:$0xff] %v5658_v25  ;;  %4068 = vrcp.f32 %v1476_v61  ;;  %v1050_v15 = vmul.f32 %v5658_v25, %v5658_v25  ;;  %v5667_v44 = vpop.f32.mrb[15].mxu0  ;;  %v5676_v61 = vmul.f32 %v8176_v33, %v4893_v62  ;;  %v8177_v25 = vclamps-f32 %v5624_v4, 0.9999999 }
 0x20c   : > { %8174 = vst [vmem:[#allocation53_spill] sm:$0xff] %v5667_v44  ;;  %4070 = vrcp.f32 %v1460_v58  ;;  %v1474_v43 = vsub.f32 1.0, %v8175_v3  ;;  %v1049_v28 = vmul.f32 %v5667_v44, %v5667_v44  ;;  %v1066_v58 = vmul.f32 %v5590_v48, %v5590_v48  ;;  %v4055_v3 = vpop.eup %4054 }
 0x20d   : > { %v1475_v10 = vsub.f32 1.0, %v8177_v25  ;;  %4072 = vrcp.f32 %v1470_v40  ;;  %v1113_v60 = vsel %vm1067_vm4, %v1050_v15, 0.0  ;;  %v1065_v33 = vmul.f32 %v5603_v59, %v5603_v59  ;;  %v5691_v46 = vpop.eup %4056 }
 0x20e   : > { %4074 = vrcp.f32 %v1471_v0  ;;  %1114 = vadd.xlane.f32.xlu1 %v1113_v60  ;;  %v1110_v44 = vsel %vm1067_vm4, %v1049_v28, 0.0  ;;  %8178 = vst [vmem:[#allocation54_spill] sm:$0xff] %v5691_v46  ;;  %v8179_v25 = vmax.f32 %v5235_v29, 1e-15  ;;  %v8180_v15 = vclamps-f32 %v5498_v57, 0.9999999  ;;  %v4059_v0 = vpop.eup %4058 }
 0x20f   : > { %4076 = vrcp.f32 %v1472_v52  ;;  %1111 = vadd.xlane.f32.xlu0 %v1110_v44  ;;  %v8006_v37 = vclamps-f32 %v5676_v61, 0.9999999  ;;  %v690_v60 = vmax.f32 %v5255_v24, 1e-15  ;;  %v8182_v52 = vclamps-f32 %v5520_v2, 0.9999999 }
 0x210   : > { %v5696_v40 = vmul.f32 %v8179_v25, %v4893_v62  ;;  %v1420_v48 = vadd.f32 1.0, %v8180_v15  ;;  %4078 = vrcp.f32 %v1473_v38  ;;  %v1161_v25 = vsel %vm1067_vm4, %v1066_v58, 0.0 }
 0x211   : > { %v5702_v59 = vpop.eup %4060  ;;  %4080 = vrcp.f32 %v1474_v43  ;;  %v1436_v46 = vadd.f32 1.0, %v8182_v52  ;;  %v5710_v57 = vmul.f32 %v706_v51, %v4893_v62  ;;  %v1158_v38 = vsel %vm1067_vm4, %v1065_v33, 0.0 }
 0x212   : > { %8181 = vst [vmem:[#allocation55_spill] sm:$0xff] %v5702_v59  ;;  %v1485_v28 = vmul.f32 %v4055_v3, %v1420_v48  ;;  %v5707_v32 = vpop.eup %4062  ;;  %4082 = vrcp.f32 %v1475_v10  ;;  %1162 = vadd.xlane.f32.xlu1 %v1161_v25  ;;  %v8007_v24 = vclamps-f32 %v5696_v40, 0.9999999  ;;  %v8184_v48 = vmax.f32 %v8125_v49, 1e-15 }
 0x213   : > { %8183 = vst [vmem:[#allocation56_spill] sm:$0xff] %v5710_v57  ;;  %v5713_v44 = vpop.eup %4064  ;;  %v1517_v2 = vmul.f32 %v4059_v0, %v1436_v46  ;;  %1159 = vadd.xlane.f32.xlu0 %v1158_v38  ;;  %v1477_v10 = vsub.f32 1.0, %v8006_v37  ;;  %v5723_v58 = vmul.f32 %v690_v60, %v4893_v62  ;;  %v8185_v3 = vmax.f32 %v8126_v41, 1e-15 }
 0x214   : > { %4084 = vrcp.f32 %v8184_v48  ;;  %v5718_v43 = vpop.eup %4066  ;;  %v707_v33 = vmax.f32 %v5268_v55, 1e-15  ;;  %v691_v49 = vmax.f32 %v5263_v30, 1e-15  ;;  %v8186_v0 = vmax.f32 %v5196_v12, 1e-15 }
 0x215   : > { %4086 = vrcp.f32 %v8185_v3  ;;  %v5728_v15 = vpop.eup %4068  ;;  %v8008_v52 = vclamps-f32 %v5710_v57, 0.9999999  ;;  %v708_v25 = vmax.f32 %v5275_v11, 1e-15  ;;  %v1461_v41 = vsub.f32 1.0, %v8007_v24 }
 0x216   : > { %4088 = vlog2.f32 %v1485_v28  ;;  %v5731_v46 = vpop.eup %4070  ;;  %v692_v55 = vmax.f32 %v5271_v39, 1e-15  ;;  %v8009_v30 = vclamps-f32 %v5723_v58, 0.9999999  ;;  %v5746_v12 = vmul.f32 %v707_v33, %v4893_v62 }
 0x217   : > { %4090 = vrcp.f32 %v8186_v0  ;;  %v5737_v38 = vpop.eup %4072  ;;  %v8187_v11 = vmax.f32 %v5235_v29, 1e-15  ;;  %v5753_v3 = vmul.f32 %v691_v49, %v4893_v62  ;;  %v1478_v39 = vsub.f32 1.0, %v8008_v52 }
 0x218   : > { %4092 = vlog2.f32 %v1517_v2  ;;  %v5742_v28 = vpop.eup %4074  ;;  %v709_v2 = vmax.f32 %v5283_v5, 1e-15  ;;  %v5766_v29 = vmul.f32 %v692_v55, %v4893_v62  ;;  %v1462_v5 = vsub.f32 1.0, %v8009_v30 }
 0x219   : > { %4094 = vrcp.f32 %v1477_v10  ;;  %v5748_v48 = vpop.eup %4076  ;;  %v5761_v10 = vmul.f32 %v708_v25, %v4893_v62  ;;  %v8194_v52 = vclamps-f32 %v5746_v12, 0.9999999 }
 0x21a   : > { %4096 = vrcp.f32 %v8187_v11  ;;  %v5756_v0 = vpop.eup %4078  ;;  %8189 = vst [vmem:[#allocation58_spill] sm:$0xff] %v5766_v29  ;;  %v5777_v59 = vmul.f32 %v709_v2, %v4893_v62 }
 0x21b   : > { %4098 = vrcp.f32 %v706_v51  ;;  %8188 = vst [vmem:[#allocation57_spill] sm:$0xff] %v5761_v10  ;;  %v5763_v37 = vpop.eup %4080  ;;  %v710_v51 = vmax.f32 %v5289_v16, 1e-15  ;;  %v1479_v23 = vsub.f32 1.0, %v8194_v52  ;;  %v711_v16 = vmax.f32 %v5301_v14, 1e-15 }
 0x21c   : > { %4100 = vrcp.f32 %v1461_v41  ;;  %v5768_v11 = vpop.eup %4082  ;;  %8191 = vst [vmem:[#allocation60_spill] sm:$0xff] %v5777_v59  ;;  %v693_v41 = vmax.f32 %v5286_v9, 1e-15  ;;  %v694_v9 = vmax.f32 %v5292_v8, 1e-15 }
 0x21d   : > { %4102 = vrcp.f32 %v690_v60  ;;  %v8198_v8 = vclamps-f32 %v5766_v29, 0.9999999 }
 0x21e   : > { %v5773_v24 = vpop.eup %4084  ;;  %4104 = vrcp.f32 %v707_v33  ;;  %v5815_v14 = vmul.f32 %v694_v9, %v4893_v62 }
 0x21f   : > { %8190 = vst [vmem:[#allocation59_spill] sm:$0xff] %v5773_v24  ;;  %v5780_v50 = vpop.eup %4086  ;;  %4106 = vrcp.f32 %v1478_v39  ;;  %v8195_v39 = vclamps-f32 %v5753_v3, 0.9999999  ;;  %v1464_v19 = vsub.f32 1.0, %v8198_v8 }
 0x220   : > { %8192 = vst [vmem:[#allocation61_spill] sm:$0xff] %v5780_v50  ;;  %v5783_v31 = vpop.eup %4088  ;;  %4108 = vrcp.f32 %v691_v49  ;;  %v5798_v49 = vmul.f32 %v693_v41, %v4893_v62 }
 0x221   : > { %v5787_v33 = vpop.eup %4090  ;;  %4110 = vrcp.f32 %v1462_v5  ;;  %v1463_v60 = vsub.f32 1.0, %v8195_v39  ;;  %v8196_v5 = vclamps-f32 %v5761_v10, 0.9999999  ;;  %v5810_v39 = vmul.f32 %v710_v51, %v4893_v62 }
 0x222   : > { %8193 = vst [vmem:[#allocation62_spill] sm:$0xff] %v5787_v33  ;;  %v5792_v24 = vpop.eup %4092  ;;  %4112 = vrcp.f32 %v708_v25  ;;  %v8201_v25 = vclamps-f32 %v5777_v59, 0.9999999 }
 0x223   : > { %v5801_v30 = vpop.eup %4094  ;;  %v1480_v52 = vsub.f32 1.0, %v8196_v5  ;;  %4114 = vrcp.f32 %v692_v55  ;;  %8199 = vst [vmem:[#allocation64_spill] sm:$0xff] %v5810_v39  ;;  %v8014_v55 = vclamps-f32 %v5798_v49, 0.9999999 }
 0x224   : > { %v5805_v33 = vpop.eup %4096  ;;  %4116 = vrcp.f32 %v1479_v23  ;;  %v1481_v5 = vsub.f32 1.0, %v8201_v25  ;;  %v8016_v23 = vclamps-f32 %v5810_v39, 0.9999999 }
 0x225   : > { %8197 = vst [vmem:[#allocation63_spill] sm:$0xff] %v5805_v33  ;;  %v5812_v50 = vpop.eup %4098  ;;  %4118 = vrcp.f32 %v1463_v60  ;;  %v5823_v33 = vmul.f32 %v711_v16, %v4893_v62  ;;  %v8017_v60 = vclamps-f32 %v5815_v14, 0.9999999  ;;  %v1465_v25 = vsub.f32 1.0, %v8014_v55 }
 0x226   : > { %8200 = vst [vmem:[#allocation65_spill] sm:$0xff] %v5812_v50  ;;  %v5817_v57 = vpop.eup %4100  ;;  %4120 = vrcp.f32 %v1480_v52 }
 0x227   : > { %v5825_v8 = vpop.eup %4102  ;;  %4122 = vrcp.f32 %v1464_v19  ;;  %v8018_v29 = vclamps-f32 %v5823_v33, 0.9999999  ;;  %v1482_v19 = vsub.f32 1.0, %v8016_v23  ;;  %v8209_v23 = vclamps-f32 %v5455_v34, 0.9999999 }
 0x228   : > { %8202 = vst [vmem:[#allocation66_spill] sm:$0xff] %v5825_v8  ;;  %v5827_v10 = vpop.eup %4104  ;;  %4124 = vrcp.f32 %v709_v2  ;;  %v1466_v2 = vsub.f32 1.0, %v8017_v60  ;;  %v695_v34 = vmax.f32 %v5333_v47, 1e-15  ;;  %v8215_v47 = vclamps-f32 %v5463_v1, 0.9999999 }
 0x229   : > { %8203 = vst [vmem:[#allocation67_spill] sm:$0xff] %v5827_v10  ;;  %v5830_v50 = vpop.eup %4106  ;;  %4126 = vrcp.f32 %v1481_v5  ;;  %v8206_v5 = vclamps-f32 %v5446_v56, 0.9999999  ;;  %v1483_v55 = vsub.f32 1.0, %v8018_v29  ;;  %v1423_v60 = vadd.f32 1.0, %v8209_v23 }
 0x22a   : > { %v5833_v59 = vpop.eup %4108  ;;  %4128 = vrcp.f32 %v693_v41 }
 0x22b   : > { %8204 = vst [vmem:[#allocation68_spill] sm:$0xff] %v5833_v59  ;;  %v5838_v8 = vpop.eup %4110  ;;  %4130 = vrcp.f32 %v710_v51  ;;  %v1421_v10 = vadd.f32 1.0, %v8206_v5  ;;  %v8208_v51 = vclamps-f32 %v5466_v13, 0.9999999  ;;  %v1491_v13 = vmul.f32 %v5647_v26, %v1423_v60 }
 0x22c   : > { %v5842_v52 = vpop.eup %4112  ;;  %4132 = vrcp.f32 %v694_v9  ;;  %v8214_v26 = vclamps-f32 %v5475_v35, 0.9999999  ;;  %v5893_v35 = vmul.f32 %v695_v34, %v4893_v62 }
 0x22d   : > { %8205 = vst [vmem:[#allocation69_spill] sm:$0xff] %v5842_v52  ;;  %v5848_v59 = vpop.eup %4114  ;;  %4134 = vrcp.f32 %v1465_v25  ;;  %v1437_v41 = vadd.f32 1.0, %v8208_v51  ;;  %v1487_v9 = vmul.f32 %v5592_v18, %v1421_v10  ;;  %v8210_v25 = vclamps-f32 %v5450_v36, 0.9999999 }
 0x22e   : > { %8207 = vst [vmem:[#allocation70_spill] sm:$0xff] %v5848_v59  ;;  %v5854_v39 = vpop.eup %4116  ;;  %4136 = vrcp.f32 %v711_v16  ;;  %v8211_v16 = vclamps-f32 %v5540_v20, 0.9999999  ;;  %v1425_v60 = vadd.f32 1.0, %v8214_v26 }
 0x22f   : > { %v5859_v52 = vpop.eup %4118  ;;  %4138 = vrcp.f32 %v1482_v19  ;;  %v1519_v56 = vmul.f32 %v5718_v43, %v1437_v41  ;;  %v1422_v5 = vadd.f32 1.0, %v8210_v25  ;;  %v8212_v43 = vclamps-f32 %v5483_v17, 0.9999999 }
 0x230   : > { %v5864_v29 = vpop.eup %4120  ;;  %4140 = vrcp.f32 %v1466_v2  ;;  %v1439_v51 = vadd.f32 1.0, %v8211_v16  ;;  %v1424_v2 = vadd.f32 1.0, %v8215_v47  ;;  %v1495_v17 = vmul.f32 %v5680_v27, %v1425_v60 }
 0x231   : > { %v5869_v18 = vpop.eup %4122  ;;  %4142 = vrcp.f32 %v1483_v55  ;;  %v1489_v10 = vmul.f32 %v5605_v53, %v1422_v5  ;;  %v1438_v23 = vadd.f32 1.0, %v8212_v43  ;;  %v8217_v41 = vclamps-f32 %v5611_v22, 0.9999999 }
 0x232   : > { %v5875_v36 = vpop.eup %4124  ;;  %4144 = vlog2.f32 %v1487_v9  ;;  %v1523_v19 = vmul.f32 %v5742_v28, %v1439_v51  ;;  %v8221_v27 = vclamps-f32 %v5548_v54, 0.9999999  ;;  %v8222_v51 = vclamps-f32 %v5515_v7, 0.9999999 }
 0x233   : > { %8213 = vst [vmem:[#allocation71_spill] sm:$0xff] %v5875_v36  ;;  %v5880_v20 = vpop.eup %4126  ;;  %4146 = vlog2.f32 %v1519_v56  ;;  %v1521_v55 = vmul.f32 %v5737_v38, %v1438_v23  ;;  %v1441_v9 = vadd.f32 1.0, %v8217_v41  ;;  %v1493_v56 = vmul.f32 %v5669_v45, %v1424_v2 }
 0x234   : > { %v5885_v53 = vpop.eup %4128  ;;  %4148 = vlog2.f32 %v1491_v13  ;;  %v8219_v38 = vclamps-f32 %v5597_v63, 0.9999999  ;;  %v1427_v22 = vadd.f32 1.0, %v8221_v27  ;;  %v8224_v45 = vclamps-f32 %v5624_v4, 0.9999999 }
 0x235   : > { %8216 = vst [vmem:[#allocation72_spill] sm:$0xff] %v5885_v53  ;;  %v5890_v28 = vpop.eup %4130  ;;  %4150 = vlog2.f32 %v1489_v10  ;;  %v1527_v5 = vmul.f32 %v5756_v0, %v1441_v9  ;;  %v1426_v10 = vadd.f32 1.0, %v8222_v51  ;;  %v3654_v54 = vclamps-f32 %v5893_v35, 0.9999999 }
 0x236   : > { %8218 = vst [vmem:[#allocation73_spill] sm:$0xff] %v5890_v28  ;;  %v1440_v1 = vadd.f32 1.0, %v8219_v38  ;;  %v5898_v25 = vpop.eup %4132  ;;  %4152 = vlog2.f32 %v1523_v19  ;;  %v1499_v63 = vmul.f32 %v5713_v44, %v1427_v22  ;;  %v1443_v23 = vadd.f32 1.0, %v8224_v45 }
 0x237   : > { %8220 = vst [vmem:[#allocation74_spill] sm:$0xff] %v5898_v25  ;;  %v4135_v13 = vpop.eup %4134  ;;  %4154 = vlog2.f32 %v1521_v55  ;;  %v1497_v0 = vmul.f32 %v5707_v32, %v1426_v10  ;;  %v1549_v44 = vmul.f32 0.6931472, %v5783_v31  ;;  %v8226_v2 = vclamps-f32 %v5696_v40, 0.9999999 }
 0x238   : > { %v1525_v16 = vmul.f32 %v5748_v48, %v1440_v1  ;;  %v5906_v43 = vpop.eup %4136  ;;  %4156 = vlog2.f32 %v1495_v17  ;;  %v1531_v7 = vmul.f32 %v5768_v11, %v1443_v23  ;;  %v8225_v48 = vclamps-f32 %v5619_v21, 0.9999999 }
 0x239   : > { %8223 = vst [vmem:[#allocation75_spill] sm:$0xff] %v5906_v43  ;;  %v5911_v19 = vpop.eup %4138  ;;  %4158 = vlog2.f32 %v1493_v56  ;;  %v1429_v32 = vadd.f32 1.0, %v8226_v2  ;;  %v1467_v41 = vsub.f32 1.0, %v3654_v54  ;;  %v8227_v21 = vclamps-f32 %v5580_v42, 0.9999999  ;;  %v5941_v42 = vpop.xlane.xlu0 %2096 }
 0x23a   : > { %v5915_v26 = vpop.eup %4140  ;;  %4160 = vlog2.f32 %v1527_v5  ;;  %v1442_v60 = vadd.f32 1.0, %v8225_v48  ;;  %v8228_v31 = vclamps-f32 %v5676_v61, 0.9999999  ;;  %v1581_v40 = vmul.f32 0.6931472, %v5792_v24  ;;  %8230 = vst [vmem:[#allocation76_spill] sm:$0xff] %v5941_v42 }
 0x23b   : > { %v5920_v55 = vpop.eup %4142  ;;  %4162 = vlog2.f32 %v1525_v16  ;;  %v1428_v11 = vadd.f32 1.0, %v8227_v21  ;;  %v1503_v56 = vmul.f32 %v5817_v57, %v1429_v32  ;;  %v8229_v5 = vclamps-f32 %v5571_v6, 0.9999999 }
 0x23c   : > { %v4145_v4 = vpop.eup %4144  ;;  %4164 = vlog2.f32 %v1499_v63  ;;  %v1529_v47 = vmul.f32 %v5763_v37, %v1442_v60  ;;  %v1445_v38 = vadd.f32 1.0, %v8228_v31  ;;  %v5943_v16 = vmul.f32 0.5, %v1549_v44 }
 0x23d   : > { %v4147_v17 = vpop.eup %4146  ;;  %4166 = vlog2.f32 %v1497_v0  ;;  %v1501_v37 = vmul.f32 %v5731_v46, %v1428_v11  ;;  %v1444_v27 = vadd.f32 1.0, %v8229_v5  ;;  %v8231_v57 = vclamps-f32 %v5753_v3, 0.9999999  ;;  %v8234_v0 = vld [vmem:[#allocation56_spill] sm:$0xff] }
 0x23e   : > { %v4149_v9 = vpop.eup %4148  ;;  %4168 = vlog2.f32 %v1531_v7  ;;  %v1535_v61 = vmul.f32 %v5801_v30, %v1445_v38  ;;  %v8232_v46 = vclamps-f32 %v5723_v58, 0.9999999  ;;  %v8233_v10 = vclamps-f32 %v5746_v12, 0.9999999 }
 0x23f   : > { %v5933_v1 = vpop.eup %4150  ;;  %4170 = vrcp.f32 %v695_v34  ;;  %v1431_v51 = vadd.f32 1.0, %v8231_v57  ;;  %v1533_v24 = vmul.f32 %v5728_v15, %v1444_v27  ;;  %v8235_v7 = vclamps-f32 %v8234_v0, 0.9999999  ;;  %v8237_v15 = vld [vmem:[#allocation58_spill] sm:$0xff] }
 0x240   : > { %v5939_v22 = vpop.eup %4152  ;;  %4172 = vlog2.f32 %v1529_v47  ;;  %v1430_v6 = vadd.f32 1.0, %v8232_v46  ;;  %v1447_v63 = vadd.f32 1.0, %v8233_v10  ;;  %v8236_v3 = vclamps-f32 %v5798_v49, 0.9999999 }
 0x241   : > { %v4155_v34 = vpop.eup %4154  ;;  %4174 = vrcp.f32 %v1467_v41  ;;  %v1507_v23 = vmul.f32 %v5859_v52, %v1431_v51  ;;  %v1446_v30 = vadd.f32 1.0, %v8235_v7  ;;  %v5958_v44 = vmul.f32 0.5, %v1581_v40 }
 0x242   : > { %v4157_v45 = vpop.eup %4156  ;;  %4176 = vlog2.f32 %v1503_v56  ;;  %v1433_v48 = vadd.f32 1.0, %v8236_v3  ;;  %v1505_v58 = vmul.f32 %v5838_v8, %v1430_v6  ;;  %v8238_v47 = vclamps-f32 %v8237_v15, 0.9999999  ;;  %v8239_v56 = vld [vmem:[#allocation60_spill] sm:$0xff]  ;;  %v8241_v8 = vld [vmem:[#allocation57_spill] sm:$0xff] }
 0x243   : > { %v4159_v60 = vpop.eup %4158  ;;  %4178 = vlog2.f32 %v1501_v37  ;;  %v1539_v32 = vmul.f32 %v5854_v39, %v1447_v63  ;;  %v1537_v52 = vmul.f32 %v5830_v50, %v1446_v30  ;;  %v8240_v31 = vclamps-f32 %v8239_v56, 0.9999999  ;;  %v8245_v63 = vld [vmem:[#allocation64_spill] sm:$0xff] }
 0x244   : > { %v1432_v12 = vadd.f32 1.0, %v8238_v47  ;;  %v4161_v2 = vpop.eup %4160  ;;  %4180 = vlog2.f32 %v1535_v61  ;;  %v1511_v41 = vmul.f32 %v4135_v13, %v1433_v48  ;;  %v8242_v40 = vclamps-f32 %v8241_v8, 0.9999999 }
 0x245   : > { %v4163_v21 = vpop.eup %4162  ;;  %4182 = vlog2.f32 %v1533_v24  ;;  %v1449_v38 = vadd.f32 1.0, %v8240_v31  ;;  %v1551_v27 = vmul.f32 0.6931472, %v4145_v4  ;;  %v8243_v50 = vclamps-f32 %v5815_v14, 0.9999999 }
 0x246   : > { %v1509_v49 = vmul.f32 %v5869_v18, %v1432_v12  ;;  %v1448_v37 = vadd.f32 1.0, %v8242_v40  ;;  %v5972_v5 = vpop.eup %4164  ;;  %4184 = vlog2.f32 %v1507_v23  ;;  %v2099_v18 = vlaneseq }
 0x247   : > { %v1434_v13 = vadd.f32 1.0, %v8243_v50  ;;  %v5979_v57 = vpop.eup %4166  ;;  %v1583_v24 = vmul.f32 0.6931472, %v4147_v17  ;;  %4186 = vlog2.f32 %v1505_v58  ;;  %v1543_v4 = vmul.f32 %v5880_v20, %v1449_v38 }
 0x248   : > { %v5982_v46 = vpop.eup %4168  ;;  %v8244_v6 = vclamps-f32 %v5823_v33, 0.9999999  ;;  %v8246_v14 = vclamps-f32 %v8245_v63, 0.9999999  ;;  %v1555_v17 = vmul.f32 0.6931472, %v4149_v9  ;;  %v1541_v7 = vmul.f32 %v5864_v29, %v1448_v37 }
 0x249   : > { %v5991_v0 = vpop.eup %4170  ;;  %v5997_v30 = vmul.f32 %v5915_v26, %v1434_v13  ;;  %v6001_v20 = vmul.f32 0.5, %v1551_v27  ;;  %v6009_v15 = vshrl.u32 %v2099_v18, 7  ;;  %v6011_v9 = vmul.f32 0.5, %v1583_v24 }
 0x24a   : > { %v1451_v10 = vadd.f32 1.0, %v8244_v6  ;;  %v1450_v23 = vadd.f32 1.0, %v8246_v14  ;;  %8247 = vst [vmem:[#allocation56_spill] sm:$0xff] %v5991_v0  ;;  %v5999_v3 = vpop.eup %4172  ;;  %v1553_v29 = vmul.f32 0.6931472, %v5933_v1  ;;  %v6024_v38 = vmul.f32 0.5, %v1555_v17 }
 0x24b   : > { %v4175_v58 = vpop.eup %4174  ;;  %8248 = vst [vmem:[#allocation58_spill] sm:$0xff] %v6009_v15  ;;  %v1587_v12 = vmul.f32 0.6931472, %v5939_v22  ;;  %v1559_v1 = vmul.f32 0.6931472, %v4157_v45 }
 0x24c   : > { %v6004_v33 = vmul.f32 %v5920_v55, %v1451_v10  ;;  %v6007_v48 = vmul.f32 %v5911_v19, %v1450_v23  ;;  %v6014_v26 = vpop.eup %4176  ;;  %v1435_v19 = vadd.f32 1.0, %v3654_v54  ;;  %v1557_v40 = vmul.f32 0.6931472, %v4159_v60 }
 0x24d   : > { %v4179_v55 = vpop.eup %4178  ;;  %v1591_v54 = vmul.f32 0.6931472, %v4161_v2  ;;  %v6042_v60 = vmul.f32 0.5, %v1587_v12  ;;  %v6051_v2 = vld [vmem:[%s7943_s3] ss:$0 sm:$0xff]  ;;  %v6056_v18 = vmul.f32 0.5, %v1559_v1 }
 0x24e   : > { %v1515_v22 = vmul.f32 %v4175_v58, %v1435_v19  ;;  %v6061_v6 = vmul.f32 0.5, %v1557_v40  ;;  %v1563_v10 = vmul.f32 0.6931472, %v5972_v5 }
 0x24f   : > { %v6071_v23 = vmul.f32 0.5, %v1591_v54  ;;  %v8250_v54 = vld [vmem:[#allocation59_spill] sm:$0xff] }
 0x250   : > { %v6098_v35 = vmul.f32 0.5, %v1563_v10 }
 0x253   : > { %v5965_v11 = vpop.xlane.xlu1 %1072 }
 0x254   : > { %v1165_v39 = vmax.f32 %v5965_v11, 1e-30  ;;  %v5975_v61 = vpop.xlane.xlu0 %1069  ;;  %vm1837_vm5 = vcmp.lt.f32.partialorder %v5965_v11, 1e-30 }
 0x255   : > { %v1164_v51 = vmax.f32 %v5975_v61, 1e-30  ;;  %vm1836_vm7 = vcmp.lt.f32.partialorder %v5975_v61, 1e-30 }
 0x256   : > { %4188 = vrsqrt.f32 %v1165_v39 }
 0x257   : > { %4190 = vrsqrt.f32 %v1164_v51 }
 0x258   : > { %4192 = vlog2.f32 %v1539_v32  ;;  %v6016_v47 = vpop.xlane.xlu1 %1120  ;;  %v1585_v32 = vmul.f32 0.6931472, %v4155_v34 }
 0x259   : > { %4194 = vlog2.f32 %v1537_v52  ;;  %v1181_v56 = vmax.f32 %v6016_v47, 1e-30  ;;  %v6022_v31 = vpop.xlane.xlu0 %1117  ;;  %v6026_v52 = vpop.eup %4180  ;;  %vm1853_vm6 = vcmp.lt.f32.partialorder %v6016_v47, 1e-30  ;;  %v8303_v47 = vld [vmem:[#allocation16_spill] sm:$0xff] }
 0x25a   : > { %4196 = vlog2.f32 %v1511_v41  ;;  %v1180_v8 = vmax.f32 %v6022_v31, 1e-30  ;;  %v6029_v34 = vpop.eup %4182  ;;  %v1589_v41 = vmul.f32 0.6931472, %v4163_v21  ;;  %v6044_v27 = vmul.f32 0.5, %v1585_v32  ;;  %v8249_v32 = vld [vmem:[#allocation24_spill] sm:$0xff] }
 0x25b   : > { %4198 = vlog2.f32 %v1509_v49  ;;  %v6034_v37 = vpop.eup %4184  ;;  %v6040_v49 = vmul.f32 0.5, %v1553_v29  ;;  %v1595_v29 = vmul.f32 0.6931472, %v5982_v46  ;;  %vm1852_vm8 = vcmp.lt.f32.partialorder %v6022_v31, 1e-30 }
 0x25c   : > { %4200 = vlog2.f32 %v1543_v4  ;;  %v6038_v45 = vpop.xlane.xlu1 %1078  ;;  %v6046_v50 = vpop.eup %4186  ;;  %v6073_v17 = vmul.f32 0.5, %v1589_v41 }
 0x25d   : > { %4202 = vrsqrt.f32 %v1181_v56  ;;  %v8022_v21 = vmax.f32 %v6038_v45, 1e-30  ;;  %v6054_v13 = vpop.xlane.xlu0 %1075  ;;  %vm1839_vm9 = vcmp.lt.f32.partialorder %v6038_v45, 1e-30 }
 0x25e   : > { %4204 = vrsqrt.f32 %v1180_v8  ;;  %v8021_v4 = vmax.f32 %v6054_v13, 1e-30  ;;  %vm1838_vm11 = vcmp.lt.f32.partialorder %v6054_v13, 1e-30 }
 0x25f   : > { %4206 = vlog2.f32 %v1541_v7 }
 0x260   : > { %v6058_v24 = vpop.eup %4188  ;;  %4208 = vlog2.f32 %v1515_v22  ;;  %v6082_v58 = vpop.xlane.xlu1 %1126  ;;  %v1593_v22 = vmul.f32 0.6931472, %v5999_v3  ;;  %v1567_v3 = vmul.f32 0.6931472, %v6014_v26 }
 0x261   : > { %v6064_v63 = vpop.eup %4190  ;;  %v1229_v14 = vmul.f32 %v6058_v24, %v1165_v39  ;;  %4210 = vrsqrt.f32 %v8022_v21  ;;  %v1561_v39 = vmul.f32 0.6931472, %v5979_v57  ;;  %v8020_v1 = vmax.f32 %v6082_v58, 1e-30  ;;  %v6090_v40 = vpop.xlane.xlu0 %1123 }
 0x262   : > { %v6075_v7 = vpop.eup %4192  ;;  %v1228_v5 = vmul.f32 %v6064_v63, %v1164_v51  ;;  %4212 = vrsqrt.f32 %v8021_v4  ;;  %v8019_v57 = vmax.f32 %v6090_v40, 1e-30  ;;  %v1571_v21 = vmul.f32 0.6931472, %v6034_v37 }
 0x263   : > { %v6086_v12 = vpop.eup %4194  ;;  %v1293_v19 = vmul.f32 %v8249_v32, %v1229_v14  ;;  %4214 = vlog2.f32 %v5997_v30  ;;  %v1565_v30 = vmul.f32 0.6931472, %v4179_v55  ;;  %v6123_v55 = vmul.f32 0.5, %v1593_v22 }
 0x264   : > { %v6094_v51 = vpop.eup %4196  ;;  %v1292_v41 = vmul.f32 %v8250_v54, %v1228_v5  ;;  %4216 = vlog2.f32 %v6004_v33  ;;  %v6112_v10 = vpop.xlane.xlu1 %1084  ;;  %v6114_v33 = vmul.f32 0.5, %v1561_v39  ;;  %v6116_v54 = vmul.f32 0.5, %v1595_v29 }
 0x265   : > { %v6101_v46 = vpop.eup %4198  ;;  %v1645_v14 = vmul.f32 %v6001_v20, %v1293_v19  ;;  %4218 = vrsqrt.f32 %v8020_v1  ;;  %8251 = vst [vmem:[#allocation60_spill] sm:$0xff] %v6112_v10  ;;  %v8025_v19 = vmax.f32 %v6112_v10, 1e-30  ;;  %v6121_v26 = vpop.xlane.xlu0 %1081  ;;  %v8255_v37 = vmax.f32 %v6038_v45, 1e-30 }
 0x266   : > { %v6107_v32 = vpop.eup %4200  ;;  %v1644_v5 = vmul.f32 %v5943_v16, %v1292_v41  ;;  %4220 = vrsqrt.f32 %v8019_v57  ;;  %8252 = vst [vmem:[#allocation57_spill] sm:$0xff] %v6121_v26  ;;  %v1599_v16 = vmul.f32 0.6931472, %v6026_v52  ;;  %v8029_v29 = vmax.f32 %v6121_v26, 1e-30 }
 0x267   : > { %v6118_v20 = vpop.eup %4202  ;;  %4222 = vtanh.f32 %v1645_v14  ;;  %v1597_v57 = vmul.f32 0.6931472, %v6029_v34  ;;  %v6140_v52 = vmul.f32 0.5, %v1567_v3  ;;  %v6185_v43 = vmul.f32 0.5, %v1571_v21 }
 0x268   : > { %v6126_v41 = vpop.eup %4204  ;;  %4224 = vtanh.f32 %v1644_v5  ;;  %v1245_v39 = vmul.f32 %v6118_v20, %v1181_v56  ;;  %v6142_v5 = vmul.f32 0.5, %v1565_v30  ;;  %v8253_v56 = vld [vmem:[#allocation21_spill] sm:$0xff]  ;;  %v6149_v34 = vpop.xlane.xlu1 %1132  ;;  %v6159_v15 = vmul.f32 0.5, %v1599_v16 }
 0x269   : > { %v6133_v14 = vpop.eup %4206  ;;  %v1244_v22 = vmul.f32 %v6126_v41, %v1180_v8  ;;  %4226 = vrsqrt.f32 %v8025_v19  ;;  %v1569_v8 = vmul.f32 0.6931472, %v6046_v50  ;;  %v8254_v19 = vld [vmem:[#allocation61_spill] sm:$0xff]  ;;  %v8030_v30 = vmax.f32 %v6149_v34, 1e-30  ;;  %v6157_v42 = vpop.xlane.xlu0 %1129  ;;  %8260 = vst [vmem:[#allocation59_spill] sm:$0xff] %v6185_v43 }
 0x26a   : > { %v6144_v1 = vpop.eup %4208  ;;  %v1309_v4 = vmul.f32 %v8253_v56, %v1245_v39  ;;  %4228 = vrsqrt.f32 %v8029_v29  ;;  %v6169_v28 = vmul.f32 0.5, %v1597_v57  ;;  %v8257_v16 = vmax.f32 %v6054_v13, 1e-30 }
 0x26b   : > { %v6153_v62 = vpop.eup %4210  ;;  %v1308_v3 = vmul.f32 %v8254_v19, %v1244_v22  ;;  %4230 = vlog2.f32 %v6007_v48  ;;  %v6187_v25 = vmul.f32 0.5, %v1569_v8  ;;  %v8263_v21 = vmax.f32 %v6082_v58, 1e-30 }
 0x26c   : > { %v6162_v39 = vpop.eup %4212  ;;  %v1661_v56 = vmul.f32 %v6011_v9, %v1309_v4  ;;  %v1231_v50 = vmul.f32 %v6153_v62, %v8255_v37  ;;  %8256 = vst [vmem:[#allocation64_spill] sm:$0xff] %v6169_v28  ;;  %4232 = vrsqrt.f32 %v8030_v30  ;;  %v1603_v9 = vmul.f32 0.6931472, %v6075_v7  ;;  %v8258_v37 = vld [vmem:[#allocation36_spill] sm:$0xff]  ;;  %v6183_v57 = vpop.xlane.xlu1 %1090 }
 0x26d   : > { %v6171_v19 = vpop.eup %4214  ;;  %v1660_v22 = vmul.f32 %v5958_v44, %v1308_v3  ;;  %v1230_v48 = vmul.f32 %v6162_v39, %v8257_v16  ;;  %8259 = vst [vmem:[#allocation24_spill] sm:$0xff] %v6183_v57  ;;  %8261 = vst [vmem:[#allocation21_spill] sm:$0xff] %v6187_v25  ;;  %v8262_v3 = vld [vmem:[#allocation33_spill] sm:$0xff]  ;;  %v6193_v0 = vpop.xlane.xlu0 %1087  ;;  %v1601_v7 = vmul.f32 0.6931472, %v6086_v12 }
 0x26e   : > { %v6180_v4 = vpop.eup %4216  ;;  %4234 = vtanh.f32 %v1661_v56  ;;  %v1295_v29 = vmul.f32 %v8258_v37, %v1231_v50  ;;  %v8264_v37 = vmax.f32 %v6157_v42, 1e-30  ;;  %v8265_v30 = vmax.f32 %v6090_v40, 1e-30 }
 0x26f   : > { %v6189_v44 = vpop.eup %4218  ;;  %4236 = vtanh.f32 %v1660_v22  ;;  %v1294_v16 = vmul.f32 %v8262_v3, %v1230_v48  ;;  %v8266_v36 = vmax.f32 %v6183_v57, 1e-30  ;;  %v1575_v22 = vmul.f32 0.6931472, %v6094_v51 }
 0x270   : > { %v6196_v56 = vpop.eup %4220  ;;  %v1647_v50 = vmul.f32 %v6024_v38, %v1295_v29  ;;  %v1247_v8 = vmul.f32 %v6189_v44, %v8263_v21  ;;  %4238 = vrsqrt.f32 %v8264_v37  ;;  %v6211_v38 = vmul.f32 0.5, %v1603_v9  ;;  %v8268_v21 = vld [vmem:[#allocation38_spill] sm:$0xff]  ;;  %v6214_v37 = vpop.xlane.xlu1 %1138  ;;  %v8270_v9 = vld [vmem:[#allocation20_spill] sm:$0xff] }
 0x271   : > { %v4223_v48 = vpop.eup %4222  ;;  %v1646_v3 = vmul.f32 %v6040_v49, %v1294_v16  ;;  %v1246_v12 = vmul.f32 %v6196_v56, %v8265_v30  ;;  %4240 = vrsqrt.f32 %v8266_v36  ;;  %v8269_v16 = vld [vmem:[#allocation35_spill] sm:$0xff]  ;;  %v8035_v43 = vmax.f32 %v6214_v37, 1e-30 }
 0x272   : > { %8267 = vst [vmem:[#allocation61_spill] sm:$0xff] %v6211_v38  ;;  %v4225_v29 = vpop.eup %4224  ;;  %v1709_v59 = vmin.f32 %v4223_v48, 0.996  ;;  %4242 = vtanh.f32 %v1647_v50  ;;  %v1311_v53 = vmul.f32 %v8268_v21, %v1247_v8  ;;  %v8271_v8 = vmax.f32 %v6112_v10, 1e-30  ;;  %v6230_v21 = vpop.xlane.xlu0 %1135 }
 0x273   : > { %v6217_v25 = vpop.eup %4226  ;;  %v1708_v49 = vmin.f32 %v4225_v29, 0.996  ;;  %4244 = vtanh.f32 %v1646_v3  ;;  %v1310_v30 = vmul.f32 %v8269_v16, %v1246_v12  ;;  %v8272_v51 = vmax.f32 %v6193_v0, 1e-30 }
 0x274   : > { %v6221_v36 = vpop.eup %4228  ;;  %v1741_v38 = vmul.f32 %v1709_v59, %v8270_v9  ;;  %v1663_v50 = vmul.f32 %v6042_v60, %v1311_v53  ;;  %v1233_v48 = vmul.f32 %v6217_v25, %v8271_v8  ;;  %v8274_v16 = vmax.f32 %v6121_v26, 1e-30  ;;  %v8275_v60 = vld [vmem:[#allocation45_spill] sm:$0xff] }
 0x275   : > { %4246 = vrsqrt.f32 %v8272_v51  ;;  %v6232_v3 = vpop.eup %4230  ;;  %v1740_v12 = vmul.f32 %v1708_v49, %v8270_v9  ;;  %v1662_v29 = vmul.f32 %v6044_v27, %v1310_v30  ;;  %v6243_v51 = vmul.f32 0.5, %v1601_v7  ;;  %v8276_v27 = vld [vmem:[#allocation41_spill] sm:$0xff] }
 0x276   : > { %8273 = vst [vmem:[#allocation36_spill] sm:$0xff] %v6232_v3  ;;  %v1232_v59 = vmul.f32 %v6221_v36, %v8274_v16  ;;  %4248 = vrsqrt.f32 %v8035_v43  ;;  %v1773_v53 = vmul.f32 %v6058_v24, %v1741_v38  ;;  %v1297_v8 = vmul.f32 %v8275_v60, %v1233_v48  ;;  %v6245_v10 = vpop.eup %4232  ;;  %v8277_v3 = vld [vmem:[#allocation6_spill] sm:$0xff]  ;;  %v8279_v60 = vld [vmem:[#allocation8_spill] sm:$0xff] }
 0x277   : > { %4250 = vtanh.f32 %v1663_v50  ;;  %v1772_v49 = vmul.f32 %v6064_v63, %v1740_v12  ;;  %v8034_v26 = vmax.f32 %v6230_v21, 1e-30  ;;  %v8278_v38 = vmax.f32 %v6149_v34, 1e-30 }
 0x278   : > { %4252 = vtanh.f32 %v1662_v29  ;;  %v1296_v30 = vmul.f32 %v8276_v27, %v1232_v59  ;;  %v4235_v16 = vpop.eup %4234  ;;  %v6251_v28 = vmul.f32 %v8277_v3, %v1773_v53  ;;  %v1649_v24 = vmul.f32 %v6056_v18, %v1297_v8  ;;  %v8280_v18 = vld [vmem:[#allocation44_spill] sm:$0xff] }
 0x279   : > { %v1249_v7 = vmul.f32 %v6245_v10, %v8278_v38  ;;  %v1573_v50 = vmul.f32 0.6931472, %v6101_v46  ;;  %v4237_v48 = vpop.eup %4236  ;;  %v6259_v63 = vmul.f32 %v1772_v49, %v8279_v60  ;;  %v1725_v12 = vmin.f32 %v4235_v16, 0.996 }
 0x27a   : > { %v1648_v29 = vmul.f32 %v6061_v6, %v1296_v30  ;;  %4254 = vrsqrt.f32 %v8034_v26  ;;  %v6264_v3 = vpop.eup %4238  ;;  %v1724_v59 = vmin.f32 %v4237_v48, 0.996  ;;  %v6267_v8 = vmul.f32 0.5, %v1575_v22 }
 0x27b   : > { %4256 = vtanh.f32 %v1649_v24  ;;  %v1313_v53 = vmul.f32 %v8280_v18, %v1249_v7  ;;  %v6269_v27 = vpop.eup %4240  ;;  %v1757_v46 = vmul.f32 %v1725_v12, %v8270_v9  ;;  %v8281_v49 = vmax.f32 %v6157_v42, 1e-30  ;;  %v8283_v18 = vld [vmem:[#allocation43_spill] sm:$0xff] }
 0x27c   : > { %4258 = vtanh.f32 %v1648_v29  ;;  %v1607_v30 = vmul.f32 0.6931472, %v6107_v32  ;;  %v4243_v16 = vpop.eup %4242  ;;  %v1756_v38 = vmul.f32 %v1724_v59, %v8270_v9  ;;  %v8282_v7 = vmax.f32 %v6183_v57, 1e-30 }
 0x27d   : > { %v1248_v6 = vmul.f32 %v6264_v3, %v8281_v49  ;;  %v1665_v24 = vmul.f32 %v6071_v23, %v1313_v53  ;;  %v6281_v48 = vmul.f32 0.5, %v1573_v50  ;;  %v4245_v60 = vpop.eup %4244  ;;  %v1789_v12 = vmul.f32 %v6118_v20, %v1757_v46  ;;  %v8284_v23 = vld [vmem:[#allocation52_spill] sm:$0xff]  ;;  %v8285_v50 = vld [vmem:[#allocation7_spill] sm:$0xff] }
 0x27e   : > { %v1235_v22 = vmul.f32 %v6269_v27, %v8282_v7  ;;  %v1711_v29 = vmin.f32 %v4243_v16, 0.996  ;;  %v1605_v49 = vmul.f32 0.6931472, %v6133_v14  ;;  %v1788_v59 = vmul.f32 %v6126_v41, %v1756_v38 }
 0x27f   : > { %v1312_v26 = vmul.f32 %v8283_v18, %v1248_v6  ;;  %v6286_v32 = vpop.eup %4246  ;;  %v1710_v43 = vmin.f32 %v4245_v60, 0.996  ;;  %4260 = vtanh.f32 %v1665_v24  ;;  %v6293_v7 = vmul.f32 %v8285_v50, %v1789_v12  ;;  %v8287_v18 = vld [vmem:[#allocation10_spill] sm:$0xff] }
 0x280   : > { %v1299_v53 = vmul.f32 %v8284_v23, %v1235_v22  ;;  %v6290_v57 = vpop.eup %4248  ;;  %v1743_v20 = vmul.f32 %v1711_v29, %v8270_v9  ;;  %v8286_v6 = vmax.f32 %v6193_v0, 1e-30  ;;  %v6301_v41 = vmul.f32 %v1788_v59, %v8287_v18  ;;  %v8290_v18 = vld [vmem:[#allocation49_spill] sm:$0xff] }
 0x281   : > { %v1664_v46 = vmul.f32 %v6073_v17, %v1312_v26  ;;  %v4251_v16 = vpop.eup %4250  ;;  %v1742_v38 = vmul.f32 %v1710_v43, %v8270_v9  ;;  %v8288_v22 = vmax.f32 %v6214_v37, 1e-30  ;;  %v6309_v26 = vmul.f32 0.5, %v1607_v30  ;;  %v6323_v30 = vpop.xlane.xlu1 %1096 }
 0x282   : > { %v1234_v14 = vmul.f32 %v6286_v32, %v8286_v6  ;;  %v1651_v24 = vmul.f32 %v6098_v35, %v1299_v53  ;;  %v4253_v12 = vpop.eup %4252  ;;  %v1775_v29 = vmul.f32 %v6153_v62, %v1743_v20  ;;  %v1727_v17 = vmin.f32 %v4251_v16, 0.996  ;;  %v8289_v35 = vld [vmem:[#allocation9_spill] sm:$0xff]  ;;  %v8291_v20 = vld [vmem:[#allocation50_spill] sm:$0xff] }
 0x283   : > { %v1251_v60 = vmul.f32 %v6290_v57, %v8288_v22  ;;  %4262 = vtanh.f32 %v1664_v46  ;;  %v1774_v23 = vmul.f32 %v6162_v39, %v1742_v38  ;;  %v1726_v50 = vmin.f32 %v4253_v12, 0.996  ;;  %v8292_v39 = vld [vmem:[#allocation12_spill] sm:$0xff] }
 0x284   : > { %4264 = vtanh.f32 %v1651_v24  ;;  %v6313_v59 = vmul.f32 0.6931472, %v6144_v1  ;;  %v6315_v43 = vpop.eup %4254  ;;  %v6318_v53 = vmul.f32 %v8289_v35, %v1775_v29  ;;  %v1759_v6 = vmul.f32 %v1727_v17, %v8270_v9  ;;  %v6338_v35 = vpop.xlane.xlu0 %1093 }
 0x285   : > { %v1298_v62 = vmul.f32 %v8290_v18, %v1234_v14  ;;  %v1315_v46 = vmul.f32 %v8291_v20, %v1251_v60  ;;  %v4257_v16 = vpop.eup %4256  ;;  %v6327_v38 = vmul.f32 %v1774_v23, %v8292_v39  ;;  %v1758_v1 = vmul.f32 %v1726_v50, %v8270_v9  ;;  %v8295_v20 = vld [vmem:[#allocation11_spill] sm:$0xff] }
 0x286   : > { %v8293_v24 = vmax.f32 %v6230_v21, 1e-30  ;;  %v4259_v12 = vpop.eup %4258  ;;  %v6334_v29 = vsel %vm1837_vm5, 0.0, %v6251_v28  ;;  %v1791_v14 = vmul.f32 %v6189_v44, %v1759_v6  ;;  %v1713_v60 = vmin.f32 %v4257_v16, 0.996  ;;  %v8297_v16 = vld [vmem:[#allocation14_spill] sm:$0xff] }
 0x287   : > { %8294 = vst [vmem:[#allocation33_spill] sm:$0xff] %v6334_v29  ;;  %v1650_v17 = vmul.f32 %v6114_v33, %v1298_v62  ;;  %v1790_v11 = vmul.f32 %v6196_v56, %v1758_v1  ;;  %v1712_v23 = vmin.f32 %v4259_v12, 0.996  ;;  %v1667_v50 = vmul.f32 %v6116_v54, %v1315_v46  ;;  %v6357_v12 = vpop.xlane.xlu1 %1144 }
 0x288   : > { %v1250_v22 = vmul.f32 %v6315_v43, %v8293_v24  ;;  %v1173_v18 = vmax.f32 %v6323_v30, 1e-30  ;;  %v6344_v39 = vmul.f32 %v8295_v20, %v1791_v14  ;;  %v1745_v28 = vmul.f32 %v1713_v60, %v8270_v9  ;;  %v8296_v24 = vld [vmem:[#allocation48_spill] sm:$0xff] }
 0x289   : > { %4266 = vtanh.f32 %v1650_v17  ;;  %v4261_v6 = vpop.eup %4260  ;;  %v6349_v33 = vmul.f32 %v1790_v11, %v8297_v16  ;;  %v1744_v62 = vmul.f32 %v1712_v23, %v8270_v9  ;;  %v6352_v56 = vmul.f32 0.5, %v1605_v49  ;;  %v8298_v17 = vld [vmem:[#allocation13_spill] sm:$0xff] }
 0x28a   : > { %v1314_v44 = vmul.f32 %v8296_v24, %v1250_v22  ;;  %4268 = vtanh.f32 %v1667_v50  ;;  %v1777_v54 = vmul.f32 %v6217_v25, %v1745_v28  ;;  %v1729_v46 = vmin.f32 %v4261_v6, 0.996  ;;  %v8300_v50 = vld [vmem:[#allocation15_spill] sm:$0xff] }
 0x28b   : > { %v1776_v22 = vmul.f32 %v6221_v36, %v1744_v62  ;;  %4270 = vrsqrt.f32 %v1173_v18  ;;  %v1172_v14 = vmax.f32 %v6338_v35, 1e-30  ;;  %v1966_v49 = vmul.f32 %v6334_v29, %v6334_v29 }
 0x28c   : > { %v1666_v1 = vmul.f32 %v6123_v55, %v1314_v44  ;;  %v6366_v11 = vmul.f32 %v8298_v17, %v1777_v54  ;;  %v1761_v25 = vmul.f32 %v1729_v46, %v8270_v9  ;;  %v6369_v55 = vpop.xlane.xlu0 %1141  ;;  %v2105_v36 = vmul.f32 %v6051_v2, %v6334_v29 }
 0x28d   : > { %v4263_v60 = vpop.eup %4262  ;;  %8299 = vst [vmem:[#allocation38_spill] sm:$0xff] %v6369_v55  ;;  %v6374_v20 = vmul.f32 %v1776_v22, %v8300_v50  ;;  %v1189_v24 = vmax.f32 %v6357_v12, 1e-30  ;;  %v6382_v44 = vsel %vm1853_vm6, 0.0, %v6293_v7  ;;  %v1577_v62 = vmul.f32 0.6931472, %v6171_v19 }
 0x28e   : > { %4272 = vtanh.f32 %v1666_v1  ;;  %v4265_v23 = vpop.eup %4264  ;;  %v1728_v28 = vmin.f32 %v4263_v60, 0.996  ;;  %8301 = vst [vmem:[#allocation35_spill] sm:$0xff] %v6382_v44  ;;  %v1793_v6 = vmul.f32 %v6245_v10, %v1761_v25  ;;  %v8038_v46 = vmax.f32 %v6369_v55, 1e-30 }
 0x28f   : > { %4274 = vrsqrt.f32 %v1172_v14  ;;  %v1715_v16 = vmin.f32 %v4265_v23, 0.996  ;;  %v6392_v1 = vsel %vm1836_vm7, 0.0, %v6259_v63  ;;  %v2000_v22 = vsel %vm1067_vm4, %v1966_v49, 0.0  ;;  %v8304_v23 = vld [vmem:[#allocation17_spill] sm:$0xff] }
 0x290   : > { %v1760_v54 = vmul.f32 %v1728_v28, %v8270_v9  ;;  %4276 = vrsqrt.f32 %v1189_v24  ;;  %8302 = vst [vmem:[#allocation20_spill] sm:$0xff] %v6392_v1  ;;  %v6395_v7 = vmul.f32 %v8303_v47, %v1793_v6  ;;  %2001 = vadd.xlane.f32.xlu1 %v2000_v22  ;;  %v2139_v61 = vsel %vm1067_vm4, %v2105_v36, 0.0 }
 0x291   : > { %v1747_v10 = vmul.f32 %v1715_v16, %v8270_v9  ;;  %4278 = vrsqrt.f32 %v8038_v46  ;;  %v1982_v60 = vmul.f32 %v6382_v44, %v6382_v44  ;;  %2140 = vadd.xlane.f32.xlu0 %v2139_v61  ;;  %v2121_v49 = vmul.f32 %v6051_v2, %v6382_v44  ;;  %v8332_v44 = vld [vmem:[#allocation66_spill] sm:$0xff] }
 0x292   : > { %v1792_v19 = vmul.f32 %v6264_v3, %v1760_v54  ;;  %v6410_v3 = vmul.f32 0.5, %v6313_v59  ;;  %v2104_v6 = vmul.f32 %v6051_v2, %v6392_v1  ;;  %v6419_v31 = vsel %vm1852_vm8, 0.0, %v6301_v41 }
 0x293   : > { %v4267_v63 = vpop.eup %4266  ;;  %v1779_v17 = vmul.f32 %v6269_v27, %v1747_v10  ;;  %v2048_v28 = vsel %vm1067_vm4, %v1982_v60, 0.0  ;;  %8305 = vst [vmem:[#allocation45_spill] sm:$0xff] %v6419_v31  ;;  %v8306_v27 = vld [vmem:[#allocation18_spill] sm:$0xff]  ;;  %v2187_v59 = vsel %vm1067_vm4, %v2121_v49, 0.0  ;;  %v1965_v22 = vmul.f32 %v6392_v1, %v6392_v1 }
 0x294   : > { %v4269_v25 = vpop.eup %4268  ;;  %v6413_v50 = vmul.f32 %v1792_v19, %v8304_v23  ;;  %v1714_v36 = vmin.f32 %v4267_v63, 0.996  ;;  %2049 = vadd.xlane.f32.xlu1 %v2048_v28  ;;  %v6430_v19 = vmul.f32 0.5, %v1577_v62  ;;  %v6433_v61 = vmul.f32 0.6931472, %v6180_v4  ;;  %v8308_v28 = vld [vmem:[#allocation63_spill] sm:$0xff] }
 0x295   : > { %v6422_v16 = vmul.f32 %v8306_v27, %v1779_v17  ;;  %v1731_v54 = vmin.f32 %v4269_v25, 0.996  ;;  %v6425_v47 = vpop.eup %4270  ;;  %vm1855_vm10 = vcmp.lt.f32.partialorder %v6082_v58, 1e-30  ;;  %2188 = vadd.xlane.f32.xlu0 %v2187_v59  ;;  %v6444_v25 = vpop.xlane.xlu1 %1102  ;;  %v2136_v4 = vsel %vm1067_vm4, %v2104_v6, 0.0 }
 0x296   : > { %v1746_v10 = vmul.f32 %v1714_v36, %v8270_v9  ;;  %v1237_v63 = vmul.f32 %v6425_v47, %v1173_v18  ;;  %8307 = vst [vmem:[#allocation41_spill] sm:$0xff] %v6444_v25  ;;  %v2120_v23 = vmul.f32 %v6051_v2, %v6419_v31  ;;  %v6455_v59 = vpop.xlane.xlu0 %1099  ;;  %vm1854_vm12 = vcmp.lt.f32.partialorder %v6090_v40, 1e-30 }
 0x297   : > { %v1763_v60 = vmul.f32 %v1731_v54, %v8270_v9  ;;  %8309 = vst [vmem:[#allocation6_spill] sm:$0xff] %v6455_v59  ;;  %v8044_v46 = vmax.f32 %v6455_v59, 1e-30  ;;  %v6522_v58 = vsel %vm1838_vm11, 0.0, %v6327_v38  ;;  %vm1857_vm14 = vcmp.lt.f32.partialorder %v6149_v34, 1e-30 }
 0x298   : > { %v4273_v41 = vpop.eup %4272  ;;  %v1778_v62 = vmul.f32 %v6286_v32, %v1746_v10  ;;  %v1301_v27 = vmul.f32 %v8308_v28, %v1237_v63  ;;  %v8310_v10 = vld [vmem:[#allocation27_spill] sm:$0xff]  ;;  %2137 = vadd.xlane.f32.xlu1 %v2136_v4  ;;  %v8314_v4 = vmax.f32 %v6444_v25, 1e-30  ;;  %v2184_v45 = vsel %vm1067_vm4, %v2120_v23, 0.0  ;;  %8323 = vst [vmem:[#allocation10_spill] sm:$0xff] %v6522_v58 }
 0x299   : > { %v6441_v17 = vpop.eup %4274  ;;  %v1730_v49 = vmin.f32 %v4273_v41, 0.996  ;;  %v1795_v36 = vmul.f32 %v6290_v57, %v1763_v60  ;;  %v1997_v57 = vsel %vm1067_vm4, %v1965_v22, 0.0  ;;  %v8311_v60 = vld [vmem:[#allocation26_spill] sm:$0xff]  ;;  %v8312_v28 = vld [vmem:[#allocation55_spill] sm:$0xff] }
 0x29a   : > { %v1236_v18 = vmul.f32 %v6441_v17, %v1172_v14  ;;  %v6457_v32 = vpop.eup %4276  ;;  %v6460_v41 = vmul.f32 %v1778_v62, %v8310_v10  ;;  %v1653_v14 = vmul.f32 %v6140_v52, %v1301_v27  ;;  %1998 = vadd.xlane.f32.xlu0 %v1997_v57  ;;  %4280 = vrsqrt.f32 %v8314_v4  ;;  %v6483_v52 = vpop.xlane.xlu1 %1150  ;;  %v8316_v27 = vld [vmem:[#allocation62_spill] sm:$0xff] }
 0x29b   : > { %v1762_v6 = vmul.f32 %v1730_v49, %v8270_v9  ;;  %v6466_v63 = vmul.f32 %v8311_v60, %v1795_v36  ;;  %v1253_v1 = vmul.f32 %v6457_v32, %v1189_v24  ;;  %v6473_v62 = vpop.eup %4278  ;;  %v6478_v49 = vsel %vm1839_vm9, 0.0, %v6318_v53  ;;  %8315 = vst [vmem:[#allocation44_spill] sm:$0xff] %v6483_v52  ;;  %v6489_v10 = vpop.xlane.xlu0 %1147  ;;  %v8318_v53 = vld [vmem:[#allocation28_spill] sm:$0xff] }
 0x29c   : > { %v1300_v54 = vmul.f32 %v8312_v28, %v1236_v18  ;;  %8313 = vst [vmem:[#allocation8_spill] sm:$0xff] %v6478_v49  ;;  %v1981_v36 = vmul.f32 %v6419_v31, %v6419_v31  ;;  %4282 = vtanh.f32 %v1653_v14  ;;  %8317 = vst [vmem:[#allocation43_spill] sm:$0xff] %v6489_v10  ;;  %v8043_v60 = vmax.f32 %v6483_v52, 1e-30  ;;  %2185 = vadd.xlane.f32.xlu1 %v2184_v45  ;;  %v8321_v14 = vld [vmem:[#allocation54_spill] sm:$0xff] }
 0x29d   : > { %v1794_v22 = vmul.f32 %v6315_v43, %v1762_v6  ;;  %v1317_v18 = vmul.f32 %v8316_v27, %v1253_v1  ;;  %v8319_v43 = vmax.f32 %v6369_v55, 1e-30  ;;  %4284 = vrsqrt.f32 %v8044_v46 }
 0x29e   : > { %v1652_v24 = vmul.f32 %v6142_v5, %v1300_v54  ;;  %v8042_v1 = vmax.f32 %v6489_v10, 1e-30  ;;  %v1968_v23 = vmul.f32 %v6478_v49, %v6478_v49  ;;  %v6509_v54 = vsel %vm1855_vm10, 0.0, %v6344_v39  ;;  %v8324_v39 = vld [vmem:[#allocation64_spill] sm:$0xff] }
 0x29f   : > { %v6493_v57 = vmul.f32 %v1794_v22, %v8318_v53  ;;  %v1252_v6 = vmul.f32 %v6473_v62, %v8319_v43  ;;  %v1669_v5 = vmul.f32 %v6159_v15, %v1317_v18  ;;  %8320 = vst [vmem:[#allocation52_spill] sm:$0xff] %v6509_v54  ;;  %v6514_v22 = vpop.xlane.xlu1 %1108  ;;  %v6518_v4 = vpop.xlane.xlu0 %1105  ;;  %v2045_v13 = vsel %vm1067_vm4, %v1981_v36, 0.0  ;;  %v8326_v43 = vld [vmem:[#allocation36_spill] sm:$0xff] }
 0x2a0   : > { %4286 = vtanh.f32 %v1652_v24  ;;  %8322 = vst [vmem:[#allocation7_spill] sm:$0xff] %v6514_v22  ;;  %v8041_v15 = vmax.f32 %v6514_v22, 1e-30  ;;  %v8040_v27 = vmax.f32 %v6518_v4, 1e-30  ;;  %2046 = vadd.xlane.f32.xlu0 %v2045_v13  ;;  %v2006_v40 = vsel %vm1067_vm4, %v1968_v23, 0.0 }
 0x2a1   : > { %v1316_v28 = vmul.f32 %v8321_v14, %v1252_v6  ;;  %4288 = vrsqrt.f32 %v8043_v60  ;;  %v2107_v18 = vmul.f32 %v6051_v2, %v6478_v49  ;;  %v1984_v38 = vmul.f32 %v6509_v54, %v6509_v54  ;;  %2007 = vadd.xlane.f32.xlu1 %v2006_v40  ;;  %v8327_v13 = vld [vmem:[#allocation60_spill] sm:$0xff] }
 0x2a2   : > { %4290 = vtanh.f32 %v1669_v5  ;;  %v6536_v36 = vsel %vm1854_vm12, 0.0, %v6349_v33  ;;  %v2123_v53 = vmul.f32 %v6051_v2, %v6509_v54  ;;  %v6543_v6 = vmul.f32 0.6931472, %v8326_v43 }
 0x2a3   : > { %v1668_v24 = vmul.f32 %v8324_v39, %v1316_v28  ;;  %4292 = vrsqrt.f32 %v8042_v1  ;;  %8325 = vst [vmem:[#allocation9_spill] sm:$0xff] %v6536_v36  ;;  %v6538_v45 = vpop.xlane.xlu1 %1156  ;;  %v6548_v23 = vpop.xlane.xlu0 %1153  ;;  %v2145_v33 = vsel %vm1067_vm4, %v2107_v18, 0.0  ;;  %v2106_v14 = vmul.f32 %v6051_v2, %v6522_v58 }
 0x2a4   : > { %4294 = vrsqrt.f32 %v8041_v15  ;;  %v8045_v5 = vmax.f32 %v6538_v45, 1e-30  ;;  %v6553_v28 = vpop.eup %4280  ;;  %vm1841_vm13 = vcmp.lt.f32.partialorder %v8327_v13, 1e-30  ;;  %v8048_v39 = vmax.f32 %v6548_v23, 1e-30  ;;  %2146 = vadd.xlane.f32.xlu0 %v2145_v33 }
 0x2a5   : > { %4296 = vtanh.f32 %v1668_v24  ;;  %v6558_v24 = vmul.f32 0.5, %v6433_v61  ;;  %v1967_v40 = vmul.f32 %v6522_v58, %v6522_v58  ;;  %v8328_v18 = vmax.f32 %v6444_v25, 1e-30 }
 0x2a6   : > { %4298 = vrsqrt.f32 %v8040_v27  ;;  %v4283_v43 = vpop.eup %4282  ;;  %v6563_v27 = vsel %vm1841_vm13, 0.0, %v6366_v11  ;;  %v2054_v13 = vsel %vm1067_vm4, %v1984_v38, 0.0  ;;  %v2122_v11 = vmul.f32 %v6051_v2, %v6536_v36 }
 0x2a7   : > { %v1239_v15 = vmul.f32 %v6553_v28, %v8328_v18  ;;  %4300 = vrsqrt.f32 %v8045_v5  ;;  %v6571_v33 = vpop.eup %4284  ;;  %v1717_v61 = vmin.f32 %v4283_v43, 0.996  ;;  %2055 = vadd.xlane.f32.xlu1 %v2054_v13  ;;  %v1983_v1 = vmul.f32 %v6536_v36, %v6536_v36  ;;  %v8329_v18 = vld [vmem:[#allocation68_spill] sm:$0xff] }
 0x2a8   : > { %4302 = vrsqrt.f32 %v8048_v39  ;;  %v8330_v5 = vmax.f32 %v6455_v59, 1e-30  ;;  %v2193_v58 = vsel %vm1067_vm4, %v2123_v53, 0.0  ;;  %v2142_v43 = vsel %vm1067_vm4, %v2106_v14, 0.0 }
 0x2a9   : > { %v1303_v46 = vmul.f32 %v8329_v18, %v1239_v15  ;;  %v1749_v13 = vmul.f32 %v1717_v61, %v8270_v9  ;;  %2194 = vadd.xlane.f32.xlu0 %v2193_v58  ;;  %v2003_v49 = vsel %vm1067_vm4, %v1967_v40, 0.0  ;;  %v1970_v36 = vmul.f32 %v6563_v27, %v6563_v27  ;;  %v8331_v18 = vld [vmem:[#allocation59_spill] sm:$0xff] }
 0x2aa   : > { %v4287_v60 = vpop.eup %4286  ;;  %v1238_v38 = vmul.f32 %v6571_v33, %v8330_v5  ;;  %v8333_v53 = vmax.f32 %v6483_v52, 1e-30  ;;  %v2190_v29 = vsel %vm1067_vm4, %v2122_v11, 0.0  ;;  %v2051_v61 = vsel %vm1067_vm4, %v1983_v1, 0.0  ;;  %v8341_v52 = vld [vmem:[#allocation65_spill] sm:$0xff] }
 0x2ab   : > { %v6585_v54 = vpop.eup %4288  ;;  %v1716_v39 = vmin.f32 %v4287_v60, 0.996  ;;  %v1655_v31 = vmul.f32 %v8331_v18, %v1303_v46  ;;  %v1781_v60 = vmul.f32 %v6425_v47, %v1749_v13  ;;  %2143 = vadd.xlane.f32.xlu1 %v2142_v43  ;;  %v8336_v11 = vmax.f32 %v6489_v10, 1e-30  ;;  %v6610_v47 = vpop.xlane.xlu1 %1114  ;;  %v8337_v13 = vld [vmem:[#allocation31_spill] sm:$0xff] }
 0x2ac   : > { %v4291_v15 = vpop.eup %4290  ;;  %v1302_v5 = vmul.f32 %v8332_v44, %v1238_v38  ;;  %v1255_v14 = vmul.f32 %v6585_v54, %v8333_v53  ;;  %v8334_v44 = vld [vmem:[#allocation21_spill] sm:$0xff]  ;;  %v8335_v38 = vld [vmem:[#allocation67_spill] sm:$0xff]  ;;  %vm1856_vm0 = vcmp.lt.f32.partialorder %v6157_v42, 1e-30  ;;  %vm1842_vm2 = vcmp.lt.f32.partialorder %v6193_v0, 1e-30 }
 0x2ad   : > { %v6597_v59 = vpop.eup %4292  ;;  %v1748_v58 = vmul.f32 %v1716_v39, %v8270_v9  ;;  %v1733_v40 = vmin.f32 %v4291_v15, 0.996  ;;  %4304 = vtanh.f32 %v1655_v31  ;;  %v6613_v43 = vmul.f32 %v8337_v13, %v1781_v60  ;;  %2004 = vadd.xlane.f32.xlu0 %v2003_v49  ;;  %v6625_v13 = vpop.xlane.xlu0 %1111 }
 0x2ae   : > { %v6602_v25 = vpop.eup %4294  ;;  %v1654_v46 = vmul.f32 %v8334_v44, %v1302_v5  ;;  %v1319_v18 = vmul.f32 %v8335_v38, %v1255_v14  ;;  %v1254_v53 = vmul.f32 %v6597_v59, %v8336_v11  ;;  %v8338_v31 = vmax.f32 %v6514_v22, 1e-30  ;;  %v8339_v44 = vld [vmem:[#allocation57_spill] sm:$0xff]  ;;  %v8343_v22 = vld [vmem:[#allocation72_spill] sm:$0xff] }
 0x2af   : > { %v4297_v39 = vpop.eup %4296  ;;  %v1780_v1 = vmul.f32 %v6441_v17, %v1748_v58  ;;  %v1765_v15 = vmul.f32 %v1733_v40, %v8270_v9  ;;  %vm1840_vm15 = vcmp.lt.f32.partialorder %v8339_v44, 1e-30  ;;  %v8340_v11 = vld [vmem:[#allocation61_spill] sm:$0xff]  ;;  %v8342_v17 = vld [vmem:[#allocation32_spill] sm:$0xff]  ;;  %v1179_v49 = vmax.f32 %v6610_v47, 1e-30  ;;  %2191 = vadd.xlane.f32.xlu1 %v2190_v29 }
 0x2b0   : > { %v1241_v5 = vmul.f32 %v6602_v25, %v8338_v31  ;;  %v6620_v14 = vpop.eup %4298  ;;  %v1732_v38 = vmin.f32 %v4297_v39, 0.996  ;;  %4306 = vtanh.f32 %v1654_v46  ;;  %v1671_v10 = vmul.f32 %v8340_v11, %v1319_v18 }
 0x2b1   : > { %v1318_v60 = vmul.f32 %v8341_v52, %v1254_v53  ;;  %v6628_v58 = vmul.f32 %v1780_v1, %v8342_v17  ;;  %v1797_v40 = vmul.f32 %v6457_v32, %v1765_v15  ;;  %v6633_v55 = vpop.eup %4300  ;;  %v8344_v52 = vmax.f32 %v6518_v4, 1e-30  ;;  %v8345_v1 = vld [vmem:[#allocation29_spill] sm:$0xff]  ;;  %2052 = vadd.xlane.f32.xlu0 %v2051_v61  ;;  %v8350_v61 = vld [vmem:[#allocation30_spill] sm:$0xff] }
 0x2b2   : > { %v1305_v31 = vmul.f32 %v8343_v22, %v1241_v5  ;;  %v1764_v46 = vmul.f32 %v1732_v38, %v8270_v9  ;;  %4308 = vtanh.f32 %v1671_v10  ;;  %v6640_v39 = vpop.eup %4302  ;;  %v8346_v29 = vmax.f32 %v6538_v45, 1e-30  ;;  %v8347_v5 = vld [vmem:[#allocation70_spill] sm:$0xff] }
 0x2b3   : > { %v1670_v18 = vmul.f32 %v6243_v51, %v1318_v60  ;;  %v1240_v53 = vmul.f32 %v6620_v14, %v8344_v52  ;;  %v6643_v32 = vmul.f32 %v8345_v1, %v1797_v40  ;;  %v2012_v10 = vsel %vm1067_vm4, %v1970_v36, 0.0  ;;  %v6657_v40 = vpop.xlane.xlu1 %1162  ;;  %v6668_v52 = vpop.xlane.xlu0 %1159  ;;  %v8352_v1 = vld [vmem:[#allocation24_spill] sm:$0xff] }
 0x2b4   : > { %v1657_v22 = vmul.f32 %v6267_v8, %v1305_v31  ;;  %v1257_v15 = vmul.f32 %v6633_v55, %v8346_v29  ;;  %v1796_v51 = vmul.f32 %v6473_v62, %v1764_v46  ;;  %v8348_v11 = vmax.f32 %v6548_v23, 1e-30  ;;  %v8349_v8 = vld [vmem:[#allocation71_spill] sm:$0xff]  ;;  %2013 = vadd.xlane.f32.xlu1 %v2012_v10  ;;  %v8351_v46 = vld [vmem:[#allocation69_spill] sm:$0xff] }
 0x2b5   : > { %4310 = vtanh.f32 %v1670_v18  ;;  %v1304_v38 = vmul.f32 %v8347_v5, %v1240_v53  ;;  %v2109_v36 = vmul.f32 %v6051_v2, %v6563_v27  ;;  %v6673_v53 = vsel %vm1857_vm14, 0.0, %v6395_v7 }
 0x2b6   : > { %v1256_v60 = vmul.f32 %v6640_v39, %v8348_v11  ;;  %4312 = vtanh.f32 %v1657_v22  ;;  %v1321_v17 = vmul.f32 %v8349_v8, %v1257_v15  ;;  %v6662_v62 = vmul.f32 %v1796_v51, %v8350_v61 }
 0x2b7   : > { %v1656_v31 = vmul.f32 %v6281_v48, %v1304_v38  ;;  %4314 = vrsqrt.f32 %v1179_v49  ;;  %vm1843_vm1 = vcmp.lt.f32.partialorder %v8352_v1, 1e-30  ;;  %v1178_v29 = vmax.f32 %v6625_v13, 1e-30  ;;  %v4305_v15 = vpop.eup %4304 }
 0x2b8   : > { %v1320_v18 = vmul.f32 %v8351_v46, %v1256_v60  ;;  %v1673_v22 = vmul.f32 %v6309_v26, %v1321_v17  ;;  %v1195_v10 = vmax.f32 %v6657_v40, 1e-30  ;;  %v6684_v34 = vsel %vm1840_vm15, 0.0, %v6374_v20 }
 0x2b9   : > { %4316 = vtanh.f32 %v1656_v31  ;;  %v1719_v7 = vmin.f32 %v4305_v15, 0.996  ;;  %v1194_v51 = vmax.f32 %v6668_v52, 1e-30  ;;  %v2151_v5 = vsel %vm1067_vm4, %v2109_v36, 0.0  ;;  %v8353_v15 = vld [vmem:[#allocation22_spill] sm:$0xff] }
 0x2ba   : > { %v1672_v48 = vmul.f32 %v6352_v56, %v1320_v18  ;;  %4318 = vtanh.f32 %v1673_v22  ;;  %v4307_v26 = vpop.eup %4306  ;;  %v1986_v38 = vmul.f32 %v6673_v53, %v6673_v53  ;;  %v2125_v56 = vmul.f32 %v6051_v2, %v6673_v53  ;;  %2152 = vadd.xlane.f32.xlu0 %v2151_v5 }
 0x2bb   : > { %v6695_v44 = vsel %vm1856_vm0, 0.0, %v6413_v50  ;;  %v1751_v20 = vmul.f32 %v1719_v7, %v8270_v9  ;;  %v1718_v11 = vmin.f32 %v4307_v26, 0.996  ;;  %vm1859_vm3 = vcmp.lt.f32.partialorder %v6214_v37, 1e-30 }
 0x2bc   : > { %4320 = vtanh.f32 %v1672_v48  ;;  %v4309_v60 = vpop.eup %4308  ;;  %v2060_v8 = vsel %vm1067_vm4, %v1986_v38, 0.0  ;;  %v2108_v42 = vmul.f32 %v6051_v2, %v6684_v34  ;;  %v6713_v31 = vsel %vm1843_vm1, 0.0, %v6422_v16 }
 0x2bd   : > { %4322 = vrsqrt.f32 %v1178_v29  ;;  %v1783_v50 = vmul.f32 %v6553_v28, %v1751_v20  ;;  %v1750_v17 = vmul.f32 %v1718_v11, %v8270_v9  ;;  %v1735_v36 = vmin.f32 %v4309_v60, 0.996  ;;  %2061 = vadd.xlane.f32.xlu1 %v2060_v8 }
 0x2be   : > { %4324 = vrsqrt.f32 %v1195_v10  ;;  %v2199_v46 = vsel %vm1067_vm4, %v2125_v56, 0.0  ;;  %v1969_v18 = vmul.f32 %v6684_v34, %v6684_v34  ;;  %v2124_v28 = vmul.f32 %v6051_v2, %v6695_v44 }
 0x2bf   : > { %4326 = vrsqrt.f32 %v1194_v51  ;;  %v4311_v61 = vpop.eup %4310  ;;  %v6721_v48 = vmul.f32 %v8353_v15, %v1783_v50  ;;  %v1782_v7 = vmul.f32 %v6571_v33, %v1750_v17  ;;  %v1767_v26 = vmul.f32 %v1735_v36, %v8270_v9  ;;  %2200 = vadd.xlane.f32.xlu0 %v2199_v46  ;;  %v8354_v33 = vld [vmem:[#allocation23_spill] sm:$0xff]  ;;  %v8355_v36 = vld [vmem:[#allocation25_spill] sm:$0xff] }
 0x2c0   : > { %v4313_v22 = vpop.eup %4312  ;;  %v1734_v5 = vmin.f32 %v4311_v61, 0.996  ;;  %v6730_v1 = vsel %vm1842_vm2, 0.0, %v6460_v41  ;;  %v6735_v38 = vsel %vm1859_vm3, 0.0, %v6466_v63  ;;  %v2148_v20 = vsel %vm1067_vm4, %v2108_v42, 0.0 }
 0x2c1   : > { %v6725_v16 = vpop.eup %4314  ;;  %v1721_v56 = vmin.f32 %v4313_v22, 0.996  ;;  %v6739_v11 = vmul.f32 %v1782_v7, %v8354_v33  ;;  %v1799_v60 = vmul.f32 %v6585_v54, %v1767_v26  ;;  %2149 = vadd.xlane.f32.xlu1 %v2148_v20  ;;  %v1985_v0 = vmul.f32 %v6695_v44, %v6695_v44 }
 0x2c2   : > { %v1766_v8 = vmul.f32 %v1734_v5, %v8270_v9  ;;  %v1243_v37 = vmul.f32 %v6725_v16, %v1179_v49  ;;  %v2009_v63 = vsel %vm1067_vm4, %v1969_v18, 0.0  ;;  %v2196_v42 = vsel %vm1067_vm4, %v2124_v28, 0.0  ;;  %v8356_v49 = vld [vmem:[#allocation56_spill] sm:$0xff] }
 0x2c3   : > { %v4317_v41 = vpop.eup %4316  ;;  %v1753_v50 = vmul.f32 %v1721_v56, %v8270_v9  ;;  %v6752_v54 = vmul.f32 %v8355_v36, %v1799_v60  ;;  %2010 = vadd.xlane.f32.xlu0 %v2009_v63  ;;  %v1972_v22 = vmul.f32 %v6713_v31, %v6713_v31  ;;  %v2111_v18 = vmul.f32 %v6051_v2, %v6713_v31  ;;  %v8357_v56 = vld [vmem:[#allocation34_spill] sm:$0xff] }
 0x2c4   : > { %v4319_v17 = vpop.eup %4318  ;;  %v1798_v61 = vmul.f32 %v6597_v59, %v1766_v8  ;;  %v1720_v46 = vmin.f32 %v4317_v41, 0.996  ;;  %v1307_v5 = vmul.f32 %v8356_v49, %v1243_v37  ;;  %v2057_v60 = vsel %vm1067_vm4, %v1985_v0, 0.0  ;;  %v8361_v49 = vld [vmem:[#allocation75_spill] sm:$0xff] }
 0x2c5   : > { %v1785_v7 = vmul.f32 %v6602_v25, %v1753_v50  ;;  %v1737_v26 = vmin.f32 %v4319_v17, 0.996  ;;  %2197 = vadd.xlane.f32.xlu1 %v2196_v42  ;;  %v8358_v25 = vld [vmem:[#allocation37_spill] sm:$0xff]  ;;  %vm1858_vm5 = vcmp.lt.f32.partialorder %v6230_v21, 1e-30 }
 0x2c6   : > { %v4321_v15 = vpop.eup %4320  ;;  %v6764_v20 = vmul.f32 %v1798_v61, %v8357_v56  ;;  %v1752_v59 = vmul.f32 %v1720_v46, %v8270_v9  ;;  %v1659_v37 = vmul.f32 %v6410_v3, %v1307_v5  ;;  %v2018_v61 = vsel %vm1067_vm4, %v1972_v22, 0.0  ;;  %v8359_v3 = vld [vmem:[#allocation74_spill] sm:$0xff]  ;;  %v8362_v22 = vld [vmem:[#allocation39_spill] sm:$0xff] }
 0x2c7   : > { %v6761_v28 = vpop.eup %4322  ;;  %v1736_v33 = vmin.f32 %v4321_v15, 0.996  ;;  %v6771_v41 = vmul.f32 %v8358_v25, %v1785_v7  ;;  %v1769_v50 = vmul.f32 %v1737_v26, %v8270_v9  ;;  %2058 = vadd.xlane.f32.xlu0 %v2057_v60  ;;  %v8360_v7 = vld [vmem:[#allocation40_spill] sm:$0xff]  ;;  %v1642_v25 = vmul.f32 0.5, %v6543_v6 }
 0x2c8   : > { %v6768_v8 = vpop.eup %4324  ;;  %v1242_v63 = vmul.f32 %v6761_v28, %v1178_v29  ;;  %v1784_v36 = vmul.f32 %v6620_v14, %v1752_v59  ;;  %4328 = vtanh.f32 %v1659_v37  ;;  %v2157_v29 = vsel %vm1067_vm4, %v2111_v18, 0.0 }
 0x2c9   : > { %v6778_v17 = vpop.eup %4326  ;;  %v1768_v42 = vmul.f32 %v1736_v33, %v8270_v9  ;;  %v1259_v0 = vmul.f32 %v6768_v8, %v1195_v10  ;;  %v1801_v46 = vmul.f32 %v6633_v55, %v1769_v50  ;;  %2019 = vadd.xlane.f32.xlu1 %v2018_v61  ;;  %v1988_v18 = vmul.f32 %v6735_v38, %v6735_v38  ;;  %v8363_v33 = vld [vmem:[#allocation42_spill] sm:$0xff] }
 0x2ca   : > { %v1306_v15 = vmul.f32 %v8359_v3, %v1242_v63  ;;  %v6790_v26 = vmul.f32 %v1784_v36, %v8360_v7  ;;  %v1258_v10 = vmul.f32 %v6778_v17, %v1194_v51  ;;  %v2127_v59 = vmul.f32 %v6051_v2, %v6735_v38  ;;  %v8364_v51 = vld [vmem:[#allocation73_spill] sm:$0xff] }
 0x2cb   : > { %v1800_v14 = vmul.f32 %v6640_v39, %v1768_v42  ;;  %v1323_v5 = vmul.f32 %v8361_v49, %v1259_v0  ;;  %v6798_v56 = vmul.f32 %v8362_v22, %v1801_v46  ;;  %2158 = vadd.xlane.f32.xlu0 %v2157_v29  ;;  %v6814_v37 = vsel %vm1858_vm5, 0.0, %v6493_v57 }
 0x2cc   : > { %v1658_v55 = vmul.f32 %v6430_v19, %v1306_v15  ;;  %v1322_v50 = vmul.f32 %v8364_v51, %v1258_v10  ;;  %v2066_v19 = vsel %vm1067_vm4, %v1988_v18, 0.0  ;;  %v2110_v36 = vmul.f32 %v6051_v2, %v6730_v1 }
 0x2cd   : > { %v6806_v39 = vmul.f32 %v1800_v14, %v8363_v33  ;;  %v1675_v60 = vmul.f32 %v6558_v24, %v1323_v5  ;;  %2067 = vadd.xlane.f32.xlu1 %v2066_v19  ;;  %v2205_v24 = vsel %vm1067_vm4, %v2127_v59, 0.0  ;;  %v1971_v6 = vmul.f32 %v6730_v1, %v6730_v1  ;;  %v8365_v33 = vld [vmem:[#allocation51_spill] sm:$0xff]  ;;  %v8366_v19 = vld [vmem:[#allocation38_spill] sm:$0xff] }
 0x2ce   : > { %4330 = vtanh.f32 %v1658_v55  ;;  %v1674_v63 = vmul.f32 %v1642_v25, %v1322_v50  ;;  %vm1845_vm6 = vcmp.lt.f32.partialorder %v6323_v30, 1e-30  ;;  %v2154_v21 = vsel %vm1067_vm4, %v2110_v36, 0.0 }
 0x2cf   : > { %4332 = vtanh.f32 %v1675_v60  ;;  %2206 = vadd.xlane.f32.xlu0 %v2205_v24  ;;  %v2126_v57 = vmul.f32 %v6051_v2, %v6814_v37  ;;  %v6826_v42 = vsel %vm1845_vm6, 0.0, %v6613_v43  ;;  %v2015_v61 = vsel %vm1067_vm4, %v1971_v6, 0.0 }
 0x2d0   : > { %4334 = vtanh.f32 %v1674_v63  ;;  %v1987_v46 = vmul.f32 %v6814_v37, %v6814_v37  ;;  %vm1861_vm7 = vcmp.lt.f32.partialorder %v6357_v12, 1e-30  ;;  %v1974_v15 = vmul.f32 %v6826_v42, %v6826_v42 }
 0x2d1   : > { %2155 = vadd.xlane.f32.xlu1 %v2154_v21  ;;  %v2202_v30 = vsel %vm1067_vm4, %v2126_v57, 0.0  ;;  %v6836_v29 = vsel %vm1861_vm7, 0.0, %v6643_v32  ;;  %v2113_v49 = vmul.f32 %v6051_v2, %v6826_v42  ;;  %vm1844_vm8 = vcmp.lt.f32.partialorder %v6338_v35, 1e-30  ;;  %v8367_v57 = vld [vmem:[#allocation53_spill] sm:$0xff] }
 0x2d2   : > { %v4329_v0 = vpop.eup %4328  ;;  %v2063_v14 = vsel %vm1067_vm4, %v1987_v46, 0.0  ;;  %v2024_v32 = vsel %vm1067_vm4, %v1974_v15, 0.0  ;;  %v1990_v55 = vmul.f32 %v6836_v29, %v6836_v29  ;;  %v6848_v59 = vsel %vm1844_vm8, 0.0, %v6628_v58  ;;  %v8370_v15 = vld [vmem:[#allocation47_spill] sm:$0xff] }
 0x2d3   : > { %v1723_v3 = vmin.f32 %v4329_v0, 0.996  ;;  %2016 = vadd.xlane.f32.xlu0 %v2015_v61  ;;  %v2163_v35 = vsel %vm1067_vm4, %v2113_v49, 0.0  ;;  %v2129_v50 = vmul.f32 %v6051_v2, %v6836_v29  ;;  %vm1860_vm9 = vcmp.lt.f32.partialorder %v8366_v19, 1e-30  ;;  %v8368_v61 = vld [vmem:[#allocation46_spill] sm:$0xff] }
 0x2d4   : > { %v2072_v24 = vsel %vm1067_vm4, %v1990_v55, 0.0  ;;  %v2112_v6 = vmul.f32 %v6051_v2, %v6848_v59  ;;  %v6866_v21 = vsel %vm1860_vm9, 0.0, %v6662_v62  ;;  %v8372_v55 = vld [vmem:[#allocation6_spill] sm:$0xff]  ;;  %vm1865_vm15 = vcmp.lt.f32.partialorder %v6538_v45, 1e-30 }
 0x2d5   : > { %v1755_v43 = vmul.f32 %v1723_v3, %v8270_v9  ;;  %2203 = vadd.xlane.f32.xlu1 %v2202_v30  ;;  %v1973_v3 = vmul.f32 %v6848_v59, %v6848_v59  ;;  %v8369_v30 = vld [vmem:[#allocation41_spill] sm:$0xff]  ;;  %v1989_v49 = vmul.f32 %v6866_v21, %v6866_v21  ;;  %vm1846_vm12 = vcmp.lt.f32.partialorder %v8372_v55, 1e-30 }
 0x2d6   : > { %vm1847_vm10 = vcmp.lt.f32.partialorder %v8369_v30, 1e-30  ;;  %vm1848_vm0 = vcmp.lt.f32.partialorder %v6518_v4, 1e-30  ;;  %vm1864_vm1 = vcmp.lt.f32.partialorder %v6548_v23, 1e-30 }
 0x2d7   : > { %v1787_v12 = vmul.f32 %v6725_v16, %v1755_v43  ;;  %2064 = vadd.xlane.f32.xlu0 %v2063_v14  ;;  %v2160_v43 = vsel %vm1067_vm4, %v2112_v6, 0.0  ;;  %v6886_v14 = vsel %vm1847_vm10, 0.0, %v6721_v48  ;;  %v2069_v48 = vsel %vm1067_vm4, %v1989_v49, 0.0 }
 0x2d8   : > { %v4331_v7 = vpop.eup %4330  ;;  %vm1851_vm2 = vcmp.lt.f32.partialorder %v6610_v47, 1e-30  ;;  %vm1867_vm3 = vcmp.lt.f32.partialorder %v6657_v40, 1e-30  ;;  %vm1850_vm5 = vcmp.lt.f32.partialorder %v6625_v13, 1e-30 }
 0x2d9   : > { %v4333_v5 = vpop.eup %4332  ;;  %v1722_v10 = vmin.f32 %v4331_v7, 0.996  ;;  %v6851_v60 = vmul.f32 %v8365_v33, %v1787_v12  ;;  %2025 = vadd.xlane.f32.xlu1 %v2024_v32  ;;  %v2128_v7 = vmul.f32 %v6051_v2, %v6866_v21  ;;  %v2115_v32 = vmul.f32 %v6051_v2, %v6886_v14 }
 0x2da   : > { %v1739_v22 = vmin.f32 %v4333_v5, 0.996  ;;  %v4335_v18 = vpop.eup %4334  ;;  %v8371_v5 = vld [vmem:[#allocation44_spill] sm:$0xff]  ;;  %vm1866_vm6 = vcmp.lt.f32.partialorder %v6668_v52, 1e-30 }
 0x2db   : > { %v1754_v25 = vmul.f32 %v1722_v10, %v8270_v9  ;;  %v1738_v51 = vmin.f32 %v4335_v18, 0.996  ;;  %2164 = vadd.xlane.f32.xlu0 %v2163_v35  ;;  %vm1863_vm11 = vcmp.lt.f32.partialorder %v8371_v5, 1e-30  ;;  %v2208_v12 = vsel %vm1067_vm4, %v2128_v7, 0.0 }
 0x2dc   : > { %v1771_v16 = vmul.f32 %v1739_v22, %v8270_v9  ;;  %v1976_v10 = vmul.f32 %v6886_v14, %v6886_v14  ;;  %v6896_v22 = vsel %vm1863_vm11, 0.0, %v6752_v54  ;;  %v2169_v54 = vsel %vm1067_vm4, %v2115_v32, 0.0 }
 0x2dd   : > { %v1786_v63 = vmul.f32 %v6761_v28, %v1754_v25  ;;  %v1770_v36 = vmul.f32 %v1738_v51, %v8270_v9  ;;  %2073 = vadd.xlane.f32.xlu1 %v2072_v24  ;;  %v1992_v33 = vmul.f32 %v6896_v22, %v6896_v22  ;;  %v6906_v25 = vsel %vm1846_vm12, 0.0, %v6739_v11  ;;  %v8373_v51 = vld [vmem:[#allocation43_spill] sm:$0xff] }
 0x2de   : > { %v1803_v58 = vmul.f32 %v6768_v8, %v1771_v16  ;;  %v2211_v8 = vsel %vm1067_vm4, %v2129_v50, 0.0  ;;  %v2030_v18 = vsel %vm1067_vm4, %v1976_v10, 0.0  ;;  %v2131_v16 = vmul.f32 %v6051_v2, %v6896_v22 }
 0x2df   : > { %v6869_v0 = vmul.f32 %v1786_v63, %v8367_v57  ;;  %v1802_v28 = vmul.f32 %v6778_v17, %v1770_v36  ;;  %2212 = vadd.xlane.f32.xlu0 %v2211_v8  ;;  %v2021_v17 = vsel %vm1067_vm4, %v1973_v3, 0.0  ;;  %vm1862_vm13 = vcmp.lt.f32.partialorder %v8373_v51, 1e-30 }
 0x2e0   : > { %v6872_v46 = vmul.f32 %v8368_v61, %v1803_v58  ;;  %v2078_v35 = vsel %vm1067_vm4, %v1992_v33, 0.0  ;;  %v2114_v50 = vmul.f32 %v6051_v2, %v6906_v25  ;;  %v6916_v19 = vsel %vm1862_vm13, 0.0, %v6764_v20  ;;  %v8374_v58 = vld [vmem:[#allocation7_spill] sm:$0xff] }
 0x2e1   : > { %v6880_v62 = vmul.f32 %v1802_v28, %v8370_v15  ;;  %2161 = vadd.xlane.f32.xlu1 %v2160_v43  ;;  %v2217_v11 = vsel %vm1067_vm4, %v2131_v16, 0.0  ;;  %v1975_v63 = vmul.f32 %v6906_v25, %v6906_v25  ;;  %vm1849_vm14 = vcmp.lt.f32.partialorder %v8374_v58, 1e-30 }
 0x2e2   : > { %v2166_v36 = vsel %vm1067_vm4, %v2114_v50, 0.0  ;;  %v2130_v24 = vmul.f32 %v6051_v2, %v6916_v19  ;;  %v6926_v6 = vsel %vm1849_vm14, 0.0, %v6771_v41  ;;  %v1991_v57 = vmul.f32 %v6916_v19, %v6916_v19 }
 0x2e3   : > { %2022 = vadd.xlane.f32.xlu0 %v2021_v17  ;;  %v2027_v20 = vsel %vm1067_vm4, %v1975_v63, 0.0  ;;  %v1978_v28 = vmul.f32 %v6926_v6, %v6926_v6  ;;  %v6936_v8 = vsel %vm1865_vm15, 0.0, %v6798_v56  ;;  %v2117_v3 = vmul.f32 %v6051_v2, %v6926_v6 }
 0x2e4   : > { %v2214_v61 = vsel %vm1067_vm4, %v2130_v24, 0.0  ;;  %v2075_v41 = vsel %vm1067_vm4, %v1991_v57, 0.0  ;;  %v1994_v45 = vmul.f32 %v6936_v8, %v6936_v8  ;;  %v6946_v15 = vsel %vm1848_vm0, 0.0, %v6790_v26  ;;  %v8375_v57 = vld [vmem:[#allocation58_spill] sm:$0xff] }
 0x2e5   : > { %2209 = vadd.xlane.f32.xlu1 %v2208_v12  ;;  %v2036_v30 = vsel %vm1067_vm4, %v1978_v28, 0.0  ;;  %v2175_v56 = vsel %vm1067_vm4, %v2117_v3, 0.0  ;;  %v2133_v43 = vmul.f32 %v6051_v2, %v6936_v8  ;;  %v2116_v4 = vmul.f32 %v6051_v2, %v6946_v15  ;;  %v8377_v28 = vld [vmem:[#allocation76_spill] sm:$0xff] }
 0x2e6   : > { %v2084_v7 = vsel %vm1067_vm4, %v1994_v45, 0.0  ;;  %v6956_v17 = vsel %vm1864_vm1, 0.0, %v6806_v39  ;;  %v1977_v49 = vmul.f32 %v6946_v15, %v6946_v15  ;;  %v6966_v12 = vsel %vm1851_vm2, 0.0, %v6851_v60 }
 0x2e7   : > { %2070 = vadd.xlane.f32.xlu0 %v2069_v48  ;;  %v2223_v26 = vsel %vm1067_vm4, %v2133_v43, 0.0  ;;  %v2172_v5 = vsel %vm1067_vm4, %v2116_v4, 0.0  ;;  %v2132_v23 = vmul.f32 %v6051_v2, %v6956_v17  ;;  %v1993_v10 = vmul.f32 %v6956_v17, %v6956_v17  ;;  %v8378_v4 = vld [vmem:[#allocation5_spill] sm:$0xff] }
 0x2e8   : > { %v2033_v39 = vsel %vm1067_vm4, %v1977_v49, 0.0  ;;  %v1980_v47 = vmul.f32 %v6966_v12, %v6966_v12  ;;  %v6976_v32 = vsel %vm1867_vm3, 0.0, %v6872_v46  ;;  %v2119_v55 = vmul.f32 %v6051_v2, %v6966_v12 }
 0x2e9   : > { %2031 = vadd.xlane.f32.xlu1 %v2030_v18  ;;  %v2220_v48 = vsel %vm1067_vm4, %v2132_v23, 0.0  ;;  %v2081_v60 = vsel %vm1067_vm4, %v1993_v10, 0.0  ;;  %v6983_v18 = vsel %vm1850_vm5, 0.0, %v6869_v0  ;;  %v1996_v33 = vmul.f32 %v6976_v32, %v6976_v32 }
 0x2ea   : > { %v2042_v40 = vsel %vm1067_vm4, %v1980_v47, 0.0  ;;  %v2181_v46 = vsel %vm1067_vm4, %v2119_v55, 0.0  ;;  %v1979_v13 = vmul.f32 %v6983_v18, %v6983_v18  ;;  %v2118_v16 = vmul.f32 %v6051_v2, %v6983_v18 }
 0x2eb   : > { %2170 = vadd.xlane.f32.xlu0 %v2169_v54  ;;  %v6993_v54 = vsel %vm1866_vm6, 0.0, %v6880_v62  ;;  %v2090_v0 = vsel %vm1067_vm4, %v1996_v33, 0.0  ;;  %v7014_v24 = vstv %s2232_s16 }
 0x2ec   : > { %v2039_v51 = vsel %vm1067_vm4, %v1979_v13, 0.0  ;;  %v1995_v52 = vmul.f32 %v6993_v54, %v6993_v54  ;;  %v2134_v62 = vmul.f32 %v6051_v2, %v6993_v54 }
 0x2ed   : > { %2079 = vadd.xlane.f32.xlu1 %v2078_v35  ;;  %v2178_v35 = vsel %vm1067_vm4, %v2118_v16, 0.0 }
 0x2ee   : > { %v2087_v50 = vsel %vm1067_vm4, %v1995_v52, 0.0  ;;  %v2226_v63 = vsel %vm1067_vm4, %v2134_v62, 0.0 }
 0x2ef   : > { %2218 = vadd.xlane.f32.xlu0 %v2217_v11  ;;  %v2135_v11 = vmul.f32 %v6051_v2, %v6976_v32 }
 0x2f1   : > { %2167 = vadd.xlane.f32.xlu1 %v2166_v36  ;;  %v2229_v58 = vsel %vm1067_vm4, %v2135_v11, 0.0  ;;  %v7012_v36 = vstv %s2496_s14 }
 0x2f3   : > { %2028 = vadd.xlane.f32.xlu0 %v2027_v20 }
 0x2f5   : > { %2215 = vadd.xlane.f32.xlu1 %v2214_v61  ;;  %v8376_v61 = vsub.s32 0, %v8375_v57 }
 0x2f7   : > { %2076 = vadd.xlane.f32.xlu0 %v2075_v41  ;;  %v7019_v41 = vrot.slane %v8377_v28, %v8376_v61  ;;  %v8379_v55 = vmov %v8376_v61 }
 0x2f9   : > { %2037 = vadd.xlane.f32.xlu1 %v2036_v30 }
 0x2fb   : > { %2176 = vadd.xlane.f32.xlu0 %v2175_v56 }
 0x2fd   : > { %2085 = vadd.xlane.f32.xlu1 %v2084_v7 }
 0x2ff   : > { %2224 = vadd.xlane.f32.xlu0 %v2223_v26  ;;  %v2299_v26 = vmul.f32 %v8377_v28, %v8378_v4 }
 0x301   : > { %2173 = vadd.xlane.f32.xlu1 %v2172_v5 }
 0x303   : > { %2034 = vadd.xlane.f32.xlu0 %v2033_v39 }
 0x305   : > { %2221 = vadd.xlane.f32.xlu1 %v2220_v48 }
 0x307   : > { %2082 = vadd.xlane.f32.xlu0 %v2081_v60 }
 0x309   : > { %2043 = vadd.xlane.f32.xlu1 %v2042_v40  ;;  %v7031_v40 = vrot.slane %v2299_v26, %v8379_v55 }
 0x30b   : > { %2182 = vadd.xlane.f32.xlu0 %v2181_v46 }
 0x30d   : > { %2091 = vadd.xlane.f32.xlu1 %v2090_v0 }
 0x30f   : > { %2040 = vadd.xlane.f32.xlu0 %v2039_v51 }
 0x311   : > { %2179 = vadd.xlane.f32.xlu1 %v2178_v35 }
 0x313   : > { %2088 = vadd.xlane.f32.xlu0 %v2087_v50 }
 0x315   : > { %2227 = vadd.xlane.f32.xlu1 %v2226_v63 }
 0x317   : > { %2230 = vadd.xlane.f32.xlu0 %v2229_v58 }
 0x31d   : > { %v2002_v20 = vpop.xlane.xlu1 %2001 }
 0x31e   : > { %v2499_v3 = vmul.f32 %v7012_v36, %v2002_v20  ;;  %v2141_v30 = vpop.xlane.xlu0 %2140  ;;  %v2369_v33 = vmul.f32 %v2002_v20, %v8378_v4  ;;  %v8380_v20 = vld [vmem:[#allocation33_spill] sm:$0xff] }
 0x31f   : > { %v2235_v45 = vmul.f32 %v7014_v24, %v2141_v30 }
 0x320   : > { %v2535_v56 = vmul.f32 %v7019_v41, %v2499_v3  ;;  %v2401_v50 = vsub.f32 1.0, %v2369_v33 }
 0x321   : > { %v2267_v43 = vadd.f32 1.0, %v2235_v45  ;;  %v2050_v7 = vpop.xlane.xlu1 %2049 }
 0x322   : > { %v2515_v49 = vmul.f32 %v7012_v36, %v2050_v7  ;;  %v2189_v5 = vpop.xlane.xlu0 %2188  ;;  %v2385_v63 = vmul.f32 %v2050_v7, %v8378_v4  ;;  %v2433_v30 = vmul.f32 %v6051_v2, %v2401_v50 }
 0x323   : > { %v2567_v23 = vadd.f32 %v2535_v56, %v2267_v43  ;;  %v2251_v39 = vmul.f32 %v7014_v24, %v2189_v5  ;;  %v2305_v16 = vadd.f32 %v7031_v40, %v2267_v43 }
 0x324   : > { %v2551_v10 = vmul.f32 %v7019_v41, %v2515_v49  ;;  %v2417_v56 = vsub.f32 1.0, %v2385_v63 }
 0x325   : > { %v2599_v48 = vmax.f32 %v2567_v23, 1e-15  ;;  %v2283_v47 = vadd.f32 1.0, %v2251_v39  ;;  %v2138_v60 = vpop.xlane.xlu1 %2137  ;;  %v2337_v57 = vmul.f32 %v2305_v16, %v8380_v20  ;;  %v8381_v39 = vld [vmem:[#allocation35_spill] sm:$0xff] }
 0x326   : > { %v2234_v46 = vmul.f32 %v7014_v24, %v2138_v60 }
 0x327   : > { %v1999_v13 = vpop.xlane.xlu0 %1998  ;;  %4336 = vrcp.f32 %v2599_v48  ;;  %v2583_v0 = vadd.f32 %v2551_v10, %v2283_v47  ;;  %v2321_v28 = vadd.f32 %v7031_v40, %v2283_v47  ;;  %v2465_v5 = vadd.f32 %v2433_v30, %v2337_v57  ;;  %v8382_v57 = vld [vmem:[#allocation20_spill] sm:$0xff] }
 0x328   : > { %v2266_v51 = vadd.f32 1.0, %v2234_v46  ;;  %v2498_v52 = vmul.f32 %v7012_v36, %v1999_v13  ;;  %v2368_v7 = vmul.f32 %v1999_v13, %v8378_v4 }
 0x329   : > { %v2615_v35 = vmax.f32 %v2583_v0, 1e-15  ;;  %v2186_v62 = vpop.xlane.xlu1 %2185  ;;  %v2353_v10 = vmul.f32 %v2321_v28, %v8381_v39  ;;  %v2449_v0 = vmul.f32 %v6051_v2, %v2417_v56 }
 0x32a   : > { %v2534_v11 = vmul.f32 %v7019_v41, %v2498_v52  ;;  %v2250_v58 = vmul.f32 %v7014_v24, %v2186_v62  ;;  %v2304_v55 = vadd.f32 %v7031_v40, %v2266_v51 }
 0x32b   : > { %4338 = vrcp.f32 %v2615_v35  ;;  %v2400_v35 = vsub.f32 1.0, %v2368_v7 }
 0x32c   : > { %v2566_v61 = vadd.f32 %v2534_v11, %v2266_v51  ;;  %v2282_v43 = vadd.f32 1.0, %v2250_v58  ;;  %v2481_v11 = vadd.f32 %v2449_v0, %v2353_v10 }
 0x32d   : > { %v2047_v3 = vpop.xlane.xlu0 %2046 }
 0x32e   : > { %v2598_v45 = vmax.f32 %v2566_v61, 1e-15  ;;  %v2514_v26 = vmul.f32 %v7012_v36, %v2047_v3  ;;  %v2008_v49 = vpop.xlane.xlu1 %2007  ;;  %v2336_v61 = vmul.f32 %v2304_v55, %v8382_v57  ;;  %v2384_v28 = vmul.f32 %v2047_v3, %v8378_v4 }
 0x32f   : > { %v2501_v47 = vmul.f32 %v7012_v36, %v2008_v49  ;;  %v2371_v39 = vmul.f32 %v2008_v49, %v8378_v4  ;;  %v2432_v3 = vmul.f32 %v6051_v2, %v2400_v35  ;;  %v8383_v35 = vld [vmem:[#allocation45_spill] sm:$0xff] }
 0x330   : > { %4340 = vrcp.f32 %v2598_v45  ;;  %v2550_v48 = vmul.f32 %v7019_v41, %v2514_v26  ;;  %v2416_v0 = vsub.f32 1.0, %v2384_v28 }
 0x331   : > { %v4337_v23 = vpop.eup %4336  ;;  %v2147_v60 = vpop.xlane.xlu0 %2146  ;;  %v2537_v13 = vmul.f32 %v7019_v41, %v2501_v47 }
 0x332   : > { %v2237_v33 = vmul.f32 %v7014_v24, %v2147_v60  ;;  %v7050_v46 = vmul.f32 %v4337_v23, %v2465_v5  ;;  %v2582_v16 = vadd.f32 %v2550_v48, %v2282_v43  ;;  %v2320_v23 = vadd.f32 %v7031_v40, %v2282_v43 }
 0x333   : > { %v2464_v43 = vadd.f32 %v2432_v3, %v2336_v61  ;;  %v2448_v61 = vmul.f32 %v6051_v2, %v2416_v0 }
 0x334   : > { %v2056_v52 = vpop.xlane.xlu1 %2055  ;;  %v2269_v62 = vadd.f32 1.0, %v2237_v33  ;;  %v2614_v63 = vmax.f32 %v2582_v16, 1e-15  ;;  %v2695_v51 = vmul.f32 %v7050_v46, %v7050_v46 }
 0x335   : > { %v4339_v50 = vpop.eup %4338  ;;  %v2517_v58 = vmul.f32 %v7012_v36, %v2056_v52  ;;  %v2387_v28 = vmul.f32 %v2056_v52, %v8378_v4 }
 0x336   : > { %v2195_v20 = vpop.xlane.xlu0 %2194  ;;  %v2569_v30 = vadd.f32 %v2537_v13, %v2269_v62  ;;  %4342 = vrcp.f32 %v2614_v63  ;;  %v2729_v5 = vsel %vm1067_vm4, %v2695_v51, 0.0  ;;  %v7062_v7 = vmul.f32 %v4339_v50, %v2481_v11 }
 0x337   : > { %v2253_v45 = vmul.f32 %v7014_v24, %v2195_v20  ;;  %v2553_v56 = vmul.f32 %v7019_v41, %v2517_v58  ;;  %2730 = vadd.xlane.f32.xlu0 %v2729_v5  ;;  %v2307_v16 = vadd.f32 %v7031_v40, %v2269_v62  ;;  %v2352_v58 = vmul.f32 %v2320_v23, %v8383_v35 }
 0x338   : > { %v2144_v26 = vpop.xlane.xlu1 %2143  ;;  %v2601_v10 = vmax.f32 %v2569_v30, 1e-15  ;;  %v2711_v55 = vmul.f32 %v7062_v7, %v7062_v7  ;;  %v2403_v20 = vsub.f32 1.0, %v2371_v39 }
 0x339   : > { %v2285_v48 = vadd.f32 1.0, %v2253_v45  ;;  %v2236_v47 = vmul.f32 %v7014_v24, %v2144_v26 }
 0x33a   : > { %v2005_v60 = vpop.xlane.xlu0 %2004  ;;  %v4341_v33 = vpop.eup %4340  ;;  %4344 = vrcp.f32 %v2601_v10  ;;  %v2777_v63 = vsel %vm1067_vm4, %v2711_v55, 0.0  ;;  %v2435_v52 = vmul.f32 %v6051_v2, %v2403_v20 }
 0x33b   : > { %v2585_v13 = vadd.f32 %v2553_v56, %v2285_v48  ;;  %v2268_v50 = vadd.f32 1.0, %v2236_v47  ;;  %v2500_v49 = vmul.f32 %v7012_v36, %v2005_v60  ;;  %2778 = vadd.xlane.f32.xlu0 %v2777_v63  ;;  %v7077_v45 = vmul.f32 %v4341_v33, %v2464_v43  ;;  %v8384_v56 = vld [vmem:[#allocation8_spill] sm:$0xff] }
 0x33c   : > { %v2192_v11 = vpop.xlane.xlu1 %2191  ;;  %v2339_v26 = vmul.f32 %v2307_v16, %v8384_v56  ;;  %v2323_v5 = vadd.f32 %v7031_v40, %v2285_v48  ;;  %v2480_v47 = vadd.f32 %v2448_v61, %v2352_v58  ;;  %v8385_v43 = vld [vmem:[#allocation52_spill] sm:$0xff] }
 0x33d   : > { %v2617_v51 = vmax.f32 %v2585_v13, 1e-15  ;;  %v2252_v57 = vmul.f32 %v7014_v24, %v2192_v11  ;;  %v2536_v62 = vmul.f32 %v7019_v41, %v2500_v49  ;;  %v2419_v13 = vsub.f32 1.0, %v2387_v28 }
 0x33e   : > { %v2053_v30 = vpop.xlane.xlu0 %2052  ;;  %v2694_v0 = vmul.f32 %v7077_v45, %v7077_v45  ;;  %v2467_v16 = vadd.f32 %v2435_v52, %v2339_v26  ;;  %v2355_v48 = vmul.f32 %v2323_v5, %v8385_v43  ;;  %v2370_v11 = vmul.f32 %v2005_v60, %v8378_v4 }
 0x33f   : > { %4346 = vrcp.f32 %v2617_v51  ;;  %v2568_v23 = vadd.f32 %v2536_v62, %v2268_v50  ;;  %v2284_v39 = vadd.f32 1.0, %v2252_v57  ;;  %v2516_v10 = vmul.f32 %v7012_v36, %v2053_v30 }
 0x340   : > { %v4343_v55 = vpop.eup %4342  ;;  %v2726_v58 = vsel %vm1067_vm4, %v2694_v0, 0.0  ;;  %v2451_v57 = vmul.f32 %v6051_v2, %v2419_v13  ;;  %v2306_v28 = vadd.f32 %v7031_v40, %v2268_v50 }
 0x341   : > { %v2014_v3 = vpop.xlane.xlu1 %2013  ;;  %v2600_v49 = vmax.f32 %v2568_v23, 1e-15  ;;  %v2552_v33 = vmul.f32 %v7019_v41, %v2516_v10  ;;  %v7091_v20 = vmul.f32 %v4343_v55, %v2480_v47  ;;  %2727 = vadd.xlane.f32.xlu1 %v2726_v58  ;;  %v2402_v10 = vsub.f32 1.0, %v2370_v11 }
 0x342   : > { %v2503_v63 = vmul.f32 %v7012_v36, %v2014_v3  ;;  %v2483_v23 = vadd.f32 %v2451_v57, %v2355_v48  ;;  %v2386_v48 = vmul.f32 %v2053_v30, %v8378_v4 }
 0x343   : > { %4348 = vrcp.f32 %v2600_v49  ;;  %v2584_v35 = vadd.f32 %v2552_v33, %v2284_v39  ;;  %v2710_v61 = vmul.f32 %v7091_v20, %v7091_v20  ;;  %v8386_v33 = vld [vmem:[#allocation10_spill] sm:$0xff] }
 0x344   : > { %v4345_v51 = vpop.eup %4344  ;;  %v2539_v26 = vmul.f32 %v7019_v41, %v2503_v63  ;;  %v2338_v0 = vmul.f32 %v2306_v28, %v8386_v33 }
 0x345   : > { %v7097_v56 = vmul.f32 %v4345_v51, %v2467_v16  ;;  %v2616_v60 = vmax.f32 %v2584_v35, 1e-15  ;;  %v2774_v52 = vsel %vm1067_vm4, %v2710_v61, 0.0  ;;  %v2434_v35 = vmul.f32 %v6051_v2, %v2402_v10 }
 0x346   : > { %2775 = vadd.xlane.f32.xlu1 %v2774_v52 }
 0x347   : > { %v2153_v62 = vpop.xlane.xlu0 %2152  ;;  %v2697_v55 = vmul.f32 %v7097_v56, %v7097_v56  ;;  %4350 = vrcp.f32 %v2616_v60  ;;  %v2466_v30 = vadd.f32 %v2434_v35, %v2338_v0  ;;  %v2373_v60 = vmul.f32 %v2014_v3, %v8378_v4 }
 0x348   : > { %v2239_v5 = vmul.f32 %v7014_v24, %v2153_v62  ;;  %v2322_v62 = vadd.f32 %v7031_v40, %v2284_v39 }
 0x349   : > { %v4347_v50 = vpop.eup %4346  ;;  %v2735_v43 = vsel %vm1067_vm4, %v2697_v55, 0.0  ;;  %v2418_v55 = vsub.f32 1.0, %v2386_v48 }
 0x34a   : > { %v2062_v47 = vpop.xlane.xlu1 %2061  ;;  %v2271_v13 = vadd.f32 1.0, %v2239_v5  ;;  %v7107_v63 = vmul.f32 %v4347_v50, %v2483_v23  ;;  %2736 = vadd.xlane.f32.xlu0 %v2735_v43 }
 0x34b   : > { %v2519_v49 = vmul.f32 %v7012_v36, %v2062_v47  ;;  %v2389_v3 = vmul.f32 %v2062_v47, %v8378_v4 }
 0x34c   : > { %v2201_v16 = vpop.xlane.xlu0 %2200  ;;  %8387 = vst [vmem:[#allocation49_spill] sm:$0xff] %v7107_v63  ;;  %v2571_v11 = vadd.f32 %v2539_v26, %v2271_v13  ;;  %v2713_v28 = vmul.f32 %v7107_v63, %v7107_v63  ;;  %v2309_v50 = vadd.f32 %v7031_v40, %v2271_v13 }
 0x34d   : > { %v2555_v58 = vmul.f32 %v7019_v41, %v2519_v49  ;;  %v2255_v51 = vmul.f32 %v7014_v24, %v2201_v16  ;;  %v4349_v23 = vpop.eup %4348 }
 0x34e   : > { %v2150_v57 = vpop.xlane.xlu1 %2149  ;;  %v2603_v61 = vmax.f32 %v2571_v11, 1e-15  ;;  %v2783_v10 = vsel %vm1067_vm4, %v2713_v28, 0.0  ;;  %v7121_v43 = vmul.f32 %v4349_v23, %v2466_v30  ;;  %v8389_v11 = vld [vmem:[#allocation9_spill] sm:$0xff]  ;;  %v2450_v28 = vmul.f32 %v6051_v2, %v2418_v55 }
 0x34f   : > { %v2238_v5 = vmul.f32 %v7014_v24, %v2150_v57  ;;  %v2287_v26 = vadd.f32 1.0, %v2255_v51  ;;  %2784 = vadd.xlane.f32.xlu0 %v2783_v10  ;;  %v2354_v0 = vmul.f32 %v2322_v62, %v8389_v11  ;;  %v2405_v51 = vsub.f32 1.0, %v2373_v60 }
 0x350   : > { %v2011_v52 = vpop.xlane.xlu0 %2010  ;;  %4352 = vrcp.f32 %v2603_v61  ;;  %8388 = vst [vmem:[#allocation50_spill] sm:$0xff] %v7121_v43  ;;  %v2341_v61 = vmul.f32 %v2309_v50, %v6563_v27  ;;  %v2421_v60 = vsub.f32 1.0, %v2389_v3 }
 0x351   : > { %v2587_v49 = vadd.f32 %v2555_v58, %v2287_v26  ;;  %v2270_v33 = vadd.f32 1.0, %v2238_v5  ;;  %v2502_v39 = vmul.f32 %v7012_v36, %v2011_v52  ;;  %v2696_v58 = vmul.f32 %v7121_v43, %v7121_v43  ;;  %v4351_v30 = vpop.eup %4350 }
 0x352   : > { %v2198_v16 = vpop.xlane.xlu1 %2197  ;;  %v2482_v10 = vadd.f32 %v2450_v28, %v2354_v0  ;;  %v2372_v43 = vmul.f32 %v2011_v52, %v8378_v4 }
 0x353   : > { %v2254_v35 = vmul.f32 %v7014_v24, %v2198_v16  ;;  %v2619_v57 = vmax.f32 %v2587_v49, 1e-15  ;;  %v2538_v48 = vmul.f32 %v7019_v41, %v2502_v39  ;;  %v2325_v49 = vadd.f32 %v7031_v40, %v2287_v26 }
 0x354   : > { %v2059_v13 = vpop.xlane.xlu0 %2058  ;;  %v2437_v39 = vmul.f32 %v6051_v2, %v2405_v51  ;;  %v2732_v27 = vsel %vm1067_vm4, %v2696_v58, 0.0  ;;  %v7139_v28 = vmul.f32 %v4351_v30, %v2482_v10  ;;  %v2453_v51 = vmul.f32 %v6051_v2, %v2421_v60 }
 0x355   : > { %4354 = vrcp.f32 %v2619_v57  ;;  %v2570_v5 = vadd.f32 %v2538_v48, %v2270_v33  ;;  %v2286_v23 = vadd.f32 1.0, %v2254_v35  ;;  %v2518_v62 = vmul.f32 %v7012_v36, %v2059_v13  ;;  %2733 = vadd.xlane.f32.xlu1 %v2732_v27 }
 0x356   : > { %v2020_v47 = vpop.xlane.xlu1 %2019  ;;  %v2469_v57 = vadd.f32 %v2437_v39, %v2341_v61  ;;  %v2712_v61 = vmul.f32 %v7139_v28, %v7139_v28  ;;  %v2388_v30 = vmul.f32 %v2059_v13, %v8378_v4  ;;  %v2404_v27 = vsub.f32 1.0, %v2372_v43 }
 0x357   : > { %v2554_v16 = vmul.f32 %v7019_v41, %v2518_v62  ;;  %v2505_v11 = vmul.f32 %v7012_v36, %v2020_v47  ;;  %v2602_v50 = vmax.f32 %v2570_v5, 1e-15  ;;  %v2357_v62 = vmul.f32 %v2325_v49, %v6673_v53 }
 0x358   : > { %v2159_v55 = vpop.xlane.xlu0 %2158  ;;  %v2308_v53 = vadd.f32 %v7031_v40, %v2270_v33  ;;  %v2780_v49 = vsel %vm1067_vm4, %v2712_v61, 0.0 }
 0x359   : > { %v2241_v35 = vmul.f32 %v7014_v24, %v2159_v55  ;;  %v2586_v48 = vadd.f32 %v2554_v16, %v2286_v23  ;;  %v2541_v0 = vmul.f32 %v7019_v41, %v2505_v11  ;;  %4356 = vrcp.f32 %v2602_v50  ;;  %2781 = vadd.xlane.f32.xlu1 %v2780_v49 }
 0x35a   : > { %v2068_v3 = vpop.xlane.xlu1 %2067  ;;  %v4353_v26 = vpop.eup %4352  ;;  %v2485_v13 = vadd.f32 %v2453_v51, %v2357_v62 }
 0x35b   : > { %v2273_v63 = vadd.f32 1.0, %v2241_v35  ;;  %v2618_v58 = vmax.f32 %v2586_v48, 1e-15  ;;  %v2521_v5 = vmul.f32 %v7012_v36, %v2068_v3  ;;  %v7147_v39 = vmul.f32 %v4353_v26, %v2469_v57 }
 0x35c   : > { %v2207_v55 = vpop.xlane.xlu0 %2206  ;;  %v2375_v48 = vmul.f32 %v2020_v47, %v8378_v4  ;;  %v2391_v61 = vmul.f32 %v2068_v3, %v8378_v4 }
 0x35d   : > { %8390 = vst [vmem:[#allocation12_spill] sm:$0xff] %v7147_v39  ;;  %v2573_v10 = vadd.f32 %v2541_v0, %v2273_v63  ;;  %v2257_v60 = vmul.f32 %v7014_v24, %v2207_v55  ;;  %v2557_v52 = vmul.f32 %v7019_v41, %v2521_v5  ;;  %v2699_v11 = vmul.f32 %v7147_v39, %v7147_v39 }
 0x35e   : > { %v2156_v16 = vpop.xlane.xlu1 %2155  ;;  %4358 = vrcp.f32 %v2618_v58  ;;  %v2324_v5 = vadd.f32 %v7031_v40, %v2286_v23  ;;  %v2420_v55 = vsub.f32 1.0, %v2388_v30  ;;  %v2311_v43 = vadd.f32 %v7031_v40, %v2273_v63 }
 0x35f   : > { %v2605_v35 = vmax.f32 %v2573_v10, 1e-15  ;;  %v2289_v57 = vadd.f32 1.0, %v2257_v60  ;;  %v4355_v50 = vpop.eup %4354  ;;  %v2240_v0 = vmul.f32 %v7014_v24, %v2156_v16  ;;  %v2741_v26 = vsel %vm1067_vm4, %v2699_v11, 0.0 }
 0x360   : > { %v2017_v33 = vpop.xlane.xlu0 %2016  ;;  %2742 = vadd.xlane.f32.xlu0 %v2741_v26  ;;  %v7163_v62 = vmul.f32 %v4355_v50, %v2485_v13  ;;  %v2340_v23 = vmul.f32 %v2308_v53, %v6684_v34  ;;  %v2407_v30 = vsub.f32 1.0, %v2375_v48  ;;  %v2436_v16 = vmul.f32 %v6051_v2, %v2404_v27 }
 0x361   : > { %v2589_v39 = vadd.f32 %v2557_v52, %v2289_v57  ;;  %v2272_v58 = vadd.f32 1.0, %v2240_v0  ;;  %v2504_v10 = vmul.f32 %v7012_v36, %v2017_v33  ;;  %4360 = vrcp.f32 %v2605_v35 }
 0x362   : > { %v2204_v51 = vpop.xlane.xlu1 %2203  ;;  %v2327_v47 = vadd.f32 %v7031_v40, %v2289_v57  ;;  %v2715_v63 = vmul.f32 %v7163_v62, %v7163_v62  ;;  %v2356_v11 = vmul.f32 %v2324_v5, %v6695_v44  ;;  %v2423_v50 = vsub.f32 1.0, %v2391_v61 }
 0x363   : > { %v2621_v60 = vmax.f32 %v2589_v39, 1e-15  ;;  %v2256_v49 = vmul.f32 %v7014_v24, %v2204_v51  ;;  %v2540_v3 = vmul.f32 %v7019_v41, %v2504_v10  ;;  %v2343_v35 = vmul.f32 %v2311_v43, %v6713_v31  ;;  %v4357_v53 = vpop.eup %4356 }
 0x364   : > { %v2065_v52 = vpop.xlane.xlu0 %2064  ;;  %v2452_v48 = vmul.f32 %v6051_v2, %v2420_v55  ;;  %v2359_v0 = vmul.f32 %v2327_v47, %v6735_v38  ;;  %v7178_v26 = vmul.f32 %v2017_v33, %v8378_v4  ;;  %v2789_v27 = vsel %vm1067_vm4, %v2715_v63, 0.0 }
 0x365   : > { %4362 = vrcp.f32 %v2621_v60  ;;  %v2572_v39 = vadd.f32 %v2540_v3, %v2272_v58  ;;  %v2288_v57 = vadd.f32 1.0, %v2256_v49  ;;  %v2520_v13 = vmul.f32 %v7012_v36, %v2065_v52  ;;  %2790 = vadd.xlane.f32.xlu0 %v2789_v27 }
 0x366   : > { %v2026_v34 = vpop.xlane.xlu1 %2025  ;;  %v2468_v44 = vadd.f32 %v2436_v16, %v2340_v23  ;;  %v2439_v5 = vmul.f32 %v6051_v2, %v2407_v30  ;;  %v2484_v51 = vadd.f32 %v2452_v48, %v2356_v11  ;;  %v2455_v55 = vmul.f32 %v6051_v2, %v2423_v50 }
 0x367   : > { %v2556_v31 = vmul.f32 %v7019_v41, %v2520_v13  ;;  %v2507_v61 = vmul.f32 %v7012_v36, %v2026_v34  ;;  %v2604_v60 = vmax.f32 %v2572_v39, 1e-15  ;;  %v2310_v63 = vadd.f32 %v7031_v40, %v2272_v58 }
 0x368   : > { %v2165_v43 = vpop.xlane.xlu0 %2164  ;;  %v4359_v10 = vpop.eup %4358  ;;  %v2471_v33 = vadd.f32 %v2439_v5, %v2343_v35  ;;  %v7187_v23 = vmul.f32 %v4357_v53, %v2468_v44  ;;  %v2487_v3 = vadd.f32 %v2455_v55, %v2359_v0  ;;  %v2406_v16 = vsub.f32 1.0, %v7178_v26 }
 0x369   : > { %v2243_v38 = vmul.f32 %v7014_v24, %v2165_v43  ;;  %v2588_v47 = vadd.f32 %v2556_v31, %v2288_v57  ;;  %v2543_v49 = vmul.f32 %v7019_v41, %v2507_v61  ;;  %v7194_v35 = vmul.f32 %v4359_v10, %v2484_v51 }
 0x36a   : > { %v2074_v30 = vpop.xlane.xlu1 %2073  ;;  %v2698_v11 = vmul.f32 %v7187_v23, %v7187_v23  ;;  %4364 = vrcp.f32 %v2604_v60  ;;  %v2390_v53 = vmul.f32 %v2065_v52, %v8378_v4  ;;  %v2326_v58 = vadd.f32 %v7031_v40, %v2288_v57 }
 0x36b   : > { %v2275_v13 = vadd.f32 1.0, %v2243_v38  ;;  %v2620_v27 = vmax.f32 %v2588_v47, 1e-15  ;;  %v2523_v50 = vmul.f32 %v7012_v36, %v2074_v30  ;;  %v4361_v48 = vpop.eup %4360  ;;  %v2714_v31 = vmul.f32 %v7194_v35, %v7194_v35 }
 0x36c   : > { %v2213_v39 = vpop.xlane.xlu0 %2212  ;;  %v2738_v26 = vsel %vm1067_vm4, %v2698_v11, 0.0  ;;  %v2377_v10 = vmul.f32 %v2026_v34, %v8378_v4  ;;  %v7206_v38 = vmul.f32 %v4361_v48, %v2471_v33 }
 0x36d   : > { %v2575_v44 = vadd.f32 %v2543_v49, %v2275_v13  ;;  %v2259_v0 = vmul.f32 %v7014_v24, %v2213_v39  ;;  %v2559_v5 = vmul.f32 %v7019_v41, %v2523_v50  ;;  %4366 = vrcp.f32 %v2620_v27  ;;  %2739 = vadd.xlane.f32.xlu1 %v2738_v26 }
 0x36e   : > { %v2162_v61 = vpop.xlane.xlu1 %2161  ;;  %v2786_v55 = vsel %vm1067_vm4, %v2714_v31, 0.0  ;;  %v2422_v49 = vsub.f32 1.0, %v2390_v53  ;;  %v2313_v11 = vadd.f32 %v7031_v40, %v2275_v13  ;;  %v2393_v50 = vmul.f32 %v2074_v30, %v8378_v4 }
 0x36f   : > { %v4363_v43 = vpop.eup %4362  ;;  %v2607_v51 = vmax.f32 %v2575_v44, 1e-15  ;;  %v2291_v52 = vadd.f32 1.0, %v2259_v0  ;;  %v2242_v60 = vmul.f32 %v7014_v24, %v2162_v61  ;;  %v2701_v44 = vmul.f32 %v7206_v38, %v7206_v38 }
 0x370   : > { %v2023_v57 = vpop.xlane.xlu0 %2022  ;;  %v7208_v47 = vmul.f32 %v4363_v43, %v2487_v3  ;;  %v2342_v30 = vmul.f32 %v2310_v63, %v6730_v1  ;;  %v2409_v48 = vsub.f32 1.0, %v2377_v10  ;;  %v2438_v61 = vmul.f32 %v6051_v2, %v2406_v16 }
 0x371   : > { %v2591_v27 = vadd.f32 %v2559_v5, %v2291_v52  ;;  %4368 = vrcp.f32 %v2607_v51  ;;  %v2274_v34 = vadd.f32 1.0, %v2242_v60  ;;  %v2506_v39 = vmul.f32 %v7012_v36, %v2023_v57  ;;  %2787 = vadd.xlane.f32.xlu1 %v2786_v55 }
 0x372   : > { %v2210_v0 = vpop.xlane.xlu1 %2209  ;;  %v2329_v26 = vadd.f32 %v7031_v40, %v2291_v52  ;;  %v2717_v13 = vmul.f32 %v7208_v47, %v7208_v47  ;;  %v2747_v5 = vsel %vm1067_vm4, %v2701_v44, 0.0  ;;  %v2358_v43 = vmul.f32 %v2326_v58, %v6814_v37 }
 0x373   : > { %v2623_v33 = vmax.f32 %v2591_v27, 1e-15  ;;  %v2258_v3 = vmul.f32 %v7014_v24, %v2210_v0  ;;  %v2542_v53 = vmul.f32 %v7019_v41, %v2506_v39  ;;  %v2425_v51 = vsub.f32 1.0, %v2393_v50  ;;  %2748 = vadd.xlane.f32.xlu0 %v2747_v5 }
 0x374   : > { %v2071_v31 = vpop.xlane.xlu0 %2070  ;;  %v2345_v52 = vmul.f32 %v2313_v11, %v6826_v42  ;;  %v4365_v63 = vpop.eup %4364  ;;  %v2454_v10 = vmul.f32 %v6051_v2, %v2422_v49  ;;  %v2361_v39 = vmul.f32 %v2329_v26, %v6836_v29  ;;  %v7229_v44 = vmul.f32 %v2023_v57, %v8378_v4 }
 0x375   : > { %4370 = vrcp.f32 %v2623_v33  ;;  %v2574_v55 = vadd.f32 %v2542_v53, %v2274_v34  ;;  %v2290_v60 = vadd.f32 1.0, %v2258_v3  ;;  %v2522_v27 = vmul.f32 %v7012_v36, %v2071_v31 }
 0x376   : > { %v2032_v1 = vpop.xlane.xlu1 %2031  ;;  %v2795_v37 = vsel %vm1067_vm4, %v2717_v13, 0.0  ;;  %v2470_v16 = vadd.f32 %v2438_v61, %v2342_v30  ;;  %v2441_v58 = vmul.f32 %v6051_v2, %v2409_v48  ;;  %v2486_v33 = vadd.f32 %v2454_v10, %v2358_v43 }
 0x377   : > { %v2558_v42 = vmul.f32 %v7019_v41, %v2522_v27  ;;  %v2509_v11 = vmul.f32 %v7012_v36, %v2032_v1  ;;  %v4367_v0 = vpop.eup %4366  ;;  %v2457_v3 = vmul.f32 %v6051_v2, %v2425_v51  ;;  %v2606_v49 = vmax.f32 %v2574_v55, 1e-15  ;;  %2796 = vadd.xlane.f32.xlu0 %v2795_v37 }
 0x378   : > { %v2171_v50 = vpop.xlane.xlu0 %2170  ;;  %v2473_v57 = vadd.f32 %v2441_v58, %v2345_v52  ;;  %v7238_v30 = vmul.f32 %v4365_v63, %v2470_v16  ;;  %v2312_v5 = vadd.f32 %v7031_v40, %v2274_v34  ;;  %v2408_v61 = vsub.f32 1.0, %v7229_v44 }
 0x379   : > { %v2245_v29 = vmul.f32 %v7014_v24, %v2171_v50  ;;  %v2590_v26 = vadd.f32 %v2558_v42, %v2290_v60  ;;  %v2545_v13 = vmul.f32 %v7019_v41, %v2509_v11  ;;  %v2489_v53 = vadd.f32 %v2457_v3, %v2361_v39 }
 0x37a   : > { %v2080_v48 = vpop.xlane.xlu1 %2079  ;;  %v2700_v51 = vmul.f32 %v7238_v30, %v7238_v30  ;;  %v7245_v37 = vmul.f32 %v4367_v0, %v2486_v33  ;;  %4372 = vrcp.f32 %v2606_v49  ;;  %v2392_v63 = vmul.f32 %v2071_v31, %v8378_v4 }
 0x37b   : > { %v2277_v27 = vadd.f32 1.0, %v2245_v29  ;;  %v4369_v43 = vpop.eup %4368  ;;  %v2622_v10 = vmax.f32 %v2590_v26, 1e-15  ;;  %v2525_v55 = vmul.f32 %v7012_v36, %v2080_v48  ;;  %v2328_v34 = vadd.f32 %v7031_v40, %v2290_v60 }
 0x37c   : > { %v2219_v52 = vpop.xlane.xlu0 %2218  ;;  %v2744_v44 = vsel %vm1067_vm4, %v2700_v51, 0.0  ;;  %v2716_v42 = vmul.f32 %v7245_v37, %v7245_v37  ;;  %v2379_v0 = vmul.f32 %v2032_v1, %v8378_v4  ;;  %v7257_v29 = vmul.f32 %v4369_v43, %v2473_v57 }
 0x37d   : > { %v2577_v16 = vadd.f32 %v2545_v13, %v2277_v27  ;;  %v2261_v39 = vmul.f32 %v7014_v24, %v2219_v52  ;;  %v2561_v58 = vmul.f32 %v7019_v41, %v2525_v55  ;;  %4374 = vrcp.f32 %v2622_v10  ;;  %2745 = vadd.xlane.f32.xlu1 %v2744_v44 }
 0x37e   : > { %v2168_v11 = vpop.xlane.xlu1 %2167  ;;  %v2792_v3 = vsel %vm1067_vm4, %v2716_v42, 0.0  ;;  %v2424_v13 = vsub.f32 1.0, %v2392_v63  ;;  %v2315_v51 = vadd.f32 %v7031_v40, %v2277_v27  ;;  %v2395_v55 = vmul.f32 %v2080_v48, %v8378_v4 }
 0x37f   : > { %v4371_v50 = vpop.eup %4370  ;;  %v2609_v33 = vmax.f32 %v2577_v16, 1e-15  ;;  %v2293_v31 = vadd.f32 1.0, %v2261_v39  ;;  %v2244_v49 = vmul.f32 %v7014_v24, %v2168_v11  ;;  %v2703_v16 = vmul.f32 %v7257_v29, %v7257_v29 }
 0x380   : > { %v2029_v60 = vpop.xlane.xlu0 %2028  ;;  %v7259_v26 = vmul.f32 %v4371_v50, %v2489_v53  ;;  %v2344_v48 = vmul.f32 %v2312_v5, %v6848_v59  ;;  %v2411_v43 = vsub.f32 1.0, %v2379_v0  ;;  %v2440_v11 = vmul.f32 %v6051_v2, %v2408_v61 }
 0x381   : > { %v2593_v10 = vadd.f32 %v2561_v58, %v2293_v31  ;;  %4376 = vrcp.f32 %v2609_v33  ;;  %v2276_v1 = vadd.f32 1.0, %v2244_v49  ;;  %v2508_v52 = vmul.f32 %v7012_v36, %v2029_v60  ;;  %2793 = vadd.xlane.f32.xlu1 %v2792_v3 }
 0x382   : > { %8391 = vst [vmem:[#allocation11_spill] sm:$0xff] %v7259_v26  ;;  %v2216_v39 = vpop.xlane.xlu1 %2215  ;;  %v2331_v44 = vadd.f32 %v7031_v40, %v2293_v31  ;;  %v2719_v27 = vmul.f32 %v7259_v26, %v7259_v26  ;;  %v2753_v58 = vsel %vm1067_vm4, %v2703_v16, 0.0  ;;  %v2360_v50 = vmul.f32 %v2328_v34, %v6866_v21 }
 0x383   : > { %v2625_v57 = vmax.f32 %v2593_v10, 1e-15  ;;  %v2260_v53 = vmul.f32 %v7014_v24, %v2216_v39  ;;  %v2544_v63 = vmul.f32 %v7019_v41, %v2508_v52  ;;  %v2427_v33 = vsub.f32 1.0, %v2395_v55  ;;  %2754 = vadd.xlane.f32.xlu0 %v2753_v58 }
 0x384   : > { %v2077_v42 = vpop.xlane.xlu0 %2076  ;;  %v2347_v31 = vmul.f32 %v2315_v51, %v6886_v14  ;;  %v4373_v5 = vpop.eup %4372  ;;  %v2456_v0 = vmul.f32 %v6051_v2, %v2424_v13  ;;  %v2363_v52 = vmul.f32 %v2331_v44, %v6896_v22  ;;  %v2378_v16 = vmul.f32 %v2029_v60, %v8378_v4 }
 0x385   : > { %4378 = vrcp.f32 %v2625_v57  ;;  %v2576_v3 = vadd.f32 %v2544_v63, %v2276_v1  ;;  %v2292_v49 = vadd.f32 1.0, %v2260_v53  ;;  %v2524_v10 = vmul.f32 %v7012_v36, %v2077_v42 }
 0x386   : > { %v2038_v59 = vpop.xlane.xlu1 %2037  ;;  %v2801_v61 = vsel %vm1067_vm4, %v2719_v27, 0.0  ;;  %v2472_v21 = vadd.f32 %v2440_v11, %v2344_v48  ;;  %v2443_v34 = vmul.f32 %v6051_v2, %v2411_v43  ;;  %v2488_v57 = vadd.f32 %v2456_v0, %v2360_v50 }
 0x387   : > { %v2560_v55 = vmul.f32 %v7019_v41, %v2524_v10  ;;  %v2511_v14 = vmul.f32 %v7012_v36, %v2038_v59  ;;  %v4375_v39 = vpop.eup %4374  ;;  %v2459_v53 = vmul.f32 %v6051_v2, %v2427_v33  ;;  %v2608_v63 = vmax.f32 %v2576_v3, 1e-15  ;;  %2802 = vadd.xlane.f32.xlu0 %v2801_v61 }
 0x388   : > { %v2177_v51 = vpop.xlane.xlu0 %2176  ;;  %v2475_v13 = vadd.f32 %v2443_v34, %v2347_v31  ;;  %v7287_v27 = vmul.f32 %v4373_v5, %v2472_v21  ;;  %v2314_v58 = vadd.f32 %v7031_v40, %v2276_v1  ;;  %v2410_v11 = vsub.f32 1.0, %v2378_v16 }
 0x389   : > { %v2247_v22 = vmul.f32 %v7014_v24, %v2177_v51  ;;  %v2592_v60 = vadd.f32 %v2560_v55, %v2292_v49  ;;  %v2547_v44 = vmul.f32 %v7019_v41, %v2511_v14  ;;  %v2491_v43 = vadd.f32 %v2459_v53, %v2363_v52 }
 0x38a   : > { %v2086_v48 = vpop.xlane.xlu1 %2085  ;;  %v2702_v33 = vmul.f32 %v7287_v27, %v7287_v27  ;;  %v7293_v31 = vmul.f32 %v4375_v39, %v2488_v57  ;;  %4380 = vrcp.f32 %v2608_v63  ;;  %v2394_v5 = vmul.f32 %v2077_v42, %v8378_v4 }
 0x38b   : > { %v2279_v10 = vadd.f32 1.0, %v2247_v22  ;;  %v4377_v26 = vpop.eup %4376  ;;  %v2624_v50 = vmax.f32 %v2592_v60, 1e-15  ;;  %v2527_v3 = vmul.f32 %v7012_v36, %v2086_v48  ;;  %v2330_v1 = vadd.f32 %v7031_v40, %v2292_v49 }
 0x38c   : > { %v2225_v0 = vpop.xlane.xlu0 %2224  ;;  %v2750_v16 = vsel %vm1067_vm4, %v2702_v33, 0.0  ;;  %v2718_v34 = vmul.f32 %v7293_v31, %v7293_v31  ;;  %v2346_v51 = vmul.f32 %v2314_v58, %v6906_v25  ;;  %v7305_v63 = vmul.f32 %v4377_v26, %v2475_v13 }
 0x38d   : > { %v2579_v61 = vadd.f32 %v2547_v44, %v2279_v10  ;;  %v2263_v52 = vmul.f32 %v7014_v24, %v2225_v0  ;;  %v2563_v21 = vmul.f32 %v7019_v41, %v2527_v3  ;;  %4382 = vrcp.f32 %v2624_v50  ;;  %2751 = vadd.xlane.f32.xlu1 %v2750_v16 }
 0x38e   : > { %v2174_v55 = vpop.xlane.xlu1 %2173  ;;  %v2798_v57 = vsel %vm1067_vm4, %v2718_v34, 0.0  ;;  %v2442_v60 = vmul.f32 %v6051_v2, %v2410_v11  ;;  %v2426_v44 = vsub.f32 1.0, %v2394_v5  ;;  %v2381_v33 = vmul.f32 %v2038_v59, %v8378_v4 }
 0x38f   : > { %v4379_v14 = vpop.eup %4378  ;;  %v2611_v39 = vmax.f32 %v2579_v61, 1e-15  ;;  %v2295_v42 = vadd.f32 1.0, %v2263_v52  ;;  %v2246_v53 = vmul.f32 %v7014_v24, %v2174_v55  ;;  %v2362_v25 = vmul.f32 %v2330_v1, %v6916_v19 }
 0x390   : > { %v2035_v49 = vpop.xlane.xlu0 %2034  ;;  %v7307_v22 = vmul.f32 %v4379_v14, %v2491_v43  ;;  %v2705_v0 = vmul.f32 %v7305_v63, %v7305_v63  ;;  %v2397_v59 = vmul.f32 %v2086_v48, %v8378_v4  ;;  %v2474_v52 = vadd.f32 %v2442_v60, %v2346_v51 }
 0x391   : > { %v2595_v3 = vadd.f32 %v2563_v21, %v2295_v42  ;;  %v2278_v58 = vadd.f32 1.0, %v2246_v53  ;;  %v2510_v50 = vmul.f32 %v7012_v36, %v2035_v49  ;;  %4384 = vrcp.f32 %v2611_v39  ;;  %2799 = vadd.xlane.f32.xlu1 %v2798_v57 }
 0x392   : > { %v2222_v61 = vpop.xlane.xlu1 %2221  ;;  %v2721_v43 = vmul.f32 %v7307_v22, %v7307_v22  ;;  %v2759_v19 = vsel %vm1067_vm4, %v2705_v0, 0.0  ;;  %v2458_v1 = vmul.f32 %v6051_v2, %v2426_v44  ;;  %v2317_v16 = vadd.f32 %v7031_v40, %v2279_v10 }
 0x393   : > { %v2627_v26 = vmax.f32 %v2595_v3, 1e-15  ;;  %v2262_v13 = vmul.f32 %v7014_v24, %v2222_v61  ;;  %v2546_v11 = vmul.f32 %v7019_v41, %v2510_v50  ;;  %v2333_v21 = vadd.f32 %v7031_v40, %v2295_v42  ;;  %2760 = vadd.xlane.f32.xlu0 %v2759_v19 }
 0x394   : > { %v2083_v5 = vpop.xlane.xlu0 %2082  ;;  %v4381_v48 = vpop.eup %4380  ;;  %v2490_v57 = vadd.f32 %v2458_v1, %v2362_v25  ;;  %v2413_v53 = vsub.f32 1.0, %v2381_v33  ;;  %v2380_v3 = vmul.f32 %v2035_v49, %v8378_v4  ;;  %v2807_v51 = vsel %vm1067_vm4, %v2721_v43, 0.0 }
 0x395   : > { %4386 = vrcp.f32 %v2627_v26  ;;  %v2578_v34 = vadd.f32 %v2546_v11, %v2278_v58  ;;  %v2294_v55 = vadd.f32 1.0, %v2262_v13  ;;  %v2526_v14 = vmul.f32 %v7012_v36, %v2083_v5 }
 0x396   : > { %v2044_v39 = vpop.xlane.xlu1 %2043  ;;  %v2429_v60 = vsub.f32 1.0, %v2397_v59  ;;  %v2349_v61 = vmul.f32 %v2317_v16, %v6926_v6  ;;  %v2365_v26 = vmul.f32 %v2333_v21, %v6936_v8  ;;  %v2316_v13 = vadd.f32 %v7031_v40, %v2278_v58 }
 0x397   : > { %v2610_v44 = vmax.f32 %v2578_v34, 1e-15  ;;  %v2562_v10 = vmul.f32 %v7019_v41, %v2526_v14  ;;  %v2513_v42 = vmul.f32 %v7012_v36, %v2044_v39  ;;  %v4383_v0 = vpop.eup %4382  ;;  %2808 = vadd.xlane.f32.xlu0 %v2807_v51  ;;  %v7334_v43 = vmul.f32 %v4381_v48, %v2474_v52 }
 0x398   : > { %v2183_v50 = vpop.xlane.xlu0 %2182  ;;  %v2445_v11 = vmul.f32 %v6051_v2, %v2413_v53  ;;  %v2412_v19 = vsub.f32 1.0, %v2380_v3  ;;  %v2396_v6 = vmul.f32 %v2083_v5, %v8378_v4  ;;  %v2461_v8 = vmul.f32 %v6051_v2, %v2429_v60 }
 0x399   : > { %v2249_v33 = vmul.f32 %v7014_v24, %v2183_v50  ;;  %4388 = vrcp.f32 %v2610_v44  ;;  %v2594_v49 = vadd.f32 %v2562_v10, %v2294_v55  ;;  %v2549_v25 = vmul.f32 %v7019_v41, %v2513_v42 }
 0x39a   : > { %v7336_v59 = vpop.xlane.xlu1 %2091  ;;  %v2704_v16 = vmul.f32 %v7334_v43, %v7334_v43  ;;  %v7343_v34 = vmul.f32 %v4383_v0, %v2490_v57  ;;  %v2477_v52 = vadd.f32 %v2445_v11, %v2349_v61  ;;  %v2348_v48 = vmul.f32 %v2316_v13, %v6946_v15 }
 0x39b   : > { %v2281_v1 = vadd.f32 1.0, %v2249_v33  ;;  %v2626_v58 = vmax.f32 %v2594_v49, 1e-15  ;;  %v4385_v14 = vpop.eup %4384  ;;  %v2493_v44 = vadd.f32 %v2461_v8, %v2365_v26  ;;  %v2444_v60 = vmul.f32 %v6051_v2, %v2412_v19 }
 0x39c   : > { %v2041_v21 = vpop.xlane.xlu0 %2040  ;;  %v2756_v53 = vsel %vm1067_vm4, %v2704_v16, 0.0  ;;  %v2332_v10 = vadd.f32 %v7031_v40, %v2294_v55  ;;  %v2428_v42 = vsub.f32 1.0, %v2396_v6  ;;  %v2383_v0 = vmul.f32 %v2044_v39, %v8378_v4 }
 0x39d   : > { %v2581_v51 = vadd.f32 %v2549_v25, %v2281_v1  ;;  %4390 = vrcp.f32 %v2626_v58  ;;  %v2512_v5 = vmul.f32 %v7012_v36, %v2041_v21  ;;  %2757 = vadd.xlane.f32.xlu1 %v2756_v53  ;;  %v2720_v15 = vmul.f32 %v7343_v34, %v7343_v34 }
 0x39e   : > { %v2180_v3 = vpop.xlane.xlu1 %2179  ;;  %v7354_v13 = vmul.f32 %v4385_v14, %v2477_v52  ;;  %v2476_v33 = vadd.f32 %v2444_v60, %v2348_v48  ;;  %v2319_v49 = vadd.f32 %v7031_v40, %v2281_v1  ;;  %v2364_v8 = vmul.f32 %v2332_v10, %v6956_v17 }
 0x39f   : > { %v2613_v50 = vmax.f32 %v2581_v51, 1e-15  ;;  %v4387_v57 = vpop.eup %4386  ;;  %v2248_v61 = vmul.f32 %v7014_v24, %v2180_v3  ;;  %v2548_v55 = vmul.f32 %v7019_v41, %v2512_v5  ;;  %v2804_v25 = vsel %vm1067_vm4, %v2720_v15, 0.0 }
 0x3a0   : > { %v2089_v26 = vpop.xlane.xlu0 %2088  ;;  %v2707_v39 = vmul.f32 %v7354_v13, %v7354_v13  ;;  %v2529_v58 = vmul.f32 %v7012_v36, %v7336_v59  ;;  %v7366_v16 = vmul.f32 %v4387_v57, %v2493_v44  ;;  %v2460_v52 = vmul.f32 %v6051_v2, %v2428_v42 }
 0x3a1   : > { %4392 = vrcp.f32 %v2613_v50  ;;  %v2280_v11 = vadd.f32 1.0, %v2248_v61  ;;  %v2528_v19 = vmul.f32 %v7012_v36, %v2089_v26  ;;  %2805 = vadd.xlane.f32.xlu1 %v2804_v25  ;;  %v2415_v48 = vsub.f32 1.0, %v2383_v0 }
 0x3a2   : > { %v2228_v6 = vpop.xlane.xlu1 %2227  ;;  %v2765_v53 = vsel %vm1067_vm4, %v2707_v39, 0.0  ;;  %v2723_v36 = vmul.f32 %v7366_v16, %v7366_v16  ;;  %v2351_v44 = vmul.f32 %v2319_v49, %v6966_v12  ;;  %v2382_v10 = vmul.f32 %v2041_v21, %v8378_v4 }
 0x3a3   : > { %v2264_v1 = vmul.f32 %v7014_v24, %v2228_v6  ;;  %v4389_v14 = vpop.eup %4388  ;;  %v2580_v51 = vadd.f32 %v2548_v55, %v2280_v11  ;;  %v2564_v3 = vmul.f32 %v7019_v41, %v2528_v19  ;;  %2766 = vadd.xlane.f32.xlu0 %v2765_v53  ;;  %v2565_v57 = vmul.f32 %v7019_v41, %v2529_v58 }
 0x3a4   : > { %v2231_v5 = vpop.xlane.xlu0 %2230  ;;  %v7376_v42 = vmul.f32 %v4389_v14, %v2476_v33  ;;  %v2813_v61 = vsel %vm1067_vm4, %v2723_v36, 0.0  ;;  %v2492_v25 = vadd.f32 %v2460_v52, %v2364_v8  ;;  %v2318_v12 = vadd.f32 %v7031_v40, %v2280_v11 }
 0x3a5   : > { %v2296_v17 = vadd.f32 1.0, %v2264_v1  ;;  %v2265_v60 = vmul.f32 %v7014_v24, %v2231_v5  ;;  %v2612_v50 = vmax.f32 %v2580_v51, 1e-15  ;;  %v2447_v24 = vmul.f32 %v6051_v2, %v2415_v48 }
 0x3a6   : > { %v2706_v19 = vmul.f32 %v7376_v42, %v7376_v42  ;;  %v2398_v41 = vmul.f32 %v2089_v26, %v8378_v4  ;;  %v2414_v8 = vsub.f32 1.0, %v2382_v10  ;;  %v2399_v14 = vmul.f32 %v7336_v59, %v8378_v4 }
 0x3a7   : > { %v2596_v0 = vadd.f32 %v2564_v3, %v2296_v17  ;;  %v2297_v15 = vadd.f32 1.0, %v2265_v60  ;;  %v4391_v55 = vpop.eup %4390  ;;  %4394 = vrcp.f32 %v2612_v50  ;;  %2814 = vadd.xlane.f32.xlu0 %v2813_v61  ;;  %v2479_v33 = vadd.f32 %v2447_v24, %v2351_v44 }
 0x3a8   : > { %v2762_v39 = vsel %vm1067_vm4, %v2706_v19, 0.0  ;;  %v7386_v6 = vmul.f32 %v4391_v55, %v2492_v25  ;;  %v2334_v11 = vadd.f32 %v7031_v40, %v2296_v17  ;;  %v2350_v26 = vmul.f32 %v2318_v12, %v6983_v18 }
 0x3a9   : > { %v2628_v21 = vmax.f32 %v2596_v0, 1e-15  ;;  %v2597_v49 = vadd.f32 %v2565_v57, %v2297_v15  ;;  %2763 = vadd.xlane.f32.xlu1 %v2762_v39  ;;  %v2430_v51 = vsub.f32 1.0, %v2398_v41  ;;  %v2335_v53 = vadd.f32 %v7031_v40, %v2297_v15 }
 0x3aa   : > { %v2722_v52 = vmul.f32 %v7386_v6, %v7386_v6  ;;  %v2446_v4 = vmul.f32 %v6051_v2, %v2414_v8  ;;  %v2431_v59 = vsub.f32 1.0, %v2399_v14  ;;  %v2366_v17 = vmul.f32 %v2334_v11, %v6993_v54 }
 0x3ab   : > { %v4393_v58 = vpop.eup %4392  ;;  %4396 = vrcp.f32 %v2628_v21  ;;  %v2629_v1 = vmax.f32 %v2597_v49, 1e-15  ;;  %v2462_v44 = vmul.f32 %v6051_v2, %v2430_v51  ;;  %v2367_v40 = vmul.f32 %v2335_v53, %v6976_v32  ;;  %v8392_v53 = vld [vmem:[#allocation19_spill] sm:$0xff] }
 0x3ac   : > { %v7393_v48 = vmul.f32 %v4393_v58, %v2479_v33  ;;  %v2810_v5 = vsel %vm1067_vm4, %v2722_v52, 0.0  ;;  %v2478_v36 = vadd.f32 %v2446_v4, %v2350_v26  ;;  %v2463_v50 = vmul.f32 %v6051_v2, %v2431_v59 }
 0x3ad   : > { %4398 = vrcp.f32 %v2629_v1  ;;  %2811 = vadd.xlane.f32.xlu1 %v2810_v5  ;;  %v2494_v57 = vadd.f32 %v2462_v44, %v2366_v17  ;;  %v7425_v14 = vstv %s228_s17 }
 0x3ae   : > { %v2709_v3 = vmul.f32 %v7393_v48, %v7393_v48  ;;  %v2495_v61 = vadd.f32 %v2463_v50, %v2367_v40 }
 0x3b0   : > { %v2771_v60 = vsel %vm1067_vm4, %v2709_v3, 0.0 }
 0x3b1   : > { %2772 = vadd.xlane.f32.xlu0 %v2771_v60  ;;  %v4395_v18 = vpop.eup %4394 }
 0x3b2   : > { %v7405_v10 = vmul.f32 %v4395_v18, %v2478_v36 }
 0x3b4   : > { %v2708_v15 = vmul.f32 %v7405_v10, %v7405_v10 }
 0x3b5   : > { %v4397_v0 = vpop.eup %4396 }
 0x3b6   : > { %v7410_v54 = vmul.f32 %v4397_v0, %v2494_v57  ;;  %v2768_v25 = vsel %vm1067_vm4, %v2708_v15, 0.0 }
 0x3b7   : > { %v4399_v55 = vpop.eup %4398  ;;  %2769 = vadd.xlane.f32.xlu1 %v2768_v25 }
 0x3b8   : > { %v2724_v32 = vmul.f32 %v7410_v54, %v7410_v54  ;;  %v7415_v24 = vmul.f32 %v4399_v55, %v2495_v61 }
 0x3ba   : > { %v2816_v2 = vsel %vm1067_vm4, %v2724_v32, 0.0  ;;  %v2725_v19 = vmul.f32 %v7415_v24, %v7415_v24 }
 0x3bb   : > { %2817 = vadd.xlane.f32.xlu1 %v2816_v2 }
 0x3bc   : > { %v2819_v12 = vsel %vm1067_vm4, %v2725_v19, 0.0  ;;  %vm3495_vm4 = vcmask 257024  }
 0x3bd   : > { %2820 = vadd.xlane.f32.xlu0 %v2819_v12 }
 0x3c4   : > { %v2731_v21 = vpop.xlane.xlu0 %2730 }
 0x3c5   : > { %v2823_v49 = vmax.f32 %v2731_v21, 1e-30 }
 0x3c7   : > { %4400 = vrsqrt.f32 %v2823_v49 }
 0x3c8   : > { %v2779_v33 = vpop.xlane.xlu0 %2778 }
 0x3c9   : > { %v2839_v41 = vmax.f32 %v2779_v33, 1e-30 }
 0x3cb   : > { %4402 = vrsqrt.f32 %v2839_v41 }
 0x3ce   : > { %v2728_v39 = vpop.xlane.xlu1 %2727 }
 0x3cf   : > { %v2822_v8 = vmax.f32 %v2728_v39, 1e-30 }
 0x3d1   : > { %v7422_v58 = vpop.eup %4400  ;;  %4404 = vrsqrt.f32 %v2822_v8 }
 0x3d2   : > { %v2887_v1 = vmul.f32 %v7422_v58, %v2823_v49 }
 0x3d3   : > { %v2776_v52 = vpop.xlane.xlu1 %2775 }
 0x3d4   : > { %v2920_v11 = vmin.f32 %v2887_v1, %v7425_v14  ;;  %v2838_v51 = vmax.f32 %v2776_v52, 1e-30 }
 0x3d5   : > { %v7428_v26 = vpop.eup %4402 }
 0x3d6   : > { %v2952_v5 = vmul.f32 %v2920_v11, %v8392_v53  ;;  %v2903_v3 = vmul.f32 %v7428_v26, %v2839_v41  ;;  %4406 = vrsqrt.f32 %v2838_v51 }
 0x3d7   : > { %v2737_v4 = vpop.xlane.xlu0 %2736 }
 0x3d8   : > { %v2825_v59 = vmax.f32 %v2737_v4, 1e-30  ;;  %v3672_v17 = vclamps-f32 %v2952_v5, 0.9999999  ;;  %v2936_v60 = vmin.f32 %v2903_v3, %v7425_v14 }
 0x3da   : > { %4408 = vrsqrt.f32 %v2825_v59  ;;  %v3080_v36 = vsub.f32 1.0, %v3672_v17  ;;  %v2968_v18 = vmul.f32 %v2936_v60, %v8392_v53  ;;  %v3048_v41 = vadd.f32 1.0, %v3672_v17 }
 0x3db   : > { %v7434_v57 = vpop.eup %4404 }
 0x3dc   : > { %v2785_v44 = vpop.xlane.xlu0 %2784  ;;  %4410 = vrcp.f32 %v3080_v36  ;;  %v3688_v50 = vclamps-f32 %v2968_v18, 0.9999999  ;;  %v2886_v15 = vmul.f32 %v7434_v57, %v2822_v8 }
 0x3dd   : > { %v2841_v40 = vmax.f32 %v2785_v44, 1e-30 }
 0x3de   : > { %v3096_v0 = vsub.f32 1.0, %v3688_v50  ;;  %v2919_v61 = vmin.f32 %v2886_v15, %v7425_v14 }
 0x3df   : > { %4412 = vrsqrt.f32 %v2841_v40 }
 0x3e0   : > { %4414 = vrcp.f32 %v3096_v0  ;;  %v7438_v55 = vpop.eup %4406  ;;  %v2951_v25 = vmul.f32 %v2919_v61, %v8392_v53 }
 0x3e1   : > { %v2902_v32 = vmul.f32 %v7438_v55, %v2838_v51 }
 0x3e2   : > { %v2734_v2 = vpop.xlane.xlu1 %2733  ;;  %v3671_v21 = vclamps-f32 %v2951_v25, 0.9999999 }
 0x3e3   : > { %v2824_v12 = vmax.f32 %v2734_v2, 1e-30  ;;  %v2935_v49 = vmin.f32 %v2902_v32, %v7425_v14 }
 0x3e4   : > { %v7442_v19 = vpop.eup %4408  ;;  %v3079_v8 = vsub.f32 1.0, %v3671_v21 }
 0x3e5   : > { %v2889_v33 = vmul.f32 %v7442_v19, %v2825_v59  ;;  %4416 = vrsqrt.f32 %v2824_v12  ;;  %v2967_v1 = vmul.f32 %v2935_v49, %v8392_v53  ;;  %v3064_v59 = vadd.f32 1.0, %v3688_v50 }
 0x3e6   : > { %v4411_v39 = vpop.eup %4410  ;;  %4418 = vrcp.f32 %v3079_v8  ;;  %v2782_v60 = vpop.xlane.xlu1 %2781 }
 0x3e7   : > { %v2922_v11 = vmin.f32 %v2889_v33, %v7425_v14  ;;  %v3114_v51 = vmul.f32 %v4411_v39, %v3048_v41  ;;  %v3687_v5 = vclamps-f32 %v2967_v1, 0.9999999  ;;  %v2840_v17 = vmax.f32 %v2782_v60, 1e-30 }
 0x3e8   : > { %v3047_v41 = vadd.f32 1.0, %v3671_v21 }
 0x3e9   : > { %v7448_v52 = vpop.eup %4412  ;;  %v2954_v3 = vmul.f32 %v2922_v11, %v8392_v53  ;;  %4420 = vlog2.f32 %v3114_v51  ;;  %v3095_v18 = vsub.f32 1.0, %v3687_v5 }
 0x3ea   : > { %v2905_v4 = vmul.f32 %v7448_v52, %v2841_v40  ;;  %v4415_v36 = vpop.eup %4414  ;;  %4422 = vrsqrt.f32 %v2840_v17 }
 0x3eb   : > { %v3674_v44 = vclamps-f32 %v2954_v3, 0.9999999  ;;  %v3146_v61 = vmul.f32 %v4415_v36, %v3064_v59  ;;  %4424 = vrcp.f32 %v3095_v18  ;;  %v3063_v36 = vadd.f32 1.0, %v3687_v5 }
 0x3ec   : > { %v2938_v0 = vmin.f32 %v2905_v4, %v7425_v14 }
 0x3ed   : > { %v2743_v15 = vpop.xlane.xlu0 %2742  ;;  %v3082_v32 = vsub.f32 1.0, %v3674_v44  ;;  %4426 = vlog2.f32 %v3146_v61 }
 0x3ee   : > { %v2827_v25 = vmax.f32 %v2743_v15, 1e-30  ;;  %v2970_v2 = vmul.f32 %v2938_v0, %v8392_v53 }
 0x3ef   : > { %4428 = vrcp.f32 %v3082_v32  ;;  %v7454_v49 = vpop.eup %4416  ;;  %v3050_v32 = vadd.f32 1.0, %v3674_v44 }
 0x3f0   : > { %v3690_v40 = vclamps-f32 %v2970_v2, 0.9999999  ;;  %4430 = vrsqrt.f32 %v2827_v25  ;;  %v2888_v33 = vmul.f32 %v7454_v49, %v2824_v12  ;;  %v4419_v8 = vpop.eup %4418 }
 0x3f1   : > { %v3112_v3 = vmul.f32 %v4419_v8, %v3047_v41 }
 0x3f2   : > { %v3098_v50 = vsub.f32 1.0, %v3690_v40  ;;  %v2791_v39 = vpop.xlane.xlu0 %2790  ;;  %v2921_v1 = vmin.f32 %v2888_v33, %v7425_v14 }
 0x3f3   : > { %v2843_v11 = vmax.f32 %v2791_v39, 1e-30  ;;  %v4421_v51 = vpop.eup %4420 }
 0x3f4   : > { %4432 = vrcp.f32 %v3098_v50  ;;  %v3178_v4 = vmul.f32 0.6931472, %v4421_v51  ;;  %v7459_v60 = vmul.f32 %v2921_v1, %v8392_v53  ;;  %v7461_v59 = vpop.eup %4422 }
 0x3f5   : > { %4434 = vrsqrt.f32 %v2843_v11  ;;  %v4425_v18 = vpop.eup %4424  ;;  %v2904_v0 = vmul.f32 %v7461_v59, %v2840_v17 }
 0x3f6   : > { %4436 = vlog2.f32 %v3112_v3  ;;  %v3240_v12 = vmul.f32 0.5, %v3178_v4  ;;  %v3673_v21 = vclamps-f32 %v7459_v60, 0.9999999  ;;  %v3144_v61 = vmul.f32 %v4425_v18, %v3063_v36 }
 0x3f7   : > { %v4427_v15 = vpop.eup %4426  ;;  %v2937_v1 = vmin.f32 %v2904_v0, %v7425_v14  ;;  %v3066_v4 = vadd.f32 1.0, %v3690_v40 }
 0x3f8   : > { %v3272_v50 = vmul.f32 %v3240_v12, %v8270_v9  ;;  %v3210_v33 = vmul.f32 0.6931472, %v4427_v15  ;;  %v3081_v41 = vsub.f32 1.0, %v3673_v21  ;;  %4438 = vlog2.f32 %v3144_v61 }
 0x3f9   : > { %v4429_v2 = vpop.eup %4428  ;;  %v2969_v60 = vmul.f32 %v2937_v1, %v8392_v53 }
 0x3fa   : > { %v7466_v39 = vpop.xlane.xlu1 %2739  ;;  %v7468_v8 = vpop.eup %4430  ;;  %v3118_v5 = vmul.f32 %v4429_v2, %v3050_v32  ;;  %v3304_v17 = vmul.f32 %v7422_v58, %v3272_v50  ;;  %v3256_v3 = vmul.f32 0.5, %v3210_v33  ;;  %4440 = vrcp.f32 %v3081_v41 }
 0x3fb   : > { %v2826_v51 = vmax.f32 %v7466_v39, 1e-30  ;;  %v2891_v44 = vmul.f32 %v7468_v8, %v2827_v25  ;;  %v3689_v25 = vclamps-f32 %v2969_v60, 0.9999999 }
 0x3fc   : > { %4442 = vlog2.f32 %v3118_v5  ;;  %v3336_v18 = vmul.f32 %v3304_v17, %v7050_v46  ;;  %v3288_v12 = vmul.f32 %v3256_v3, %v8270_v9 }
 0x3fd   : > { %v2924_v0 = vmin.f32 %v2891_v44, %v7425_v14  ;;  %4444 = vrsqrt.f32 %v2826_v51  ;;  %v3097_v41 = vsub.f32 1.0, %v3689_v25 }
 0x3fe   : > { %v4433_v36 = vpop.eup %4432  ;;  %v7479_v15 = vpop.xlane.xlu1 %2787  ;;  %v3738_v46 = vpack.c.bf16 %v3336_v18, %v3336_v18  ;;  %v3320_v32 = vmul.f32 %v7428_v26, %v3288_v12  ;;  %v3049_v18 = vadd.f32 1.0, %v3673_v21 }
 0x3ff   : > { %v3150_v58 = vmul.f32 %v4433_v36, %v3066_v4  ;;  %v2842_v40 = vmax.f32 %v7479_v15, 1e-30  ;;  %v7487_v61 = vpop.eup %4434  ;;  %v7491_v2 = vmul.f32 %v2924_v0, %v8392_v53 }
 0x400   : > { %v7493_v50 = vpop.xlane.xlu0 %2748  ;;  %v4437_v33 = vpop.eup %4436  ;;  %v2907_v39 = vmul.f32 %v7487_v61, %v2843_v11  ;;  %3497 = vst.msk [vmem:[%s7484_s21 + $0x4] sm:$0xf] %vm3495_vm4, %v3738_v46  ;;  %v3352_v5 = vmul.f32 %v3320_v32, %v7062_v7 }
 0x401   : > { %4446 = vlog2.f32 %v3150_v58  ;;  %v3176_v1 = vmul.f32 0.6931472, %v4437_v33  ;;  %v3676_v17 = vclamps-f32 %v7491_v2, 0.9999999  ;;  %v2829_v3 = vmax.f32 %v7493_v50, 1e-30 }
 0x402   : > { %4448 = vrsqrt.f32 %v2842_v40  ;;  %v2940_v26 = vmin.f32 %v2907_v39, %v7425_v14  ;;  %v3754_v44 = vpack.c.bf16 %v3352_v5, %v3352_v5  ;;  %v4439_v11 = vpop.eup %4438 }
 0x403   : > { %4450 = vrcp.f32 %v3097_v41  ;;  %v3239_v4 = vmul.f32 0.5, %v3176_v1  ;;  %v3084_v60 = vsub.f32 1.0, %v3676_v17  ;;  %v3208_v58 = vmul.f32 0.6931472, %v4439_v11 }
 0x404   : > { %v7502_v36 = vpop.xlane.xlu0 %2796  ;;  %v7505_v12 = vmul.f32 %v2940_v26, %v8392_v53  ;;  %4452 = vrsqrt.f32 %v2829_v3  ;;  %v4441_v0 = vpop.eup %4440  ;;  %3513 = vst.msk [vmem:[%s7484_s21 + $0x44] sm:$0xf] %vm3495_vm4, %v3754_v44  ;;  %v3065_v11 = vadd.f32 1.0, %v3689_v25 }
 0x405   : > { %v2845_v7 = vmax.f32 %v7502_v36, 1e-30  ;;  %v3271_v15 = vmul.f32 %v3239_v4, %v8270_v9  ;;  %4454 = vrcp.f32 %v3084_v60  ;;  %v3116_v32 = vmul.f32 %v4441_v0, %v3049_v18 }
 0x406   : > { %v4443_v46 = vpop.eup %4442  ;;  %v3692_v2 = vclamps-f32 %v7505_v12, 0.9999999  ;;  %v3255_v41 = vmul.f32 0.5, %v3208_v58 }
 0x407   : > { %4456 = vrsqrt.f32 %v2845_v7  ;;  %v7514_v21 = vpop.eup %4444  ;;  %v3303_v33 = vmul.f32 %v7434_v57, %v3271_v15  ;;  %v3182_v39 = vmul.f32 0.6931472, %v4443_v46 }
 0x408   : > { %4458 = vlog2.f32 %v3116_v32  ;;  %v3100_v5 = vsub.f32 1.0, %v3692_v2  ;;  %v2890_v1 = vmul.f32 %v7514_v21, %v2826_v51  ;;  %v3287_v44 = vmul.f32 %v3255_v41, %v8270_v9 }
 0x409   : > { %v3335_v26 = vmul.f32 %v3303_v33, %v7077_v45  ;;  %v3242_v4 = vmul.f32 0.5, %v3182_v39 }
 0x40a   : > { %v7520_v60 = vpop.xlane.xlu1 %2745  ;;  %4460 = vrcp.f32 %v3100_v5  ;;  %v2923_v18 = vmin.f32 %v2890_v1, %v7425_v14  ;;  %v3319_v51 = vmul.f32 %v7438_v55, %v3287_v44  ;;  %v3052_v1 = vadd.f32 1.0, %v3676_v17 }
 0x40b   : > { %v4447_v36 = vpop.eup %4446  ;;  %v2828_v57 = vmax.f32 %v7520_v60, 1e-30  ;;  %v3737_v0 = vpack.c.bf16 %v3335_v26, %v3335_v26  ;;  %v3274_v45 = vmul.f32 %v3242_v4, %v8270_v9  ;;  %v8394_v60 = vld [vmem:[#allocation50_spill] sm:$0xff] }
 0x40c   : > { %v7524_v12 = vpop.eup %4448  ;;  %v3214_v15 = vmul.f32 0.6931472, %v4447_v36  ;;  %v7529_v46 = vmul.f32 %v2923_v18, %v8392_v53  ;;  %v3351_v25 = vmul.f32 %v3319_v51, %v7091_v20 }
 0x40d   : > { %v4451_v58 = vpop.eup %4450  ;;  %v2906_v32 = vmul.f32 %v7524_v12, %v2842_v40  ;;  %4462 = vrsqrt.f32 %v2828_v57  ;;  %3496 = vst.msk [vmem:[%s7484_s21] sm:$0xf] %vm3495_vm4, %v3737_v0  ;;  %v3306_v33 = vmul.f32 %v7442_v19, %v3274_v45 }
 0x40e   : > { %v3258_v41 = vmul.f32 0.5, %v3214_v15  ;;  %v3148_v55 = vmul.f32 %v4451_v58, %v3065_v11  ;;  %v7538_v39 = vpop.xlane.xlu1 %2793  ;;  %v7540_v5 = vpop.eup %4452  ;;  %v3675_v26 = vclamps-f32 %v7529_v46, 0.9999999  ;;  %v3753_v4 = vpack.c.bf16 %v3351_v25, %v3351_v25 }
 0x40f   : > { %v2939_v40 = vmin.f32 %v2906_v32, %v7425_v14  ;;  %v4455_v44 = vpop.eup %4454  ;;  %v3338_v36 = vmul.f32 %v3306_v33, %v7097_v56  ;;  %v2844_v51 = vmax.f32 %v7538_v39, 1e-30  ;;  %v2893_v15 = vmul.f32 %v7540_v5, %v2829_v3  ;;  %v8393_v33 = vld [vmem:[#allocation49_spill] sm:$0xff] }
 0x410   : > { %v3290_v20 = vmul.f32 %v3258_v41, %v8270_v9  ;;  %4464 = vlog2.f32 %v3148_v55  ;;  %v7546_v19 = vpop.xlane.xlu0 %2754  ;;  %v3122_v18 = vmul.f32 %v4455_v44, %v3052_v1  ;;  %v3083_v0 = vsub.f32 1.0, %v3675_v26  ;;  %3512 = vst.msk [vmem:[%s7484_s21 + $0x40] sm:$0xf] %vm3495_vm4, %v3753_v4 }
 0x411   : > { %v7548_v11 = vpop.eup %4456  ;;  %v7551_v17 = vmul.f32 %v2939_v40, %v8392_v53  ;;  %v3740_v45 = vpack.c.bf16 %v3338_v36, %v3338_v36  ;;  %v3068_v32 = vadd.f32 1.0, %v3692_v2  ;;  %v2831_v2 = vmax.f32 %v7546_v19, 1e-30 }
 0x412   : > { %v3322_v56 = vmul.f32 %v7448_v52, %v3290_v20  ;;  %v2909_v58 = vmul.f32 %v7548_v11, %v2845_v7  ;;  %v4459_v46 = vpop.eup %4458  ;;  %4466 = vlog2.f32 %v3122_v18  ;;  %v2926_v52 = vmin.f32 %v2893_v15, %v7425_v14 }
 0x413   : > { %v3691_v25 = vclamps-f32 %v7551_v17, 0.9999999  ;;  %3499 = vst.msk [vmem:[%s7484_s21 + $0xc] sm:$0xf] %vm3495_vm4, %v3740_v45  ;;  %v3180_v55 = vmul.f32 0.6931472, %v4459_v46  ;;  %4468 = vrcp.f32 %v3083_v0 }
 0x414   : > { %v3354_v41 = vmul.f32 %v3322_v56, %v8393_v33  ;;  %v7566_v1 = vpop.xlane.xlu0 %2802  ;;  %v4461_v50 = vpop.eup %4460  ;;  %v2942_v7 = vmin.f32 %v2909_v58, %v7425_v14  ;;  %4470 = vrsqrt.f32 %v2844_v51  ;;  %v2958_v36 = vmul.f32 %v2926_v52, %v8392_v53 }
 0x415   : > { %v3099_v3 = vsub.f32 1.0, %v3691_v25  ;;  %v3241_v44 = vmul.f32 0.5, %v3180_v55  ;;  %v3154_v4 = vmul.f32 %v4461_v50, %v3068_v32  ;;  %v2847_v0 = vmax.f32 %v7566_v1, 1e-30 }
 0x416   : > { %v3756_v40 = vpack.c.bf16 %v3354_v41, %v3354_v41  ;;  %v2974_v18 = vmul.f32 %v2942_v7, %v8392_v53  ;;  %v3678_v45 = vclamps-f32 %v2958_v36, 0.9999999 }
 0x417   : > { %v7573_v20 = vpop.eup %4462  ;;  %4472 = vrcp.f32 %v3099_v3  ;;  %v3273_v17 = vmul.f32 %v3241_v44, %v8270_v9 }
 0x418   : > { %3515 = vst.msk [vmem:[%s7484_s21 + $0x4c] sm:$0xf] %vm3495_vm4, %v3756_v40  ;;  %4474 = vlog2.f32 %v3154_v4  ;;  %v2892_v56 = vmul.f32 %v7573_v20, %v2828_v57  ;;  %v3694_v15 = vclamps-f32 %v2974_v18, 0.9999999  ;;  %v3086_v32 = vsub.f32 1.0, %v3678_v45 }
 0x419   : > { %4476 = vrsqrt.f32 %v2831_v2  ;;  %v3305_v46 = vmul.f32 %v7454_v49, %v3273_v17  ;;  %v3051_v40 = vadd.f32 1.0, %v3675_v26 }
 0x41a   : > { %v4465_v58 = vpop.eup %4464  ;;  %v2925_v33 = vmin.f32 %v2892_v56, %v7425_v14  ;;  %v7587_v41 = vpop.xlane.xlu1 %2751  ;;  %v3102_v52 = vsub.f32 1.0, %v3694_v15  ;;  %4478 = vrsqrt.f32 %v2847_v0 }
 0x41b   : > { %v3212_v55 = vmul.f32 0.6931472, %v4465_v58  ;;  %v3337_v50 = vmul.f32 %v3305_v46, %v8394_v60  ;;  %4480 = vrcp.f32 %v3086_v32  ;;  %v8064_v3 = vmax.f32 %v7587_v41, 1e-30 }
 0x41c   : > { %v7593_v57 = vmul.f32 %v2925_v33, %v8392_v53  ;;  %v4467_v49 = vpop.eup %4466  ;;  %4482 = vrcp.f32 %v3102_v52  ;;  %v3067_v33 = vadd.f32 1.0, %v3691_v25 }
 0x41d   : > { %v3257_v7 = vmul.f32 0.5, %v3212_v55  ;;  %v4469_v44 = vpop.eup %4468  ;;  %v3739_v4 = vpack.c.bf16 %v3337_v50, %v3337_v50  ;;  %v3186_v36 = vmul.f32 0.6931472, %v4467_v49  ;;  %4484 = vrsqrt.f32 %v8064_v3 }
 0x41e   : > { %v3677_v18 = vclamps-f32 %v7593_v57, 0.9999999  ;;  %v7599_v17 = vpop.xlane.xlu1 %2799  ;;  %v7601_v56 = vpop.eup %4470  ;;  %v3120_v46 = vmul.f32 %v4469_v44, %v3051_v40  ;;  %v3054_v49 = vadd.f32 1.0, %v3678_v45  ;;  %v3070_v3 = vadd.f32 1.0, %v3694_v15 }
 0x41f   : > { %v3289_v58 = vmul.f32 %v3257_v7, %v8270_v9  ;;  %v2846_v32 = vmax.f32 %v7599_v17, 1e-30  ;;  %3498 = vst.msk [vmem:[%s7484_s21 + $0x8] sm:$0xf] %vm3495_vm4, %v3739_v4  ;;  %v3244_v26 = vmul.f32 0.5, %v3186_v36  ;;  %v2908_v52 = vmul.f32 %v7601_v56, %v2844_v51 }
 0x420   : > { %v3085_v55 = vsub.f32 1.0, %v3677_v18  ;;  %v7610_v60 = vpop.xlane.xlu0 %2760  ;;  %4486 = vlog2.f32 %v3120_v46 }
 0x421   : > { %v4473_v50 = vpop.eup %4472  ;;  %v3321_v57 = vmul.f32 %v7461_v59, %v3289_v58  ;;  %v2833_v7 = vmax.f32 %v7610_v60, 1e-30  ;;  %v3276_v44 = vmul.f32 %v3244_v26, %v8270_v9  ;;  %v2941_v25 = vmin.f32 %v2908_v52, %v7425_v14  ;;  %v8395_v52 = vld [vmem:[#allocation12_spill] sm:$0xff] }
 0x422   : > { %v4475_v40 = vpop.eup %4474  ;;  %v3152_v4 = vmul.f32 %v4473_v50, %v3067_v33  ;;  %4488 = vrcp.f32 %v3085_v55 }
 0x423   : > { %v7616_v36 = vpop.eup %4476  ;;  %v3353_v39 = vmul.f32 %v3321_v57, %v7139_v28  ;;  %v3218_v51 = vmul.f32 0.6931472, %v4475_v40  ;;  %4490 = vrsqrt.f32 %v2846_v32  ;;  %v3308_v59 = vmul.f32 %v7468_v8, %v3276_v44 }
 0x424   : > { %4492 = vlog2.f32 %v3152_v4  ;;  %v2973_v45 = vmul.f32 %v2941_v25, %v8392_v53  ;;  %v2895_v58 = vmul.f32 %v7616_v36, %v2831_v2  ;;  %v2809_v46 = vpop.xlane.xlu0 %2808  ;;  %v7626_v26 = vpop.eup %4478 }
 0x425   : > { %v3755_v33 = vpack.c.bf16 %v3353_v39, %v3353_v39  ;;  %v3260_v28 = vmul.f32 0.5, %v3218_v51  ;;  %4494 = vrsqrt.f32 %v2833_v7  ;;  %v2849_v15 = vmax.f32 %v2809_v46, 1e-30  ;;  %v4481_v55 = vpop.eup %4480 }
 0x426   : > { %v3340_v8 = vmul.f32 %v3308_v59, %v8395_v52  ;;  %v3693_v50 = vclamps-f32 %v2973_v45, 0.9999999  ;;  %v2928_v57 = vmin.f32 %v2895_v58, %v7425_v14  ;;  %v2911_v19 = vmul.f32 %v7626_v26, %v2847_v0  ;;  %v4483_v2 = vpop.eup %4482 }
 0x427   : > { %3514 = vst.msk [vmem:[%s7484_s21 + $0x48] sm:$0xf] %vm3495_vm4, %v3755_v33  ;;  %v3292_v40 = vmul.f32 %v3260_v28, %v8270_v9  ;;  %v3126_v44 = vmul.f32 %v4481_v55, %v3054_v49  ;;  %4496 = vrsqrt.f32 %v2849_v15  ;;  %v7638_v4 = vpop.eup %4484  ;;  %v3158_v39 = vmul.f32 %v4483_v2, %v3070_v3 }
 0x428   : > { %v3742_v25 = vpack.c.bf16 %v3340_v8, %v3340_v8  ;;  %v3101_v51 = vsub.f32 1.0, %v3693_v50  ;;  %v7642_v45 = vmul.f32 %v2928_v57, %v8392_v53  ;;  %v2944_v1 = vmin.f32 %v2911_v19, %v7425_v14 }
 0x429   : > { %v3324_v59 = vmul.f32 %v7487_v61, %v3292_v40  ;;  %4498 = vlog2.f32 %v3126_v44  ;;  %v3053_v0 = vadd.f32 1.0, %v3677_v18  ;;  %v8396_v49 = vmax.f32 %v7587_v41, 1e-30 }
 0x42a   : > { %3501 = vst.msk [vmem:[%s7484_s21 + $0x14] sm:$0xf] %vm3495_vm4, %v3742_v25  ;;  %4500 = vlog2.f32 %v3158_v39  ;;  %v4487_v46 = vpop.eup %4486  ;;  %v3680_v61 = vclamps-f32 %v7642_v45, 0.9999999  ;;  %v7653_v33 = vmul.f32 %v2944_v1, %v8392_v53  ;;  %v7665_v25 = vpop.xlane.xlu1 %2757 }
 0x42b   : > { %v2894_v58 = vmul.f32 %v7638_v4, %v8396_v49  ;;  %v3356_v3 = vmul.f32 %v3324_v59, %v7163_v62  ;;  %4502 = vrcp.f32 %v3101_v51  ;;  %v3184_v55 = vmul.f32 0.6931472, %v4487_v46 }
 0x42c   : > { %v4489_v28 = vpop.eup %4488  ;;  %v3088_v57 = vsub.f32 1.0, %v3680_v61  ;;  %v3696_v62 = vclamps-f32 %v7653_v33, 0.9999999  ;;  %v3069_v46 = vadd.f32 1.0, %v3693_v50 }
 0x42d   : > { %v2927_v52 = vmin.f32 %v2894_v58, %v7425_v14  ;;  %v7656_v8 = vpop.eup %4490  ;;  %v3758_v18 = vpack.c.bf16 %v3356_v3, %v3356_v3  ;;  %v3124_v41 = vmul.f32 %v4489_v28, %v3053_v0  ;;  %v3243_v2 = vmul.f32 0.5, %v3184_v55 }
 0x42e   : > { %v4493_v19 = vpop.eup %4492  ;;  %v2910_v44 = vmul.f32 %v7656_v8, %v2846_v32  ;;  %v3104_v45 = vsub.f32 1.0, %v3696_v62  ;;  %v7689_v50 = vpop.xlane.xlu1 %2805 }
 0x42f   : > { %v7660_v40 = vmul.f32 %v2927_v52, %v8392_v53  ;;  %v7667_v39 = vpop.eup %4494  ;;  %3517 = vst.msk [vmem:[%s7484_s21 + $0x54] sm:$0xf] %vm3495_vm4, %v3758_v18  ;;  %v3216_v51 = vmul.f32 0.6931472, %v4493_v19  ;;  %4504 = vlog2.f32 %v3124_v41  ;;  %v3275_v59 = vmul.f32 %v3243_v2, %v8270_v9 }
 0x430   : > { %4506 = vrcp.f32 %v3088_v57  ;;  %v2943_v17 = vmin.f32 %v2910_v44, %v7425_v14  ;;  %v2897_v32 = vmul.f32 %v7667_v39, %v2833_v7  ;;  %v2832_v18 = vmax.f32 %v7665_v25, 1e-30 }
 0x431   : > { %v7672_v1 = vpop.eup %4496  ;;  %v3259_v0 = vmul.f32 0.5, %v3216_v51  ;;  %v3679_v49 = vclamps-f32 %v7660_v40, 0.9999999  ;;  %v3307_v58 = vmul.f32 %v7514_v21, %v3275_v59  ;;  %4508 = vrcp.f32 %v3104_v45  ;;  %v7696_v45 = vpop.xlane.xlu0 %2766 }
 0x432   : > { %v2913_v3 = vmul.f32 %v7672_v1, %v2849_v15  ;;  %v7683_v52 = vmul.f32 %v2943_v17, %v8392_v53  ;;  %v2930_v7 = vmin.f32 %v2897_v32, %v7425_v14  ;;  %v3056_v32 = vadd.f32 1.0, %v3680_v61 }
 0x433   : > { %v4499_v33 = vpop.eup %4498  ;;  %v3291_v28 = vmul.f32 %v3259_v0, %v8270_v9  ;;  %v3087_v55 = vsub.f32 1.0, %v3679_v49  ;;  %v3339_v60 = vmul.f32 %v3307_v58, %v7187_v23  ;;  %v2848_v61 = vmax.f32 %v7689_v50, 1e-30 }
 0x434   : > { %v4501_v41 = vpop.eup %4500  ;;  %v3190_v57 = vmul.f32 0.6931472, %v4499_v33  ;;  %v2946_v21 = vmin.f32 %v2913_v3, %v7425_v14  ;;  %v3695_v40 = vclamps-f32 %v7683_v52, 0.9999999  ;;  %v7694_v23 = vmul.f32 %v2930_v7, %v8392_v53 }
 0x435   : > { %v4503_v15 = vpop.eup %4502  ;;  %v3323_v19 = vmul.f32 %v7524_v12, %v3291_v28  ;;  %v3222_v2 = vmul.f32 0.6931472, %v4501_v41  ;;  %4510 = vrcp.f32 %v3087_v55  ;;  %v3741_v44 = vpack.c.bf16 %v3339_v60, %v3339_v60 }
 0x436   : > { %v3246_v51 = vmul.f32 0.5, %v3190_v57  ;;  %v3156_v59 = vmul.f32 %v4503_v15, %v3069_v46  ;;  %v3103_v58 = vsub.f32 1.0, %v3695_v40  ;;  %v3682_v3 = vclamps-f32 %v7694_v23, 0.9999999  ;;  %v7706_v33 = vpop.xlane.xlu1 %2763 }
 0x437   : > { %v3355_v0 = vmul.f32 %v3323_v19, %v7194_v35  ;;  %v3262_v17 = vmul.f32 0.5, %v3222_v2  ;;  %3500 = vst.msk [vmem:[%s7484_s21 + $0x10] sm:$0xf] %vm3495_vm4, %v3741_v44  ;;  %v7704_v46 = vmul.f32 %v2946_v21, %v8392_v53  ;;  %v3072_v57 = vadd.f32 1.0, %v3696_v62  ;;  %v7719_v62 = vpop.xlane.xlu0 %2814 }
 0x438   : > { %v3278_v12 = vmul.f32 %v3246_v51, %v8270_v9  ;;  %4512 = vlog2.f32 %v3156_v59  ;;  %v3090_v7 = vsub.f32 1.0, %v3682_v3  ;;  %v3055_v23 = vadd.f32 1.0, %v3679_v49 }
 0x439   : > { %v4505_v28 = vpop.eup %4504  ;;  %v3757_v55 = vpack.c.bf16 %v3355_v0, %v3355_v0  ;;  %v3294_v35 = vmul.f32 %v3262_v17, %v8270_v9  ;;  %4514 = vrcp.f32 %v3103_v58  ;;  %v3698_v19 = vclamps-f32 %v7704_v46, 0.9999999 }
 0x43a   : > { %v4507_v52 = vpop.eup %4506  ;;  %v3310_v41 = vmul.f32 %v7540_v5, %v3278_v12  ;;  %v3188_v60 = vmul.f32 0.6931472, %v4505_v28  ;;  %4516 = vrsqrt.f32 %v2832_v18  ;;  %v2835_v5 = vmax.f32 %v7696_v45, 1e-30 }
 0x43b   : > { %3516 = vst.msk [vmem:[%s7484_s21 + $0x50] sm:$0xf] %vm3495_vm4, %v3757_v55  ;;  %v3326_v21 = vmul.f32 %v7548_v11, %v3294_v35  ;;  %v3130_v15 = vmul.f32 %v4507_v52, %v3056_v32  ;;  %v4509_v2 = vpop.eup %4508  ;;  %4518 = vrcp.f32 %v3090_v7  ;;  %v3106_v32 = vsub.f32 1.0, %v3698_v19 }
 0x43c   : > { %v3342_v44 = vmul.f32 %v3310_v41, %v7206_v38  ;;  %v3245_v51 = vmul.f32 0.5, %v3188_v60  ;;  %v3162_v11 = vmul.f32 %v4509_v2, %v3072_v57  ;;  %v7727_v38 = vpop.xlane.xlu1 %2811  ;;  %v2834_v55 = vmax.f32 %v7706_v33, 1e-30 }
 0x43d   : > { %v3358_v59 = vmul.f32 %v3326_v21, %v7208_v47  ;;  %4520 = vlog2.f32 %v3130_v15  ;;  %v2851_v47 = vmax.f32 %v7719_v62, 1e-30  ;;  %v2850_v52 = vmax.f32 %v7727_v38, 1e-30 }
 0x43e   : > { %v3744_v0 = vpack.c.bf16 %v3342_v44, %v3342_v44  ;;  %v3277_v17 = vmul.f32 %v3245_v51, %v8270_v9  ;;  %4522 = vrsqrt.f32 %v2848_v61  ;;  %v7734_v35 = vpop.xlane.xlu0 %2772  ;;  %v3071_v57 = vadd.f32 1.0, %v3695_v40 }
 0x43f   : > { %v4511_v58 = vpop.eup %4510  ;;  %v3760_v12 = vpack.c.bf16 %v3358_v59, %v3358_v59  ;;  %4524 = vlog2.f32 %v3162_v11  ;;  %v2837_v21 = vmax.f32 %v7734_v35, 1e-30  ;;  %v3058_v40 = vadd.f32 1.0, %v3682_v3 }
 0x440   : > { %3503 = vst.msk [vmem:[%s7484_s21 + $0x1c] sm:$0xf] %vm3495_vm4, %v3744_v0  ;;  %v3309_v49 = vmul.f32 %v7573_v20, %v3277_v17  ;;  %v3128_v28 = vmul.f32 %v4511_v58, %v3055_v23  ;;  %4526 = vrcp.f32 %v3106_v32 }
 0x441   : > { %3519 = vst.msk [vmem:[%s7484_s21 + $0x5c] sm:$0xf] %vm3495_vm4, %v3760_v12  ;;  %4528 = vrsqrt.f32 %v2835_v5 }
 0x442   : > { %v4513_v41 = vpop.eup %4512  ;;  %v3341_v60 = vmul.f32 %v3309_v49, %v7238_v30  ;;  %4530 = vlog2.f32 %v3128_v28 }
 0x443   : > { %v4515_v20 = vpop.eup %4514  ;;  %v3220_v7 = vmul.f32 0.6931472, %v4513_v41  ;;  %4532 = vrsqrt.f32 %v2851_v47  ;;  %v3074_v41 = vadd.f32 1.0, %v3698_v19 }
 0x444   : > { %v7745_v15 = vpop.xlane.xlu1 %2769  ;;  %v3743_v2 = vpack.c.bf16 %v3341_v60, %v3341_v60  ;;  %v3160_v44 = vmul.f32 %v4515_v20, %v3071_v57  ;;  %4534 = vrsqrt.f32 %v2834_v55  ;;  %v7750_v30 = vpop.eup %4516 }
 0x445   : > { %v2836_v51 = vmax.f32 %v7745_v15, 1e-30  ;;  %v3261_v59 = vmul.f32 0.5, %v3220_v7  ;;  %4536 = vrsqrt.f32 %v2850_v52  ;;  %v4519_v11 = vpop.eup %4518  ;;  %v2896_v23 = vmul.f32 %v7750_v30, %v2832_v18 }
 0x446   : > { %3502 = vst.msk [vmem:[%s7484_s21 + $0x18] sm:$0xf] %vm3495_vm4, %v3743_v2  ;;  %4538 = vlog2.f32 %v3160_v44  ;;  %v3134_v32 = vmul.f32 %v4519_v11, %v3058_v40 }
 0x447   : > { %v4521_v0 = vpop.eup %4520  ;;  %v3293_v17 = vmul.f32 %v3261_v59, %v8270_v9  ;;  %4540 = vrsqrt.f32 %v2837_v21  ;;  %v2929_v49 = vmin.f32 %v2896_v23, %v7425_v14 }
 0x448   : > { %v7762_v58 = vpop.xlane.xlu1 %2817  ;;  %v7764_v3 = vpop.eup %4522  ;;  %v3194_v12 = vmul.f32 0.6931472, %v4521_v0  ;;  %4542 = vrsqrt.f32 %v2836_v51 }
 0x449   : > { %v4525_v18 = vpop.eup %4524  ;;  %v3325_v28 = vmul.f32 %v7601_v56, %v3293_v17  ;;  %4544 = vlog2.f32 %v3134_v32  ;;  %v2912_v60 = vmul.f32 %v7764_v3, %v2848_v61  ;;  %v7778_v2 = vmul.f32 %v2929_v49, %v8392_v53 }
 0x44a   : > { %v7769_v25 = vpop.xlane.xlu0 %2820  ;;  %v4527_v57 = vpop.eup %4526  ;;  %v3248_v20 = vmul.f32 0.5, %v3194_v12  ;;  %v3226_v7 = vmul.f32 0.6931472, %v4525_v18  ;;  %v2852_v44 = vmax.f32 %v7762_v58, 1e-30 }
 0x44b   : > { %v7781_v59 = vpop.eup %4528  ;;  %v3357_v56 = vmul.f32 %v3325_v28, %v7245_v37  ;;  %v3166_v40 = vmul.f32 %v4527_v57, %v3074_v41  ;;  %v2945_v46 = vmin.f32 %v2912_v60, %v7425_v14  ;;  %v2853_v19 = vmax.f32 %v7769_v25, 1e-30 }
 0x44c   : > { %v4531_v50 = vpop.eup %4530  ;;  %v3280_v61 = vmul.f32 %v3248_v20, %v8270_v9  ;;  %v3264_v11 = vmul.f32 0.5, %v3226_v7  ;;  %v3681_v23 = vclamps-f32 %v7778_v2, 0.9999999  ;;  %v2899_v0 = vmul.f32 %v7781_v59, %v2835_v5 }
 0x44d   : > { %v7791_v17 = vpop.eup %4532  ;;  %v3759_v32 = vpack.c.bf16 %v3357_v56, %v3357_v56  ;;  %v3192_v37 = vmul.f32 0.6931472, %v4531_v50  ;;  %4546 = vlog2.f32 %v3166_v40  ;;  %v2977_v12 = vmul.f32 %v2945_v46, %v8392_v53 }
 0x44e   : > { %v7794_v49 = vpop.eup %4534  ;;  %v3312_v18 = vmul.f32 %v7616_v36, %v3280_v61  ;;  %v3296_v28 = vmul.f32 %v3264_v11, %v8270_v9  ;;  %v3089_v41 = vsub.f32 1.0, %v3681_v23  ;;  %4548 = vrsqrt.f32 %v2852_v44 }
 0x44f   : > { %v7800_v45 = vpop.eup %4536  ;;  %3518 = vst.msk [vmem:[%s7484_s21 + $0x58] sm:$0xf] %vm3495_vm4, %v3759_v32  ;;  %v3247_v5 = vmul.f32 0.5, %v3192_v37  ;;  %v3697_v60 = vclamps-f32 %v2977_v12, 0.9999999  ;;  %v2932_v57 = vmin.f32 %v2899_v0, %v7425_v14  ;;  %v2915_v20 = vmul.f32 %v7791_v17, %v2851_v47  ;;  %v8397_v47 = vld [vmem:[#allocation11_spill] sm:$0xff] }
 0x450   : > { %v4539_v7 = vpop.eup %4538  ;;  %v3344_v36 = vmul.f32 %v3312_v18, %v7257_v29  ;;  %v3328_v2 = vmul.f32 %v7626_v26, %v3296_v28  ;;  %4550 = vrcp.f32 %v3089_v41  ;;  %v2898_v56 = vmul.f32 %v7794_v49, %v2834_v55 }
 0x451   : > { %v7813_v40 = vpop.eup %4540  ;;  %v3279_v46 = vmul.f32 %v3247_v5, %v8270_v9  ;;  %v3224_v50 = vmul.f32 0.6931472, %v4539_v7  ;;  %v3105_v61 = vsub.f32 1.0, %v3697_v60  ;;  %4552 = vrsqrt.f32 %v2853_v19 }
 0x452   : > { %v7818_v62 = vpop.eup %4542  ;;  %v3746_v29 = vpack.c.bf16 %v3344_v36, %v3344_v36  ;;  %v3360_v26 = vmul.f32 %v3328_v2, %v8397_v47  ;;  %v7822_v11 = vmul.f32 %v2932_v57, %v8392_v53  ;;  %v2948_v33 = vmin.f32 %v2915_v20, %v7425_v14 }
 0x453   : > { %v4545_v55 = vpop.eup %4544  ;;  %v3311_v0 = vmul.f32 %v7638_v4, %v3279_v46  ;;  %v3263_v32 = vmul.f32 0.5, %v3224_v50  ;;  %4554 = vrcp.f32 %v3105_v61  ;;  %v2931_v37 = vmin.f32 %v2898_v56, %v7425_v14 }
 0x454   : > { %3505 = vst.msk [vmem:[%s7484_s21 + $0x24] sm:$0xf] %vm3495_vm4, %v3746_v29  ;;  %v3762_v12 = vpack.c.bf16 %v3360_v26, %v3360_v26  ;;  %v3198_v18 = vmul.f32 0.6931472, %v4545_v55  ;;  %v3684_v28 = vclamps-f32 %v7822_v11, 0.9999999  ;;  %v7831_v41 = vmul.f32 %v2948_v33, %v8392_v53 }
 0x455   : > { %v3343_v5 = vmul.f32 %v3311_v0, %v7287_v27  ;;  %v3295_v57 = vmul.f32 %v3263_v32, %v8270_v9  ;;  %v7836_v20 = vmul.f32 %v2931_v37, %v8392_v53  ;;  %v2914_v4 = vmul.f32 %v7800_v45, %v2850_v52 }
 0x456   : > { %3521 = vst.msk [vmem:[%s7484_s21 + $0x64] sm:$0xf] %vm3495_vm4, %v3762_v12  ;;  %v3250_v7 = vmul.f32 0.5, %v3198_v18  ;;  %v3092_v36 = vsub.f32 1.0, %v3684_v28  ;;  %v3700_v2 = vclamps-f32 %v7831_v41, 0.9999999  ;;  %v2901_v12 = vmul.f32 %v7813_v40, %v2837_v21 }
 0x457   : > { %v4547_v56 = vpop.eup %4546  ;;  %v3745_v46 = vpack.c.bf16 %v3343_v5, %v3343_v5  ;;  %v3327_v27 = vmul.f32 %v7656_v8, %v3295_v57  ;;  %v3683_v50 = vclamps-f32 %v7836_v20, 0.9999999  ;;  %v2947_v61 = vmin.f32 %v2914_v4, %v7425_v14 }
 0x458   : > { %v7847_v29 = vpop.eup %4548  ;;  %v3282_v38 = vmul.f32 %v3250_v7, %v8270_v9  ;;  %v3230_v47 = vmul.f32 0.6931472, %v4547_v56  ;;  %v3057_v52 = vadd.f32 1.0, %v3681_v23  ;;  %4556 = vrcp.f32 %v3092_v36 }
 0x459   : > { %3504 = vst.msk [vmem:[%s7484_s21 + $0x20] sm:$0xf] %vm3495_vm4, %v3745_v46  ;;  %v3359_v26 = vmul.f32 %v3327_v27, %v7293_v31  ;;  %v3073_v11 = vadd.f32 1.0, %v3697_v60  ;;  %v3108_v33 = vsub.f32 1.0, %v3700_v2  ;;  %v3091_v55 = vsub.f32 1.0, %v3683_v50 }
 0x45a   : > { %v4551_v8 = vpop.eup %4550  ;;  %v3314_v0 = vmul.f32 %v7667_v39, %v3282_v38  ;;  %v3266_v32 = vmul.f32 0.5, %v3230_v47  ;;  %v2979_v37 = vmul.f32 %v2947_v61, %v8392_v53  ;;  %v2900_v31 = vmul.f32 %v7818_v62, %v2836_v51 }
 0x45b   : > { %v7858_v23 = vpop.eup %4552  ;;  %v3761_v18 = vpack.c.bf16 %v3359_v26, %v3359_v26  ;;  %v3132_v41 = vmul.f32 %v4551_v8, %v3057_v52  ;;  %4558 = vrcp.f32 %v3108_v33  ;;  %v2934_v35 = vmin.f32 %v2901_v12, %v7425_v14 }
 0x45c   : > { %v3346_v60 = vmul.f32 %v3314_v0, %v7305_v63  ;;  %v3298_v39 = vmul.f32 %v3266_v32, %v8270_v9  ;;  %4560 = vrcp.f32 %v3091_v55  ;;  %v3699_v5 = vclamps-f32 %v2979_v37, 0.9999999 }
 0x45d   : > { %v4555_v57 = vpop.eup %4554  ;;  %3520 = vst.msk [vmem:[%s7484_s21 + $0x60] sm:$0xf] %vm3495_vm4, %v3761_v18  ;;  %4562 = vlog2.f32 %v3132_v41  ;;  %v2933_v21 = vmin.f32 %v2900_v31, %v7425_v14  ;;  %v2916_v15 = vmul.f32 %v7847_v29, %v2852_v44  ;;  %v2966_v7 = vmul.f32 %v2934_v35, %v8392_v53 }
 0x45e   : > { %v3748_v51 = vpack.c.bf16 %v3346_v60, %v3346_v60  ;;  %v3330_v63 = vmul.f32 %v7672_v1, %v3298_v39  ;;  %v3164_v20 = vmul.f32 %v4555_v57, %v3073_v11  ;;  %v3107_v4 = vsub.f32 1.0, %v3699_v5 }
 0x45f   : > { %v2965_v36 = vmul.f32 %v2933_v21, %v8392_v53  ;;  %v2949_v56 = vmin.f32 %v2916_v15, %v7425_v14  ;;  %v3060_v58 = vadd.f32 1.0, %v3684_v28  ;;  %v2917_v44 = vmul.f32 %v7858_v23, %v2853_v19 }
 0x460   : > { %3507 = vst.msk [vmem:[%s7484_s21 + $0x2c] sm:$0xf] %vm3495_vm4, %v3748_v51  ;;  %v3362_v46 = vmul.f32 %v3330_v63, %v7307_v22  ;;  %4564 = vlog2.f32 %v3164_v20  ;;  %v3686_v1 = vclamps-f32 %v2966_v7, 0.9999999  ;;  %v3076_v22 = vadd.f32 1.0, %v3700_v2 }
 0x461   : > { %4566 = vrcp.f32 %v3107_v4  ;;  %v3685_v27 = vclamps-f32 %v2965_v36, 0.9999999  ;;  %v2981_v61 = vmul.f32 %v2949_v56, %v8392_v53  ;;  %v2950_v52 = vmin.f32 %v2917_v44, %v7425_v14 }
 0x462   : > { %v4557_v38 = vpop.eup %4556  ;;  %v3764_v47 = vpack.c.bf16 %v3362_v46, %v3362_v46  ;;  %v3094_v11 = vsub.f32 1.0, %v3686_v1  ;;  %v3059_v19 = vadd.f32 1.0, %v3683_v50  ;;  %v3075_v60 = vadd.f32 1.0, %v3699_v5 }
 0x463   : > { %v3138_v26 = vmul.f32 %v4557_v38, %v3060_v58  ;;  %v3093_v33 = vsub.f32 1.0, %v3685_v27  ;;  %v3701_v28 = vclamps-f32 %v2981_v61, 0.9999999  ;;  %v2982_v25 = vmul.f32 %v2950_v52, %v8392_v53 }
 0x464   : > { %3523 = vst.msk [vmem:[%s7484_s21 + $0x6c] sm:$0xf] %vm3495_vm4, %v3764_v47  ;;  %v3062_v63 = vadd.f32 1.0, %v3686_v1  ;;  %v3061_v7 = vadd.f32 1.0, %v3685_v27 }
 0x465   : > { %v4559_v55 = vpop.eup %4558  ;;  %4568 = vlog2.f32 %v3138_v26  ;;  %v3109_v32 = vsub.f32 1.0, %v3701_v28  ;;  %v3702_v14 = vclamps-f32 %v2982_v25, 0.9999999  ;;  %v3077_v1 = vadd.f32 1.0, %v3701_v28 }
 0x466   : > { %v4561_v8 = vpop.eup %4560  ;;  %v3170_v0 = vmul.f32 %v4559_v55, %v3076_v22  ;;  %4570 = vrcp.f32 %v3094_v11 }
 0x467   : > { %v4563_v37 = vpop.eup %4562  ;;  %v3136_v12 = vmul.f32 %v4561_v8, %v3059_v19  ;;  %4572 = vrcp.f32 %v3093_v33  ;;  %v3110_v41 = vsub.f32 1.0, %v3702_v14 }
 0x468   : > { %v3196_v18 = vmul.f32 0.6931472, %v4563_v37  ;;  %4574 = vlog2.f32 %v3170_v0 }
 0x469   : > { %4576 = vlog2.f32 %v3136_v12 }
 0x46a   : > { %v4565_v2 = vpop.eup %4564  ;;  %v3249_v31 = vmul.f32 0.5, %v3196_v18  ;;  %4578 = vrcp.f32 %v3109_v32 }
 0x46b   : > { %v4567_v53 = vpop.eup %4566  ;;  %v3228_v39 = vmul.f32 0.6931472, %v4565_v2  ;;  %4580 = vrcp.f32 %v3110_v41 }
 0x46c   : > { %v3281_v50 = vmul.f32 %v3249_v31, %v8270_v9  ;;  %v3168_v57 = vmul.f32 %v4567_v53, %v3075_v60 }
 0x46d   : > { %v3265_v35 = vmul.f32 0.5, %v3228_v39 }
 0x46e   : > { %v3313_v21 = vmul.f32 %v7750_v30, %v3281_v50  ;;  %4582 = vlog2.f32 %v3168_v57 }
 0x46f   : > { %v4569_v15 = vpop.eup %4568  ;;  %v3297_v51 = vmul.f32 %v3265_v35, %v8270_v9 }
 0x470   : > { %v4571_v20 = vpop.eup %4570  ;;  %v3345_v4 = vmul.f32 %v3313_v21, %v7334_v43  ;;  %v3202_v5 = vmul.f32 0.6931472, %v4569_v15 }
 0x471   : > { %v4573_v36 = vpop.eup %4572  ;;  %v3329_v56 = vmul.f32 %v7764_v3, %v3297_v51  ;;  %v3142_v46 = vmul.f32 %v4571_v20, %v3062_v63  ;;  %v3078_v3 = vadd.f32 1.0, %v3702_v14 }
 0x472   : > { %v4575_v58 = vpop.eup %4574  ;;  %v3747_v44 = vpack.c.bf16 %v3345_v4, %v3345_v4  ;;  %v3252_v61 = vmul.f32 0.5, %v3202_v5  ;;  %v3140_v38 = vmul.f32 %v4573_v36, %v3061_v7 }
 0x473   : > { %v4577_v30 = vpop.eup %4576  ;;  %v3361_v47 = vmul.f32 %v3329_v56, %v7343_v34  ;;  %v3234_v52 = vmul.f32 0.6931472, %v4575_v58  ;;  %4584 = vlog2.f32 %v3142_v46 }
 0x474   : > { %v4579_v26 = vpop.eup %4578  ;;  %3506 = vst.msk [vmem:[%s7484_s21 + $0x28] sm:$0xf] %vm3495_vm4, %v3747_v44  ;;  %v3284_v43 = vmul.f32 %v3252_v61, %v8270_v9  ;;  %v3200_v27 = vmul.f32 0.6931472, %v4577_v30  ;;  %4586 = vlog2.f32 %v3140_v38 }
 0x475   : > { %v4581_v11 = vpop.eup %4580  ;;  %v3763_v22 = vpack.c.bf16 %v3361_v47, %v3361_v47  ;;  %v3268_v33 = vmul.f32 0.5, %v3234_v52  ;;  %v3172_v25 = vmul.f32 %v4579_v26, %v3077_v1 }
 0x476   : > { %v3316_v55 = vmul.f32 %v7781_v59, %v3284_v43  ;;  %v3251_v34 = vmul.f32 0.5, %v3200_v27  ;;  %v3174_v19 = vmul.f32 %v4581_v11, %v3078_v3 }
 0x477   : > { %3522 = vst.msk [vmem:[%s7484_s21 + $0x68] sm:$0xf] %vm3495_vm4, %v3763_v22  ;;  %v3300_v28 = vmul.f32 %v3268_v33, %v8270_v9  ;;  %4588 = vlog2.f32 %v3172_v25 }
 0x478   : > { %v4583_v8 = vpop.eup %4582  ;;  %v3348_v0 = vmul.f32 %v3316_v55, %v7354_v13  ;;  %v3283_v32 = vmul.f32 %v3251_v34, %v8270_v9  ;;  %4590 = vlog2.f32 %v3174_v19 }
 0x479   : > { %v3332_v37 = vmul.f32 %v7791_v17, %v3300_v28  ;;  %v3232_v12 = vmul.f32 0.6931472, %v4583_v8 }
 0x47a   : > { %v3750_v59 = vpack.c.bf16 %v3348_v0, %v3348_v0  ;;  %v3315_v14 = vmul.f32 %v7794_v49, %v3283_v32 }
 0x47b   : > { %v3364_v18 = vmul.f32 %v3332_v37, %v7366_v16  ;;  %v3267_v41 = vmul.f32 0.5, %v3232_v12 }
 0x47c   : > { %3509 = vst.msk [vmem:[%s7484_s21 + $0x34] sm:$0xf] %vm3495_vm4, %v3750_v59  ;;  %v3347_v2 = vmul.f32 %v3315_v14, %v7376_v42 }
 0x47d   : > { %v4585_v31 = vpop.eup %4584  ;;  %v3766_v13 = vpack.c.bf16 %v3364_v18, %v3364_v18  ;;  %v3299_v60 = vmul.f32 %v3267_v41, %v8270_v9 }
 0x47e   : > { %v4587_v53 = vpop.eup %4586  ;;  %v3749_v39 = vpack.c.bf16 %v3347_v2, %v3347_v2  ;;  %v3206_v50 = vmul.f32 0.6931472, %v4585_v31 }
 0x47f   : > { %3525 = vst.msk [vmem:[%s7484_s21 + $0x74] sm:$0xf] %vm3495_vm4, %v3766_v13  ;;  %v3331_v17 = vmul.f32 %v7800_v45, %v3299_v60  ;;  %v3204_v49 = vmul.f32 0.6931472, %v4587_v53 }
 0x480   : > { %3508 = vst.msk [vmem:[%s7484_s21 + $0x30] sm:$0xf] %vm3495_vm4, %v3749_v39  ;;  %v3254_v16 = vmul.f32 0.5, %v3206_v50 }
 0x481   : > { %v4589_v57 = vpop.eup %4588  ;;  %v3363_v35 = vmul.f32 %v3331_v17, %v7386_v6  ;;  %v3253_v42 = vmul.f32 0.5, %v3204_v49 }
 0x482   : > { %v4591_v21 = vpop.eup %4590  ;;  %v3286_v15 = vmul.f32 %v3254_v16, %v8270_v9  ;;  %v3236_v51 = vmul.f32 0.6931472, %v4589_v57 }
 0x483   : > { %v3765_v63 = vpack.c.bf16 %v3363_v35, %v3363_v35  ;;  %v3285_v20 = vmul.f32 %v3253_v42, %v8270_v9  ;;  %v3238_v4 = vmul.f32 0.6931472, %v4591_v21 }
 0x484   : > { %v3318_v45 = vmul.f32 %v7813_v40, %v3286_v15  ;;  %v3269_v5 = vmul.f32 0.5, %v3236_v51 }
 0x485   : > { %3524 = vst.msk [vmem:[%s7484_s21 + $0x70] sm:$0xf] %vm3495_vm4, %v3765_v63  ;;  %v3317_v7 = vmul.f32 %v7818_v62, %v3285_v20  ;;  %v3270_v6 = vmul.f32 0.5, %v3238_v4 }
 0x486   : > { %v3350_v36 = vmul.f32 %v3318_v45, %v7393_v48  ;;  %v3301_v56 = vmul.f32 %v3269_v5, %v8270_v9 }
 0x487   : > { %v3349_v46 = vmul.f32 %v3317_v7, %v7405_v10  ;;  %v3302_v58 = vmul.f32 %v3270_v6, %v8270_v9 }
 0x488   : > { %v3752_v44 = vpack.c.bf16 %v3350_v36, %v3350_v36  ;;  %v3333_v61 = vmul.f32 %v7847_v29, %v3301_v56 }
 0x489   : > { %v3751_v40 = vpack.c.bf16 %v3349_v46, %v3349_v46  ;;  %v3334_v38 = vmul.f32 %v7858_v23, %v3302_v58 }
 0x48a   : > { %3511 = vst.msk [vmem:[%s7484_s21 + $0x3c] sm:$0xf] %vm3495_vm4, %v3752_v44  ;;  %v3365_v62 = vmul.f32 %v3333_v61, %v7410_v54 }
 0x48b   : > { %3510 = vst.msk [vmem:[%s7484_s21 + $0x38] sm:$0xf] %vm3495_vm4, %v3751_v40  ;;  %v3366_v48 = vmul.f32 %v3334_v38, %v7415_v24 }
 0x48c   : > { %v3767_v30 = vpack.c.bf16 %v3365_v62, %v3365_v62 }
 0x48d   : > { %v3768_v47 = vpack.c.bf16 %v3366_v48, %v3366_v48 }
 0x48e   : > { %3526 = vst.msk [vmem:[%s7484_s21 + $0x78] sm:$0xf] %vm3495_vm4, %v3767_v30 }
 0x48f   : > { %3527 = vst.msk [vmem:[%s7484_s21 + $0x7c] sm:$0xf] %vm3495_vm4, %v3768_v47 }
 0x490 PF: > { %s15_s15 = sadd.s32 1, %s4619_s15  }
 0x491   : > { %p12_p1 = scmp.ge.s32.totalorder %s15_s15, 6  }
 0x493   :  { %14 = sbr.rel (!%p12_p1) target bundleno = 1 (0x1), region = 71 }
 0x49a   :  { %3550 = vsyncpa [#allocation3], 1 }
 0x49b   :  { %3552 = vsyncpa [#allocation3 + $0x1], 1 }

</bundles_post_ra>
